<compile_context>
chip_gen: v7x
topology: tpu7x:2x2x1
jax: 0.10.0
libtpu: 0.0.40
codegen_flags: <defaults>
</compile_context>

<pallas_src>
import jax
import jax.numpy as jnp
from jax.experimental import pallas as pl
from jax.experimental.pallas import tpu as pltpu

BN_EPS = 1e-5  # nn.BatchNorm2d default
LANE = 128


def downsampling_forward(x_nchw, w1_oihw, g1, b1, w2_oihw, g2, b2):
    """DownSampling forward: [N, Cin, H, W] -> [N, Cout, H/2, W/2] (train-mode BN)."""
    N, Cin, H, W = x_nchw.shape
    Cout = w1_oihw.shape[0]
    assert H % 2 == 0 and W % 2 == 0, "MaxPool2d(kernel_size=2, stride=2) requires even H and W"
    Hp, Wp = H // 2, W // 2            # pooled spatial size
    Hq, Wq = Hp + 2, Wp + 2            # pooled + 1-pixel conv padding ring
    Q = Hq * Wq                        # flat padded image length
    Qp = ((Q + LANE - 1) // LANE) * LANE   # per-image flat length, lane aligned
    NQ = N * Qp                        # lane axis inside the kernel (multiple of 128)
    G = LANE                           # zero guard on each side of the flat axis (for tap shifts)
    M = N * Hp * Wp                    # valid positions per channel (BatchNorm divisor)
    offs = [(ky - 1) * Wq + (kx - 1) for ky in range(3) for kx in range(3)]  # t = ky*3 + kx
    assert G >= Wq + 1, "guard must cover the largest conv tap shift"
    inv_m = 1.0 / M

    # ---------------- wrapper: layout glue only ----------------
    x = x_nchw.astype(jnp.float32)
    # pad by 2: max-pooling the zero pad yields conv1's zero ring for free
    xpad = jnp.pad(x, ((0, 0), (0, 0), (2, 2), (2, 2)))                  # [N, Cin, 2*Hq, 2*Wq]
    xw = xpad.reshape(N, Cin, Hq, 2, Wq, 2)
    xw = jnp.transpose(xw, (3, 5, 1, 0, 2, 4))                           # [2, 2, Cin, N, Hq, Wq]
    xw = xw.reshape(4, Cin, N, Q)
    xw = jnp.pad(xw, ((0, 0), (0, 0), (0, 0), (0, Qp - Q)))              # lane-align each image
    xr = xw.reshape(4, Cin, NQ)                                          # [4, Cin, NQ]

    # weights -> [Cout, 9*Cin] with column index t*Cin + ci (t = ky*3 + kx)
    w1m = jnp.transpose(w1_oihw, (0, 2, 3, 1)).reshape(Cout, 9 * Cin).astype(jnp.float32)
    w2m = jnp.transpose(w2_oihw, (0, 2, 3, 1)).reshape(Cout, 9 * Cout).astype(jnp.float32)
    bnp = jnp.stack([g1, b1, g2, b2], axis=1).astype(jnp.float32)        # [Cout, 4]

    # interior mask over the flat padded axis (1 at valid Hp x Wp positions, 0 at ring / lane pad)
    ql = jnp.arange(Qp)
    yq, xq = ql // Wq, ql % Wq
    valid = (ql < Q) & (yq >= 1) & (yq <= Hp) & (xq >= 1) & (xq <= Wp)
    mask = jnp.tile(valid.astype(jnp.float32), N).reshape(1, NQ)         # [1, NQ]

    # ---------------- fused kernel ----------------
    def kernel(xr_ref, w1_ref, w2_ref, bn_ref, mask_ref, o_ref):
        m = mask_ref[...]                                                # [1, NQ]
        mb = m > 0.0

        # MaxPool2d(2,2): 3 vector maxes over the window axis (ring / lane-pad comes out as 0)
        pooled = jnp.maximum(jnp.maximum(xr_ref[0], xr_ref[1]),
                             jnp.maximum(xr_ref[2], xr_ref[3]))          # [Cin, NQ]

        def guard(a, c):
            z = jnp.zeros((c, G), jnp.float32)
            return jnp.concatenate([z, a, z], axis=1)                    # aligned 128-lane pieces

        def conv3x3(src_g, w_mat, cin):
            # src_g: [cin, G+NQ+G] guarded flat activation (zero ring supplies the conv padding)
            # w_mat: [Cout, 9*cin]; 9 lane-shifted views x VPU broadcast-FMA accumulation
            acc = jnp.zeros((Cout, NQ), jnp.float32)
            for t, off in enumerate(offs):
                xt = src_g[:, G + off: G + off + NQ]                     # shifted tap view
                for ci in range(cin):
                    wc = w_mat[:, t * cin + ci: t * cin + ci + 1]        # [Cout, 1]
                    acc = acc + wc * xt[ci: ci + 1, :]                   # [Cout,1] * [1,NQ]
            return acc

        def bn_relu(acc, gamma, beta):
            # PyTorch train-mode BatchNorm2d over the M valid positions (two-pass), then ReLU.
            accm = jnp.where(mb, acc, 0.0)
            mu = jnp.sum(accm, axis=1, keepdims=True) * inv_m            # [Cout, 1]
            cen = jnp.where(mb, acc - mu, 0.0)
            var = jnp.sum(cen * cen, axis=1, keepdims=True) * inv_m
            scale = gamma * jax.lax.rsqrt(var + BN_EPS)
            # masking also re-zeroes the padding ring so this can feed the next conv directly
            return jnp.maximum(cen * scale + beta, 0.0) * m              # [Cout, NQ]

        w1 = w1_ref[...]
        w2 = w2_ref[...]
        bn = bn_ref[...]

        c1 = conv3x3(guard(pooled, Cin), w1, Cin)
        y1 = bn_relu(c1, bn[:, 0:1], bn[:, 1:2])
        c2 = conv3x3(guard(y1, Cout), w2, Cout)
        o_ref[...] = bn_relu(c2, bn[:, 2:3], bn[:, 3:4])                 # dense [Cout, NQ] store

    def full_spec(shape):
        return pl.BlockSpec(shape, lambda *_: (0,) * len(shape))

    out_flat = pl.pallas_call(
        kernel,
        out_shape=jax.ShapeDtypeStruct((Cout, NQ), jnp.float32),
        grid_spec=pltpu.PrefetchScalarGridSpec(
            num_scalar_prefetch=0,
            grid=(1,),
            in_specs=[full_spec(xr.shape), full_spec(w1m.shape), full_spec(w2m.shape),
                      full_spec(bnp.shape), full_spec(mask.shape)],
            out_specs=full_spec((Cout, NQ))),
        compiler_params=pltpu.CompilerParams(
            dimension_semantics=("arbitrary",),
            vmem_limit_bytes=16 * 1024 * 1024),
    )(xr, w1m, w2m, bnp, mask)

    # back to NCHW: drop lane padding, drop the 1-pixel ring, transpose
    out = out_flat.reshape(Cout, N, Qp)[:, :, :Q].reshape(Cout, N, Hq, Wq)
    out = out[:, :, 1:1 + Hp, 1:1 + Wp]
    return jnp.transpose(out, (1, 0, 2, 3))


def _reference_forward(x, w1, g1, b1, w2, g2, b2):
    # Pure-JAX reference matching PyTorch DownSampling.forward (train-mode BN).
    N, C, H, W = x.shape
    xp = x.reshape(N, C, H // 2, 2, W // 2, 2).max(axis=(3, 5))

    def conv_bn_relu(h, w, g, b):
        y = jax.lax.conv_general_dilated(
            h, w, window_strides=(1, 1), padding='SAME',
            dimension_numbers=('NCHW', 'OIHW', 'NCHW'),
            precision=jax.lax.Precision.HIGHEST)
        mu = y.mean(axis=(0, 2, 3), keepdims=True)
        var = ((y - mu) ** 2).mean(axis=(0, 2, 3), keepdims=True)
        yn = (y - mu) / jnp.sqrt(var + BN_EPS) * g.reshape(1, -1, 1, 1) + b.reshape(1, -1, 1, 1)
        return jnp.maximum(yn, 0.0)

    h = conv_bn_relu(xp, w1, g1, b1)
    return conv_bn_relu(h, w2, g2, b2)


if __name__ == "__main__":
    key = jax.random.PRNGKey(0)
    kx, kw1, kw2, kg1, kb1, kg2, kb2 = jax.random.split(key, 7)
    N, Cin, Cout, H, W = 2, 4, 8, 16, 16

    # deterministic synthetic parameters (shapes from DownSampling(4, 8).__init__)
    x = jax.random.normal(kx, (N, Cin, H, W), jnp.float32)
    w1 = jax.random.normal(kw1, (Cout, Cin, 3, 3), jnp.float32) * 0.3   # Conv2d(4->8) OIHW
    w2 = jax.random.normal(kw2, (Cout, Cout, 3, 3), jnp.float32) * 0.2  # Conv2d(8->8) OIHW
    g1 = 1.0 + 0.1 * jax.random.normal(kg1, (Cout,), jnp.float32)       # BN1 weight
    b1 = 0.1 * jax.random.normal(kb1, (Cout,), jnp.float32)             # BN1 bias
    g2 = 1.0 + 0.1 * jax.random.normal(kg2, (Cout,), jnp.float32)       # BN2 weight
    b2 = 0.1 * jax.random.normal(kb2, (Cout,), jnp.float32)             # BN2 bias

    out = downsampling_forward(x, w1, g1, b1, w2, g2, b2)
    out = jax.block_until_ready(out)

    ref = _reference_forward(x, w1, g1, b1, w2, g2, b2)
    assert out.shape == ref.shape == (N, Cout, H // 2, W // 2)
    max_err = float(jnp.max(jnp.abs(out - ref)))
    if not bool(jnp.allclose(out, ref, atol=1e-3, rtol=1e-3)):
        raise AssertionError(f"kernel/reference mismatch, max abs err = {max_err}")
    print("KERNEL_OK")
</pallas_src>

<mosaic_0001>
module attributes {stable_mosaic.version = 11 : i64} {
  func.func @kernel(%arg0: i32, %arg1: memref<4x4x256xf32, #tpu.memory_space<vmem>>, %arg2: memref<8x36xf32, #tpu.memory_space<vmem>>, %arg3: memref<8x72xf32, #tpu.memory_space<vmem>>, %arg4: memref<8x4xf32, #tpu.memory_space<vmem>>, %arg5: memref<1x256xf32, #tpu.memory_space<vmem>>, %arg6: memref<8x256xf32, #tpu.memory_space<vmem>>) attributes {dimension_semantics = [#tpu.dimension_semantics<arbitrary>], iteration_bounds = array<i64: 1>, scalar_prefetch = 0 : i64, scratch_operands = 0 : i64, tpu.core_type = #tpu.core_type<tc>, window_params = [{pipeline_mode = #tpu.pipeline_mode<synchronous>, transform_indices = @transform_0, window_bounds = array<i64: 4, 4, 256>}, {pipeline_mode = #tpu.pipeline_mode<synchronous>, transform_indices = @transform_1, window_bounds = array<i64: 8, 36>}, {pipeline_mode = #tpu.pipeline_mode<synchronous>, transform_indices = @transform_2, window_bounds = array<i64: 8, 72>}, {pipeline_mode = #tpu.pipeline_mode<synchronous>, transform_indices = @transform_3, window_bounds = array<i64: 8, 4>}, {pipeline_mode = #tpu.pipeline_mode<synchronous>, transform_indices = @transform_4, window_bounds = array<i64: 1, 256>}, {pipeline_mode = #tpu.pipeline_mode<synchronous>, transform_indices = @transform_5, window_bounds = array<i64: 8, 256>}]} {
    %c0 = arith.constant 0 : index
    %c0_0 = arith.constant 0 : index
    %0 = vector.load %arg5[%c0, %c0_0] : memref<1x256xf32, #tpu.memory_space<vmem>>, vector<1x256xf32>
    %cst = arith.constant 0.000000e+00 : f32
    %1 = vector.broadcast %cst : f32 to vector<1x256xf32>
    %2 = arith.cmpf ogt, %0, %1 : vector<1x256xf32>
    %c0_1 = arith.constant 0 : index
    %c0_2 = arith.constant 0 : index
    %c0_3 = arith.constant 0 : index
    %3 = vector.load %arg1[%c0_1, %c0_2, %c0_3] : memref<4x4x256xf32, #tpu.memory_space<vmem>>, vector<1x4x256xf32>
    %4 = vector.shape_cast %3 : vector<1x4x256xf32> to vector<4x256xf32>
    %c1 = arith.constant 1 : index
    %c0_4 = arith.constant 0 : index
    %c0_5 = arith.constant 0 : index
    %5 = vector.load %arg1[%c1, %c0_4, %c0_5] : memref<4x4x256xf32, #tpu.memory_space<vmem>>, vector<1x4x256xf32>
    %6 = vector.shape_cast %5 : vector<1x4x256xf32> to vector<4x256xf32>
    %7 = arith.maximumf %4, %6 : vector<4x256xf32>
    %c2 = arith.constant 2 : index
    %c0_6 = arith.constant 0 : index
    %c0_7 = arith.constant 0 : index
    %8 = vector.load %arg1[%c2, %c0_6, %c0_7] : memref<4x4x256xf32, #tpu.memory_space<vmem>>, vector<1x4x256xf32>
    %9 = vector.shape_cast %8 : vector<1x4x256xf32> to vector<4x256xf32>
    %c3 = arith.constant 3 : index
    %c0_8 = arith.constant 0 : index
    %c0_9 = arith.constant 0 : index
    %10 = vector.load %arg1[%c3, %c0_8, %c0_9] : memref<4x4x256xf32, #tpu.memory_space<vmem>>, vector<1x4x256xf32>
    %11 = vector.shape_cast %10 : vector<1x4x256xf32> to vector<4x256xf32>
    %12 = arith.maximumf %9, %11 : vector<4x256xf32>
    %13 = arith.maximumf %7, %12 : vector<4x256xf32>
    %c0_10 = arith.constant 0 : index
    %c0_11 = arith.constant 0 : index
    %14 = vector.load %arg2[%c0_10, %c0_11] : memref<8x36xf32, #tpu.memory_space<vmem>>, vector<8x36xf32>
    %c0_12 = arith.constant 0 : index
    %c0_13 = arith.constant 0 : index
    %15 = vector.load %arg3[%c0_12, %c0_13] : memref<8x72xf32, #tpu.memory_space<vmem>>, vector<8x72xf32>
    %c0_14 = arith.constant 0 : index
    %c0_15 = arith.constant 0 : index
    %16 = vector.load %arg4[%c0_14, %c0_15] : memref<8x4xf32, #tpu.memory_space<vmem>>, vector<8x4xf32>
    %cst_16 = arith.constant 0.000000e+00 : f32
    %17 = vector.broadcast %cst_16 : f32 to vector<4x128xf32>
    %18 = tpu.concatenate %17, %13, %17 in 1 : vector<4x128xf32>, vector<4x256xf32>, vector<4x128xf32> -> vector<4x512xf32>
    %cst_17 = arith.constant 0.000000e+00 : f32
    %19 = vector.broadcast %cst_17 : f32 to vector<8x256xf32>
    %20 = vector.extract_strided_slice %18 {offsets = [0, 117], sizes = [4, 256], strides = [1, 1]} : vector<4x512xf32> to vector<4x256xf32>
    %21 = vector.extract_strided_slice %14 {offsets = [0, 0], sizes = [8, 1], strides = [1, 1]} : vector<8x36xf32> to vector<8x1xf32>
    %22 = vector.extract_strided_slice %20 {offsets = [0, 0], sizes = [1, 256], strides = [1, 1]} : vector<4x256xf32> to vector<1x256xf32>
    %23 = vector.broadcast %21 : vector<8x1xf32> to vector<8x256xf32>
    %24 = vector.broadcast %22 : vector<1x256xf32> to vector<8x256xf32>
    %25 = arith.mulf %23, %24 : vector<8x256xf32>
    %26 = arith.addf %19, %25 : vector<8x256xf32>
    %27 = vector.extract_strided_slice %14 {offsets = [0, 1], sizes = [8, 1], strides = [1, 1]} : vector<8x36xf32> to vector<8x1xf32>
    %28 = vector.extract_strided_slice %20 {offsets = [1, 0], sizes = [1, 256], strides = [1, 1]} : vector<4x256xf32> to vector<1x256xf32>
    %29 = vector.broadcast %27 : vector<8x1xf32> to vector<8x256xf32>
    %30 = vector.broadcast %28 : vector<1x256xf32> to vector<8x256xf32>
    %31 = arith.mulf %29, %30 : vector<8x256xf32>
    %32 = arith.addf %26, %31 : vector<8x256xf32>
    %33 = vector.extract_strided_slice %14 {offsets = [0, 2], sizes = [8, 1], strides = [1, 1]} : vector<8x36xf32> to vector<8x1xf32>
    %34 = vector.extract_strided_slice %20 {offsets = [2, 0], sizes = [1, 256], strides = [1, 1]} : vector<4x256xf32> to vector<1x256xf32>
    %35 = vector.broadcast %33 : vector<8x1xf32> to vector<8x256xf32>
    %36 = vector.broadcast %34 : vector<1x256xf32> to vector<8x256xf32>
    %37 = arith.mulf %35, %36 : vector<8x256xf32>
    %38 = arith.addf %32, %37 : vector<8x256xf32>
    %39 = vector.extract_strided_slice %14 {offsets = [0, 3], sizes = [8, 1], strides = [1, 1]} : vector<8x36xf32> to vector<8x1xf32>
    %40 = vector.extract_strided_slice %20 {offsets = [3, 0], sizes = [1, 256], strides = [1, 1]} : vector<4x256xf32> to vector<1x256xf32>
    %41 = vector.broadcast %39 : vector<8x1xf32> to vector<8x256xf32>
    %42 = vector.broadcast %40 : vector<1x256xf32> to vector<8x256xf32>
    %43 = arith.mulf %41, %42 : vector<8x256xf32>
    %44 = arith.addf %38, %43 : vector<8x256xf32>
    %45 = vector.extract_strided_slice %18 {offsets = [0, 118], sizes = [4, 256], strides = [1, 1]} : vector<4x512xf32> to vector<4x256xf32>
    %46 = vector.extract_strided_slice %14 {offsets = [0, 4], sizes = [8, 1], strides = [1, 1]} : vector<8x36xf32> to vector<8x1xf32>
    %47 = vector.extract_strided_slice %45 {offsets = [0, 0], sizes = [1, 256], strides = [1, 1]} : vector<4x256xf32> to vector<1x256xf32>
    %48 = vector.broadcast %46 : vector<8x1xf32> to vector<8x256xf32>
    %49 = vector.broadcast %47 : vector<1x256xf32> to vector<8x256xf32>
    %50 = arith.mulf %48, %49 : vector<8x256xf32>
    %51 = arith.addf %44, %50 : vector<8x256xf32>
    %52 = vector.extract_strided_slice %14 {offsets = [0, 5], sizes = [8, 1], strides = [1, 1]} : vector<8x36xf32> to vector<8x1xf32>
    %53 = vector.extract_strided_slice %45 {offsets = [1, 0], sizes = [1, 256], strides = [1, 1]} : vector<4x256xf32> to vector<1x256xf32>
    %54 = vector.broadcast %52 : vector<8x1xf32> to vector<8x256xf32>
    %55 = vector.broadcast %53 : vector<1x256xf32> to vector<8x256xf32>
    %56 = arith.mulf %54, %55 : vector<8x256xf32>
    %57 = arith.addf %51, %56 : vector<8x256xf32>
    %58 = vector.extract_strided_slice %14 {offsets = [0, 6], sizes = [8, 1], strides = [1, 1]} : vector<8x36xf32> to vector<8x1xf32>
    %59 = vector.extract_strided_slice %45 {offsets = [2, 0], sizes = [1, 256], strides = [1, 1]} : vector<4x256xf32> to vector<1x256xf32>
    %60 = vector.broadcast %58 : vector<8x1xf32> to vector<8x256xf32>
    %61 = vector.broadcast %59 : vector<1x256xf32> to vector<8x256xf32>
    %62 = arith.mulf %60, %61 : vector<8x256xf32>
    %63 = arith.addf %57, %62 : vector<8x256xf32>
    %64 = vector.extract_strided_slice %14 {offsets = [0, 7], sizes = [8, 1], strides = [1, 1]} : vector<8x36xf32> to vector<8x1xf32>
    %65 = vector.extract_strided_slice %45 {offsets = [3, 0], sizes = [1, 256], strides = [1, 1]} : vector<4x256xf32> to vector<1x256xf32>
    %66 = vector.broadcast %64 : vector<8x1xf32> to vector<8x256xf32>
    %67 = vector.broadcast %65 : vector<1x256xf32> to vector<8x256xf32>
    %68 = arith.mulf %66, %67 : vector<8x256xf32>
    %69 = arith.addf %63, %68 : vector<8x256xf32>
    %70 = vector.extract_strided_slice %18 {offsets = [0, 119], sizes = [4, 256], strides = [1, 1]} : vector<4x512xf32> to vector<4x256xf32>
    %71 = vector.extract_strided_slice %14 {offsets = [0, 8], sizes = [8, 1], strides = [1, 1]} : vector<8x36xf32> to vector<8x1xf32>
    %72 = vector.extract_strided_slice %70 {offsets = [0, 0], sizes = [1, 256], strides = [1, 1]} : vector<4x256xf32> to vector<1x256xf32>
    %73 = vector.broadcast %71 : vector<8x1xf32> to vector<8x256xf32>
    %74 = vector.broadcast %72 : vector<1x256xf32> to vector<8x256xf32>
    %75 = arith.mulf %73, %74 : vector<8x256xf32>
    %76 = arith.addf %69, %75 : vector<8x256xf32>
    %77 = vector.extract_strided_slice %14 {offsets = [0, 9], sizes = [8, 1], strides = [1, 1]} : vector<8x36xf32> to vector<8x1xf32>
    %78 = vector.extract_strided_slice %70 {offsets = [1, 0], sizes = [1, 256], strides = [1, 1]} : vector<4x256xf32> to vector<1x256xf32>
    %79 = vector.broadcast %77 : vector<8x1xf32> to vector<8x256xf32>
    %80 = vector.broadcast %78 : vector<1x256xf32> to vector<8x256xf32>
    %81 = arith.mulf %79, %80 : vector<8x256xf32>
    %82 = arith.addf %76, %81 : vector<8x256xf32>
    %83 = vector.extract_strided_slice %14 {offsets = [0, 10], sizes = [8, 1], strides = [1, 1]} : vector<8x36xf32> to vector<8x1xf32>
    %84 = vector.extract_strided_slice %70 {offsets = [2, 0], sizes = [1, 256], strides = [1, 1]} : vector<4x256xf32> to vector<1x256xf32>
    %85 = vector.broadcast %83 : vector<8x1xf32> to vector<8x256xf32>
    %86 = vector.broadcast %84 : vector<1x256xf32> to vector<8x256xf32>
    %87 = arith.mulf %85, %86 : vector<8x256xf32>
    %88 = arith.addf %82, %87 : vector<8x256xf32>
    %89 = vector.extract_strided_slice %14 {offsets = [0, 11], sizes = [8, 1], strides = [1, 1]} : vector<8x36xf32> to vector<8x1xf32>
    %90 = vector.extract_strided_slice %70 {offsets = [3, 0], sizes = [1, 256], strides = [1, 1]} : vector<4x256xf32> to vector<1x256xf32>
    %91 = vector.broadcast %89 : vector<8x1xf32> to vector<8x256xf32>
    %92 = vector.broadcast %90 : vector<1x256xf32> to vector<8x256xf32>
    %93 = arith.mulf %91, %92 : vector<8x256xf32>
    %94 = arith.addf %88, %93 : vector<8x256xf32>
    %95 = vector.extract_strided_slice %18 {offsets = [0, 127], sizes = [4, 256], strides = [1, 1]} : vector<4x512xf32> to vector<4x256xf32>
    %96 = vector.extract_strided_slice %14 {offsets = [0, 12], sizes = [8, 1], strides = [1, 1]} : vector<8x36xf32> to vector<8x1xf32>
    %97 = vector.extract_strided_slice %95 {offsets = [0, 0], sizes = [1, 256], strides = [1, 1]} : vector<4x256xf32> to vector<1x256xf32>
    %98 = vector.broadcast %96 : vector<8x1xf32> to vector<8x256xf32>
    %99 = vector.broadcast %97 : vector<1x256xf32> to vector<8x256xf32>
    %100 = arith.mulf %98, %99 : vector<8x256xf32>
    %101 = arith.addf %94, %100 : vector<8x256xf32>
    %102 = vector.extract_strided_slice %14 {offsets = [0, 13], sizes = [8, 1], strides = [1, 1]} : vector<8x36xf32> to vector<8x1xf32>
    %103 = vector.extract_strided_slice %95 {offsets = [1, 0], sizes = [1, 256], strides = [1, 1]} : vector<4x256xf32> to vector<1x256xf32>
    %104 = vector.broadcast %102 : vector<8x1xf32> to vector<8x256xf32>
    %105 = vector.broadcast %103 : vector<1x256xf32> to vector<8x256xf32>
    %106 = arith.mulf %104, %105 : vector<8x256xf32>
    %107 = arith.addf %101, %106 : vector<8x256xf32>
    %108 = vector.extract_strided_slice %14 {offsets = [0, 14], sizes = [8, 1], strides = [1, 1]} : vector<8x36xf32> to vector<8x1xf32>
    %109 = vector.extract_strided_slice %95 {offsets = [2, 0], sizes = [1, 256], strides = [1, 1]} : vector<4x256xf32> to vector<1x256xf32>
    %110 = vector.broadcast %108 : vector<8x1xf32> to vector<8x256xf32>
    %111 = vector.broadcast %109 : vector<1x256xf32> to vector<8x256xf32>
    %112 = arith.mulf %110, %111 : vector<8x256xf32>
    %113 = arith.addf %107, %112 : vector<8x256xf32>
    %114 = vector.extract_strided_slice %14 {offsets = [0, 15], sizes = [8, 1], strides = [1, 1]} : vector<8x36xf32> to vector<8x1xf32>
    %115 = vector.extract_strided_slice %95 {offsets = [3, 0], sizes = [1, 256], strides = [1, 1]} : vector<4x256xf32> to vector<1x256xf32>
    %116 = vector.broadcast %114 : vector<8x1xf32> to vector<8x256xf32>
    %117 = vector.broadcast %115 : vector<1x256xf32> to vector<8x256xf32>
    %118 = arith.mulf %116, %117 : vector<8x256xf32>
    %119 = arith.addf %113, %118 : vector<8x256xf32>
    %120 = vector.extract_strided_slice %18 {offsets = [0, 128], sizes = [4, 256], strides = [1, 1]} : vector<4x512xf32> to vector<4x256xf32>
    %121 = vector.extract_strided_slice %14 {offsets = [0, 16], sizes = [8, 1], strides = [1, 1]} : vector<8x36xf32> to vector<8x1xf32>
    %122 = vector.extract_strided_slice %120 {offsets = [0, 0], sizes = [1, 256], strides = [1, 1]} : vector<4x256xf32> to vector<1x256xf32>
    %123 = vector.broadcast %121 : vector<8x1xf32> to vector<8x256xf32>
    %124 = vector.broadcast %122 : vector<1x256xf32> to vector<8x256xf32>
    %125 = arith.mulf %123, %124 : vector<8x256xf32>
    %126 = arith.addf %119, %125 : vector<8x256xf32>
    %127 = vector.extract_strided_slice %14 {offsets = [0, 17], sizes = [8, 1], strides = [1, 1]} : vector<8x36xf32> to vector<8x1xf32>
    %128 = vector.extract_strided_slice %120 {offsets = [1, 0], sizes = [1, 256], strides = [1, 1]} : vector<4x256xf32> to vector<1x256xf32>
    %129 = vector.broadcast %127 : vector<8x1xf32> to vector<8x256xf32>
    %130 = vector.broadcast %128 : vector<1x256xf32> to vector<8x256xf32>
    %131 = arith.mulf %129, %130 : vector<8x256xf32>
    %132 = arith.addf %126, %131 : vector<8x256xf32>
    %133 = vector.extract_strided_slice %14 {offsets = [0, 18], sizes = [8, 1], strides = [1, 1]} : vector<8x36xf32> to vector<8x1xf32>
    %134 = vector.extract_strided_slice %120 {offsets = [2, 0], sizes = [1, 256], strides = [1, 1]} : vector<4x256xf32> to vector<1x256xf32>
    %135 = vector.broadcast %133 : vector<8x1xf32> to vector<8x256xf32>
    %136 = vector.broadcast %134 : vector<1x256xf32> to vector<8x256xf32>
    %137 = arith.mulf %135, %136 : vector<8x256xf32>
    %138 = arith.addf %132, %137 : vector<8x256xf32>
    %139 = vector.extract_strided_slice %14 {offsets = [0, 19], sizes = [8, 1], strides = [1, 1]} : vector<8x36xf32> to vector<8x1xf32>
    %140 = vector.extract_strided_slice %120 {offsets = [3, 0], sizes = [1, 256], strides = [1, 1]} : vector<4x256xf32> to vector<1x256xf32>
    %141 = vector.broadcast %139 : vector<8x1xf32> to vector<8x256xf32>
    %142 = vector.broadcast %140 : vector<1x256xf32> to vector<8x256xf32>
    %143 = arith.mulf %141, %142 : vector<8x256xf32>
    %144 = arith.addf %138, %143 : vector<8x256xf32>
    %145 = vector.extract_strided_slice %18 {offsets = [0, 129], sizes = [4, 256], strides = [1, 1]} : vector<4x512xf32> to vector<4x256xf32>
    %146 = vector.extract_strided_slice %14 {offsets = [0, 20], sizes = [8, 1], strides = [1, 1]} : vector<8x36xf32> to vector<8x1xf32>
    %147 = vector.extract_strided_slice %145 {offsets = [0, 0], sizes = [1, 256], strides = [1, 1]} : vector<4x256xf32> to vector<1x256xf32>
    %148 = vector.broadcast %146 : vector<8x1xf32> to vector<8x256xf32>
    %149 = vector.broadcast %147 : vector<1x256xf32> to vector<8x256xf32>
    %150 = arith.mulf %148, %149 : vector<8x256xf32>
    %151 = arith.addf %144, %150 : vector<8x256xf32>
    %152 = vector.extract_strided_slice %14 {offsets = [0, 21], sizes = [8, 1], strides = [1, 1]} : vector<8x36xf32> to vector<8x1xf32>
    %153 = vector.extract_strided_slice %145 {offsets = [1, 0], sizes = [1, 256], strides = [1, 1]} : vector<4x256xf32> to vector<1x256xf32>
    %154 = vector.broadcast %152 : vector<8x1xf32> to vector<8x256xf32>
    %155 = vector.broadcast %153 : vector<1x256xf32> to vector<8x256xf32>
    %156 = arith.mulf %154, %155 : vector<8x256xf32>
    %157 = arith.addf %151, %156 : vector<8x256xf32>
    %158 = vector.extract_strided_slice %14 {offsets = [0, 22], sizes = [8, 1], strides = [1, 1]} : vector<8x36xf32> to vector<8x1xf32>
    %159 = vector.extract_strided_slice %145 {offsets = [2, 0], sizes = [1, 256], strides = [1, 1]} : vector<4x256xf32> to vector<1x256xf32>
    %160 = vector.broadcast %158 : vector<8x1xf32> to vector<8x256xf32>
    %161 = vector.broadcast %159 : vector<1x256xf32> to vector<8x256xf32>
    %162 = arith.mulf %160, %161 : vector<8x256xf32>
    %163 = arith.addf %157, %162 : vector<8x256xf32>
    %164 = vector.extract_strided_slice %14 {offsets = [0, 23], sizes = [8, 1], strides = [1, 1]} : vector<8x36xf32> to vector<8x1xf32>
    %165 = vector.extract_strided_slice %145 {offsets = [3, 0], sizes = [1, 256], strides = [1, 1]} : vector<4x256xf32> to vector<1x256xf32>
    %166 = vector.broadcast %164 : vector<8x1xf32> to vector<8x256xf32>
    %167 = vector.broadcast %165 : vector<1x256xf32> to vector<8x256xf32>
    %168 = arith.mulf %166, %167 : vector<8x256xf32>
    %169 = arith.addf %163, %168 : vector<8x256xf32>
    %170 = vector.extract_strided_slice %18 {offsets = [0, 137], sizes = [4, 256], strides = [1, 1]} : vector<4x512xf32> to vector<4x256xf32>
    %171 = vector.extract_strided_slice %14 {offsets = [0, 24], sizes = [8, 1], strides = [1, 1]} : vector<8x36xf32> to vector<8x1xf32>
    %172 = vector.extract_strided_slice %170 {offsets = [0, 0], sizes = [1, 256], strides = [1, 1]} : vector<4x256xf32> to vector<1x256xf32>
    %173 = vector.broadcast %171 : vector<8x1xf32> to vector<8x256xf32>
    %174 = vector.broadcast %172 : vector<1x256xf32> to vector<8x256xf32>
    %175 = arith.mulf %173, %174 : vector<8x256xf32>
    %176 = arith.addf %169, %175 : vector<8x256xf32>
    %177 = vector.extract_strided_slice %14 {offsets = [0, 25], sizes = [8, 1], strides = [1, 1]} : vector<8x36xf32> to vector<8x1xf32>
    %178 = vector.extract_strided_slice %170 {offsets = [1, 0], sizes = [1, 256], strides = [1, 1]} : vector<4x256xf32> to vector<1x256xf32>
    %179 = vector.broadcast %177 : vector<8x1xf32> to vector<8x256xf32>
    %180 = vector.broadcast %178 : vector<1x256xf32> to vector<8x256xf32>
    %181 = arith.mulf %179, %180 : vector<8x256xf32>
    %182 = arith.addf %176, %181 : vector<8x256xf32>
    %183 = vector.extract_strided_slice %14 {offsets = [0, 26], sizes = [8, 1], strides = [1, 1]} : vector<8x36xf32> to vector<8x1xf32>
    %184 = vector.extract_strided_slice %170 {offsets = [2, 0], sizes = [1, 256], strides = [1, 1]} : vector<4x256xf32> to vector<1x256xf32>
    %185 = vector.broadcast %183 : vector<8x1xf32> to vector<8x256xf32>
    %186 = vector.broadcast %184 : vector<1x256xf32> to vector<8x256xf32>
    %187 = arith.mulf %185, %186 : vector<8x256xf32>
    %188 = arith.addf %182, %187 : vector<8x256xf32>
    %189 = vector.extract_strided_slice %14 {offsets = [0, 27], sizes = [8, 1], strides = [1, 1]} : vector<8x36xf32> to vector<8x1xf32>
    %190 = vector.extract_strided_slice %170 {offsets = [3, 0], sizes = [1, 256], strides = [1, 1]} : vector<4x256xf32> to vector<1x256xf32>
    %191 = vector.broadcast %189 : vector<8x1xf32> to vector<8x256xf32>
    %192 = vector.broadcast %190 : vector<1x256xf32> to vector<8x256xf32>
    %193 = arith.mulf %191, %192 : vector<8x256xf32>
    %194 = arith.addf %188, %193 : vector<8x256xf32>
    %195 = vector.extract_strided_slice %18 {offsets = [0, 138], sizes = [4, 256], strides = [1, 1]} : vector<4x512xf32> to vector<4x256xf32>
    %196 = vector.extract_strided_slice %14 {offsets = [0, 28], sizes = [8, 1], strides = [1, 1]} : vector<8x36xf32> to vector<8x1xf32>
    %197 = vector.extract_strided_slice %195 {offsets = [0, 0], sizes = [1, 256], strides = [1, 1]} : vector<4x256xf32> to vector<1x256xf32>
    %198 = vector.broadcast %196 : vector<8x1xf32> to vector<8x256xf32>
    %199 = vector.broadcast %197 : vector<1x256xf32> to vector<8x256xf32>
    %200 = arith.mulf %198, %199 : vector<8x256xf32>
    %201 = arith.addf %194, %200 : vector<8x256xf32>
    %202 = vector.extract_strided_slice %14 {offsets = [0, 29], sizes = [8, 1], strides = [1, 1]} : vector<8x36xf32> to vector<8x1xf32>
    %203 = vector.extract_strided_slice %195 {offsets = [1, 0], sizes = [1, 256], strides = [1, 1]} : vector<4x256xf32> to vector<1x256xf32>
    %204 = vector.broadcast %202 : vector<8x1xf32> to vector<8x256xf32>
    %205 = vector.broadcast %203 : vector<1x256xf32> to vector<8x256xf32>
    %206 = arith.mulf %204, %205 : vector<8x256xf32>
    %207 = arith.addf %201, %206 : vector<8x256xf32>
    %208 = vector.extract_strided_slice %14 {offsets = [0, 30], sizes = [8, 1], strides = [1, 1]} : vector<8x36xf32> to vector<8x1xf32>
    %209 = vector.extract_strided_slice %195 {offsets = [2, 0], sizes = [1, 256], strides = [1, 1]} : vector<4x256xf32> to vector<1x256xf32>
    %210 = vector.broadcast %208 : vector<8x1xf32> to vector<8x256xf32>
    %211 = vector.broadcast %209 : vector<1x256xf32> to vector<8x256xf32>
    %212 = arith.mulf %210, %211 : vector<8x256xf32>
    %213 = arith.addf %207, %212 : vector<8x256xf32>
    %214 = vector.extract_strided_slice %14 {offsets = [0, 31], sizes = [8, 1], strides = [1, 1]} : vector<8x36xf32> to vector<8x1xf32>
    %215 = vector.extract_strided_slice %195 {offsets = [3, 0], sizes = [1, 256], strides = [1, 1]} : vector<4x256xf32> to vector<1x256xf32>
    %216 = vector.broadcast %214 : vector<8x1xf32> to vector<8x256xf32>
    %217 = vector.broadcast %215 : vector<1x256xf32> to vector<8x256xf32>
    %218 = arith.mulf %216, %217 : vector<8x256xf32>
    %219 = arith.addf %213, %218 : vector<8x256xf32>
    %220 = vector.extract_strided_slice %18 {offsets = [0, 139], sizes = [4, 256], strides = [1, 1]} : vector<4x512xf32> to vector<4x256xf32>
    %221 = vector.extract_strided_slice %14 {offsets = [0, 32], sizes = [8, 1], strides = [1, 1]} : vector<8x36xf32> to vector<8x1xf32>
    %222 = vector.extract_strided_slice %220 {offsets = [0, 0], sizes = [1, 256], strides = [1, 1]} : vector<4x256xf32> to vector<1x256xf32>
    %223 = vector.broadcast %221 : vector<8x1xf32> to vector<8x256xf32>
    %224 = vector.broadcast %222 : vector<1x256xf32> to vector<8x256xf32>
    %225 = arith.mulf %223, %224 : vector<8x256xf32>
    %226 = arith.addf %219, %225 : vector<8x256xf32>
    %227 = vector.extract_strided_slice %14 {offsets = [0, 33], sizes = [8, 1], strides = [1, 1]} : vector<8x36xf32> to vector<8x1xf32>
    %228 = vector.extract_strided_slice %220 {offsets = [1, 0], sizes = [1, 256], strides = [1, 1]} : vector<4x256xf32> to vector<1x256xf32>
    %229 = vector.broadcast %227 : vector<8x1xf32> to vector<8x256xf32>
    %230 = vector.broadcast %228 : vector<1x256xf32> to vector<8x256xf32>
    %231 = arith.mulf %229, %230 : vector<8x256xf32>
    %232 = arith.addf %226, %231 : vector<8x256xf32>
    %233 = vector.extract_strided_slice %14 {offsets = [0, 34], sizes = [8, 1], strides = [1, 1]} : vector<8x36xf32> to vector<8x1xf32>
    %234 = vector.extract_strided_slice %220 {offsets = [2, 0], sizes = [1, 256], strides = [1, 1]} : vector<4x256xf32> to vector<1x256xf32>
    %235 = vector.broadcast %233 : vector<8x1xf32> to vector<8x256xf32>
    %236 = vector.broadcast %234 : vector<1x256xf32> to vector<8x256xf32>
    %237 = arith.mulf %235, %236 : vector<8x256xf32>
    %238 = arith.addf %232, %237 : vector<8x256xf32>
    %239 = vector.extract_strided_slice %14 {offsets = [0, 35], sizes = [8, 1], strides = [1, 1]} : vector<8x36xf32> to vector<8x1xf32>
    %240 = vector.extract_strided_slice %220 {offsets = [3, 0], sizes = [1, 256], strides = [1, 1]} : vector<4x256xf32> to vector<1x256xf32>
    %241 = vector.broadcast %239 : vector<8x1xf32> to vector<8x256xf32>
    %242 = vector.broadcast %240 : vector<1x256xf32> to vector<8x256xf32>
    %243 = arith.mulf %241, %242 : vector<8x256xf32>
    %244 = arith.addf %238, %243 : vector<8x256xf32>
    %245 = vector.extract_strided_slice %16 {offsets = [0, 0], sizes = [8, 1], strides = [1, 1]} : vector<8x4xf32> to vector<8x1xf32>
    %246 = vector.extract_strided_slice %16 {offsets = [0, 1], sizes = [8, 1], strides = [1, 1]} : vector<8x4xf32> to vector<8x1xf32>
    %cst_18 = arith.constant 0.000000e+00 : f32
    %247 = vector.shape_cast %2 : vector<1x256xi1> to vector<1x256xi1>
    %248 = vector.broadcast %247 : vector<1x256xi1> to vector<8x256xi1>
    %249 = vector.broadcast %cst_18 : f32 to vector<8x256xf32>
    %250 = arith.select %248, %244, %249 : vector<8x256xi1>, vector<8x256xf32>
    %cst_19 = arith.constant dense<0.000000e+00> : vector<8xf32>
    %251 = vector.multi_reduction <add>, %250, %cst_19 [1] : vector<8x256xf32> to vector<8xf32>
    %252 = vector.shape_cast %251 : vector<8xf32> to vector<8x1xf32>
    %cst_20 = arith.constant 7.812500e-03 : f32
    %253 = vector.broadcast %cst_20 : f32 to vector<8x1xf32>
    %254 = arith.mulf %252, %253 : vector<8x1xf32>
    %255 = vector.broadcast %254 : vector<8x1xf32> to vector<8x256xf32>
    %256 = arith.subf %244, %255 : vector<8x256xf32>
    %cst_21 = arith.constant 0.000000e+00 : f32
    %257 = vector.shape_cast %2 : vector<1x256xi1> to vector<1x256xi1>
    %258 = vector.broadcast %257 : vector<1x256xi1> to vector<8x256xi1>
    %259 = vector.broadcast %cst_21 : f32 to vector<8x256xf32>
    %260 = arith.select %258, %256, %259 : vector<8x256xi1>, vector<8x256xf32>
    %261 = arith.mulf %260, %260 : vector<8x256xf32>
    %cst_22 = arith.constant dense<0.000000e+00> : vector<8xf32>
    %262 = vector.multi_reduction <add>, %261, %cst_22 [1] : vector<8x256xf32> to vector<8xf32>
    %263 = vector.shape_cast %262 : vector<8xf32> to vector<8x1xf32>
    %cst_23 = arith.constant 7.812500e-03 : f32
    %264 = vector.broadcast %cst_23 : f32 to vector<8x1xf32>
    %265 = arith.mulf %263, %264 : vector<8x1xf32>
    %cst_24 = arith.constant 9.99999974E-6 : f32
    %266 = vector.broadcast %cst_24 : f32 to vector<8x1xf32>
    %267 = arith.addf %265, %266 : vector<8x1xf32>
    %268 = math.rsqrt %267 : vector<8x1xf32>
    %269 = arith.mulf %245, %268 : vector<8x1xf32>
    %270 = vector.broadcast %269 : vector<8x1xf32> to vector<8x256xf32>
    %271 = arith.mulf %260, %270 : vector<8x256xf32>
    %272 = vector.broadcast %246 : vector<8x1xf32> to vector<8x256xf32>
    %273 = arith.addf %271, %272 : vector<8x256xf32>
    %cst_25 = arith.constant 0.000000e+00 : f32
    %274 = vector.broadcast %cst_25 : f32 to vector<8x256xf32>
    %275 = arith.maximumf %273, %274 : vector<8x256xf32>
    %276 = vector.broadcast %0 : vector<1x256xf32> to vector<8x256xf32>
    %277 = arith.mulf %275, %276 : vector<8x256xf32>
    %cst_26 = arith.constant 0.000000e+00 : f32
    %278 = vector.broadcast %cst_26 : f32 to vector<8x128xf32>
    %279 = tpu.concatenate %278, %277, %278 in 1 : vector<8x128xf32>, vector<8x256xf32>, vector<8x128xf32> -> vector<8x512xf32>
    %cst_27 = arith.constant 0.000000e+00 : f32
    %280 = vector.broadcast %cst_27 : f32 to vector<8x256xf32>
    %281 = vector.extract_strided_slice %279 {offsets = [0, 117], sizes = [8, 256], strides = [1, 1]} : vector<8x512xf32> to vector<8x256xf32>
    %282 = vector.extract_strided_slice %15 {offsets = [0, 0], sizes = [8, 1], strides = [1, 1]} : vector<8x72xf32> to vector<8x1xf32>
    %283 = vector.extract_strided_slice %281 {offsets = [0, 0], sizes = [1, 256], strides = [1, 1]} : vector<8x256xf32> to vector<1x256xf32>
    %284 = vector.broadcast %282 : vector<8x1xf32> to vector<8x256xf32>
    %285 = vector.broadcast %283 : vector<1x256xf32> to vector<8x256xf32>
    %286 = arith.mulf %284, %285 : vector<8x256xf32>
    %287 = arith.addf %280, %286 : vector<8x256xf32>
    %288 = vector.extract_strided_slice %15 {offsets = [0, 1], sizes = [8, 1], strides = [1, 1]} : vector<8x72xf32> to vector<8x1xf32>
    %289 = vector.extract_strided_slice %281 {offsets = [1, 0], sizes = [1, 256], strides = [1, 1]} : vector<8x256xf32> to vector<1x256xf32>
    %290 = vector.broadcast %288 : vector<8x1xf32> to vector<8x256xf32>
    %291 = vector.broadcast %289 : vector<1x256xf32> to vector<8x256xf32>
    %292 = arith.mulf %290, %291 : vector<8x256xf32>
    %293 = arith.addf %287, %292 : vector<8x256xf32>
    %294 = vector.extract_strided_slice %15 {offsets = [0, 2], sizes = [8, 1], strides = [1, 1]} : vector<8x72xf32> to vector<8x1xf32>
    %295 = vector.extract_strided_slice %281 {offsets = [2, 0], sizes = [1, 256], strides = [1, 1]} : vector<8x256xf32> to vector<1x256xf32>
    %296 = vector.broadcast %294 : vector<8x1xf32> to vector<8x256xf32>
    %297 = vector.broadcast %295 : vector<1x256xf32> to vector<8x256xf32>
    %298 = arith.mulf %296, %297 : vector<8x256xf32>
    %299 = arith.addf %293, %298 : vector<8x256xf32>
    %300 = vector.extract_strided_slice %15 {offsets = [0, 3], sizes = [8, 1], strides = [1, 1]} : vector<8x72xf32> to vector<8x1xf32>
    %301 = vector.extract_strided_slice %281 {offsets = [3, 0], sizes = [1, 256], strides = [1, 1]} : vector<8x256xf32> to vector<1x256xf32>
    %302 = vector.broadcast %300 : vector<8x1xf32> to vector<8x256xf32>
    %303 = vector.broadcast %301 : vector<1x256xf32> to vector<8x256xf32>
    %304 = arith.mulf %302, %303 : vector<8x256xf32>
    %305 = arith.addf %299, %304 : vector<8x256xf32>
    %306 = vector.extract_strided_slice %15 {offsets = [0, 4], sizes = [8, 1], strides = [1, 1]} : vector<8x72xf32> to vector<8x1xf32>
    %307 = vector.extract_strided_slice %281 {offsets = [4, 0], sizes = [1, 256], strides = [1, 1]} : vector<8x256xf32> to vector<1x256xf32>
    %308 = vector.broadcast %306 : vector<8x1xf32> to vector<8x256xf32>
    %309 = vector.broadcast %307 : vector<1x256xf32> to vector<8x256xf32>
    %310 = arith.mulf %308, %309 : vector<8x256xf32>
    %311 = arith.addf %305, %310 : vector<8x256xf32>
    %312 = vector.extract_strided_slice %15 {offsets = [0, 5], sizes = [8, 1], strides = [1, 1]} : vector<8x72xf32> to vector<8x1xf32>
    %313 = vector.extract_strided_slice %281 {offsets = [5, 0], sizes = [1, 256], strides = [1, 1]} : vector<8x256xf32> to vector<1x256xf32>
    %314 = vector.broadcast %312 : vector<8x1xf32> to vector<8x256xf32>
    %315 = vector.broadcast %313 : vector<1x256xf32> to vector<8x256xf32>
    %316 = arith.mulf %314, %315 : vector<8x256xf32>
    %317 = arith.addf %311, %316 : vector<8x256xf32>
    %318 = vector.extract_strided_slice %15 {offsets = [0, 6], sizes = [8, 1], strides = [1, 1]} : vector<8x72xf32> to vector<8x1xf32>
    %319 = vector.extract_strided_slice %281 {offsets = [6, 0], sizes = [1, 256], strides = [1, 1]} : vector<8x256xf32> to vector<1x256xf32>
    %320 = vector.broadcast %318 : vector<8x1xf32> to vector<8x256xf32>
    %321 = vector.broadcast %319 : vector<1x256xf32> to vector<8x256xf32>
    %322 = arith.mulf %320, %321 : vector<8x256xf32>
    %323 = arith.addf %317, %322 : vector<8x256xf32>
    %324 = vector.extract_strided_slice %15 {offsets = [0, 7], sizes = [8, 1], strides = [1, 1]} : vector<8x72xf32> to vector<8x1xf32>
    %325 = vector.extract_strided_slice %281 {offsets = [7, 0], sizes = [1, 256], strides = [1, 1]} : vector<8x256xf32> to vector<1x256xf32>
    %326 = vector.broadcast %324 : vector<8x1xf32> to vector<8x256xf32>
    %327 = vector.broadcast %325 : vector<1x256xf32> to vector<8x256xf32>
    %328 = arith.mulf %326, %327 : vector<8x256xf32>
    %329 = arith.addf %323, %328 : vector<8x256xf32>
    %330 = vector.extract_strided_slice %279 {offsets = [0, 118], sizes = [8, 256], strides = [1, 1]} : vector<8x512xf32> to vector<8x256xf32>
    %331 = vector.extract_strided_slice %15 {offsets = [0, 8], sizes = [8, 1], strides = [1, 1]} : vector<8x72xf32> to vector<8x1xf32>
    %332 = vector.extract_strided_slice %330 {offsets = [0, 0], sizes = [1, 256], strides = [1, 1]} : vector<8x256xf32> to vector<1x256xf32>
    %333 = vector.broadcast %331 : vector<8x1xf32> to vector<8x256xf32>
    %334 = vector.broadcast %332 : vector<1x256xf32> to vector<8x256xf32>
    %335 = arith.mulf %333, %334 : vector<8x256xf32>
    %336 = arith.addf %329, %335 : vector<8x256xf32>
    %337 = vector.extract_strided_slice %15 {offsets = [0, 9], sizes = [8, 1], strides = [1, 1]} : vector<8x72xf32> to vector<8x1xf32>
    %338 = vector.extract_strided_slice %330 {offsets = [1, 0], sizes = [1, 256], strides = [1, 1]} : vector<8x256xf32> to vector<1x256xf32>
    %339 = vector.broadcast %337 : vector<8x1xf32> to vector<8x256xf32>
    %340 = vector.broadcast %338 : vector<1x256xf32> to vector<8x256xf32>
    %341 = arith.mulf %339, %340 : vector<8x256xf32>
    %342 = arith.addf %336, %341 : vector<8x256xf32>
    %343 = vector.extract_strided_slice %15 {offsets = [0, 10], sizes = [8, 1], strides = [1, 1]} : vector<8x72xf32> to vector<8x1xf32>
    %344 = vector.extract_strided_slice %330 {offsets = [2, 0], sizes = [1, 256], strides = [1, 1]} : vector<8x256xf32> to vector<1x256xf32>
    %345 = vector.broadcast %343 : vector<8x1xf32> to vector<8x256xf32>
    %346 = vector.broadcast %344 : vector<1x256xf32> to vector<8x256xf32>
    %347 = arith.mulf %345, %346 : vector<8x256xf32>
    %348 = arith.addf %342, %347 : vector<8x256xf32>
    %349 = vector.extract_strided_slice %15 {offsets = [0, 11], sizes = [8, 1], strides = [1, 1]} : vector<8x72xf32> to vector<8x1xf32>
    %350 = vector.extract_strided_slice %330 {offsets = [3, 0], sizes = [1, 256], strides = [1, 1]} : vector<8x256xf32> to vector<1x256xf32>
    %351 = vector.broadcast %349 : vector<8x1xf32> to vector<8x256xf32>
    %352 = vector.broadcast %350 : vector<1x256xf32> to vector<8x256xf32>
    %353 = arith.mulf %351, %352 : vector<8x256xf32>
    %354 = arith.addf %348, %353 : vector<8x256xf32>
    %355 = vector.extract_strided_slice %15 {offsets = [0, 12], sizes = [8, 1], strides = [1, 1]} : vector<8x72xf32> to vector<8x1xf32>
    %356 = vector.extract_strided_slice %330 {offsets = [4, 0], sizes = [1, 256], strides = [1, 1]} : vector<8x256xf32> to vector<1x256xf32>
    %357 = vector.broadcast %355 : vector<8x1xf32> to vector<8x256xf32>
    %358 = vector.broadcast %356 : vector<1x256xf32> to vector<8x256xf32>
    %359 = arith.mulf %357, %358 : vector<8x256xf32>
    %360 = arith.addf %354, %359 : vector<8x256xf32>
    %361 = vector.extract_strided_slice %15 {offsets = [0, 13], sizes = [8, 1], strides = [1, 1]} : vector<8x72xf32> to vector<8x1xf32>
    %362 = vector.extract_strided_slice %330 {offsets = [5, 0], sizes = [1, 256], strides = [1, 1]} : vector<8x256xf32> to vector<1x256xf32>
    %363 = vector.broadcast %361 : vector<8x1xf32> to vector<8x256xf32>
    %364 = vector.broadcast %362 : vector<1x256xf32> to vector<8x256xf32>
    %365 = arith.mulf %363, %364 : vector<8x256xf32>
    %366 = arith.addf %360, %365 : vector<8x256xf32>
    %367 = vector.extract_strided_slice %15 {offsets = [0, 14], sizes = [8, 1], strides = [1, 1]} : vector<8x72xf32> to vector<8x1xf32>
    %368 = vector.extract_strided_slice %330 {offsets = [6, 0], sizes = [1, 256], strides = [1, 1]} : vector<8x256xf32> to vector<1x256xf32>
    %369 = vector.broadcast %367 : vector<8x1xf32> to vector<8x256xf32>
    %370 = vector.broadcast %368 : vector<1x256xf32> to vector<8x256xf32>
    %371 = arith.mulf %369, %370 : vector<8x256xf32>
    %372 = arith.addf %366, %371 : vector<8x256xf32>
    %373 = vector.extract_strided_slice %15 {offsets = [0, 15], sizes = [8, 1], strides = [1, 1]} : vector<8x72xf32> to vector<8x1xf32>
    %374 = vector.extract_strided_slice %330 {offsets = [7, 0], sizes = [1, 256], strides = [1, 1]} : vector<8x256xf32> to vector<1x256xf32>
    %375 = vector.broadcast %373 : vector<8x1xf32> to vector<8x256xf32>
    %376 = vector.broadcast %374 : vector<1x256xf32> to vector<8x256xf32>
    %377 = arith.mulf %375, %376 : vector<8x256xf32>
    %378 = arith.addf %372, %377 : vector<8x256xf32>
    %379 = vector.extract_strided_slice %279 {offsets = [0, 119], sizes = [8, 256], strides = [1, 1]} : vector<8x512xf32> to vector<8x256xf32>
    %380 = vector.extract_strided_slice %15 {offsets = [0, 16], sizes = [8, 1], strides = [1, 1]} : vector<8x72xf32> to vector<8x1xf32>
    %381 = vector.extract_strided_slice %379 {offsets = [0, 0], sizes = [1, 256], strides = [1, 1]} : vector<8x256xf32> to vector<1x256xf32>
    %382 = vector.broadcast %380 : vector<8x1xf32> to vector<8x256xf32>
    %383 = vector.broadcast %381 : vector<1x256xf32> to vector<8x256xf32>
    %384 = arith.mulf %382, %383 : vector<8x256xf32>
    %385 = arith.addf %378, %384 : vector<8x256xf32>
    %386 = vector.extract_strided_slice %15 {offsets = [0, 17], sizes = [8, 1], strides = [1, 1]} : vector<8x72xf32> to vector<8x1xf32>
    %387 = vector.extract_strided_slice %379 {offsets = [1, 0], sizes = [1, 256], strides = [1, 1]} : vector<8x256xf32> to vector<1x256xf32>
    %388 = vector.broadcast %386 : vector<8x1xf32> to vector<8x256xf32>
    %389 = vector.broadcast %387 : vector<1x256xf32> to vector<8x256xf32>
    %390 = arith.mulf %388, %389 : vector<8x256xf32>
    %391 = arith.addf %385, %390 : vector<8x256xf32>
    %392 = vector.extract_strided_slice %15 {offsets = [0, 18], sizes = [8, 1], strides = [1, 1]} : vector<8x72xf32> to vector<8x1xf32>
    %393 = vector.extract_strided_slice %379 {offsets = [2, 0], sizes = [1, 256], strides = [1, 1]} : vector<8x256xf32> to vector<1x256xf32>
    %394 = vector.broadcast %392 : vector<8x1xf32> to vector<8x256xf32>
    %395 = vector.broadcast %393 : vector<1x256xf32> to vector<8x256xf32>
    %396 = arith.mulf %394, %395 : vector<8x256xf32>
    %397 = arith.addf %391, %396 : vector<8x256xf32>
    %398 = vector.extract_strided_slice %15 {offsets = [0, 19], sizes = [8, 1], strides = [1, 1]} : vector<8x72xf32> to vector<8x1xf32>
    %399 = vector.extract_strided_slice %379 {offsets = [3, 0], sizes = [1, 256], strides = [1, 1]} : vector<8x256xf32> to vector<1x256xf32>
    %400 = vector.broadcast %398 : vector<8x1xf32> to vector<8x256xf32>
    %401 = vector.broadcast %399 : vector<1x256xf32> to vector<8x256xf32>
    %402 = arith.mulf %400, %401 : vector<8x256xf32>
    %403 = arith.addf %397, %402 : vector<8x256xf32>
    %404 = vector.extract_strided_slice %15 {offsets = [0, 20], sizes = [8, 1], strides = [1, 1]} : vector<8x72xf32> to vector<8x1xf32>
    %405 = vector.extract_strided_slice %379 {offsets = [4, 0], sizes = [1, 256], strides = [1, 1]} : vector<8x256xf32> to vector<1x256xf32>
    %406 = vector.broadcast %404 : vector<8x1xf32> to vector<8x256xf32>
    %407 = vector.broadcast %405 : vector<1x256xf32> to vector<8x256xf32>
    %408 = arith.mulf %406, %407 : vector<8x256xf32>
    %409 = arith.addf %403, %408 : vector<8x256xf32>
    %410 = vector.extract_strided_slice %15 {offsets = [0, 21], sizes = [8, 1], strides = [1, 1]} : vector<8x72xf32> to vector<8x1xf32>
    %411 = vector.extract_strided_slice %379 {offsets = [5, 0], sizes = [1, 256], strides = [1, 1]} : vector<8x256xf32> to vector<1x256xf32>
    %412 = vector.broadcast %410 : vector<8x1xf32> to vector<8x256xf32>
    %413 = vector.broadcast %411 : vector<1x256xf32> to vector<8x256xf32>
    %414 = arith.mulf %412, %413 : vector<8x256xf32>
    %415 = arith.addf %409, %414 : vector<8x256xf32>
    %416 = vector.extract_strided_slice %15 {offsets = [0, 22], sizes = [8, 1], strides = [1, 1]} : vector<8x72xf32> to vector<8x1xf32>
    %417 = vector.extract_strided_slice %379 {offsets = [6, 0], sizes = [1, 256], strides = [1, 1]} : vector<8x256xf32> to vector<1x256xf32>
    %418 = vector.broadcast %416 : vector<8x1xf32> to vector<8x256xf32>
    %419 = vector.broadcast %417 : vector<1x256xf32> to vector<8x256xf32>
    %420 = arith.mulf %418, %419 : vector<8x256xf32>
    %421 = arith.addf %415, %420 : vector<8x256xf32>
    %422 = vector.extract_strided_slice %15 {offsets = [0, 23], sizes = [8, 1], strides = [1, 1]} : vector<8x72xf32> to vector<8x1xf32>
    %423 = vector.extract_strided_slice %379 {offsets = [7, 0], sizes = [1, 256], strides = [1, 1]} : vector<8x256xf32> to vector<1x256xf32>
    %424 = vector.broadcast %422 : vector<8x1xf32> to vector<8x256xf32>
    %425 = vector.broadcast %423 : vector<1x256xf32> to vector<8x256xf32>
    %426 = arith.mulf %424, %425 : vector<8x256xf32>
    %427 = arith.addf %421, %426 : vector<8x256xf32>
    %428 = vector.extract_strided_slice %279 {offsets = [0, 127], sizes = [8, 256], strides = [1, 1]} : vector<8x512xf32> to vector<8x256xf32>
    %429 = vector.extract_strided_slice %15 {offsets = [0, 24], sizes = [8, 1], strides = [1, 1]} : vector<8x72xf32> to vector<8x1xf32>
    %430 = vector.extract_strided_slice %428 {offsets = [0, 0], sizes = [1, 256], strides = [1, 1]} : vector<8x256xf32> to vector<1x256xf32>
    %431 = vector.broadcast %429 : vector<8x1xf32> to vector<8x256xf32>
    %432 = vector.broadcast %430 : vector<1x256xf32> to vector<8x256xf32>
    %433 = arith.mulf %431, %432 : vector<8x256xf32>
    %434 = arith.addf %427, %433 : vector<8x256xf32>
    %435 = vector.extract_strided_slice %15 {offsets = [0, 25], sizes = [8, 1], strides = [1, 1]} : vector<8x72xf32> to vector<8x1xf32>
    %436 = vector.extract_strided_slice %428 {offsets = [1, 0], sizes = [1, 256], strides = [1, 1]} : vector<8x256xf32> to vector<1x256xf32>
    %437 = vector.broadcast %435 : vector<8x1xf32> to vector<8x256xf32>
    %438 = vector.broadcast %436 : vector<1x256xf32> to vector<8x256xf32>
    %439 = arith.mulf %437, %438 : vector<8x256xf32>
    %440 = arith.addf %434, %439 : vector<8x256xf32>
    %441 = vector.extract_strided_slice %15 {offsets = [0, 26], sizes = [8, 1], strides = [1, 1]} : vector<8x72xf32> to vector<8x1xf32>
    %442 = vector.extract_strided_slice %428 {offsets = [2, 0], sizes = [1, 256], strides = [1, 1]} : vector<8x256xf32> to vector<1x256xf32>
    %443 = vector.broadcast %441 : vector<8x1xf32> to vector<8x256xf32>
    %444 = vector.broadcast %442 : vector<1x256xf32> to vector<8x256xf32>
    %445 = arith.mulf %443, %444 : vector<8x256xf32>
    %446 = arith.addf %440, %445 : vector<8x256xf32>
    %447 = vector.extract_strided_slice %15 {offsets = [0, 27], sizes = [8, 1], strides = [1, 1]} : vector<8x72xf32> to vector<8x1xf32>
    %448 = vector.extract_strided_slice %428 {offsets = [3, 0], sizes = [1, 256], strides = [1, 1]} : vector<8x256xf32> to vector<1x256xf32>
    %449 = vector.broadcast %447 : vector<8x1xf32> to vector<8x256xf32>
    %450 = vector.broadcast %448 : vector<1x256xf32> to vector<8x256xf32>
    %451 = arith.mulf %449, %450 : vector<8x256xf32>
    %452 = arith.addf %446, %451 : vector<8x256xf32>
    %453 = vector.extract_strided_slice %15 {offsets = [0, 28], sizes = [8, 1], strides = [1, 1]} : vector<8x72xf32> to vector<8x1xf32>
    %454 = vector.extract_strided_slice %428 {offsets = [4, 0], sizes = [1, 256], strides = [1, 1]} : vector<8x256xf32> to vector<1x256xf32>
    %455 = vector.broadcast %453 : vector<8x1xf32> to vector<8x256xf32>
    %456 = vector.broadcast %454 : vector<1x256xf32> to vector<8x256xf32>
    %457 = arith.mulf %455, %456 : vector<8x256xf32>
    %458 = arith.addf %452, %457 : vector<8x256xf32>
    %459 = vector.extract_strided_slice %15 {offsets = [0, 29], sizes = [8, 1], strides = [1, 1]} : vector<8x72xf32> to vector<8x1xf32>
    %460 = vector.extract_strided_slice %428 {offsets = [5, 0], sizes = [1, 256], strides = [1, 1]} : vector<8x256xf32> to vector<1x256xf32>
    %461 = vector.broadcast %459 : vector<8x1xf32> to vector<8x256xf32>
    %462 = vector.broadcast %460 : vector<1x256xf32> to vector<8x256xf32>
    %463 = arith.mulf %461, %462 : vector<8x256xf32>
    %464 = arith.addf %458, %463 : vector<8x256xf32>
    %465 = vector.extract_strided_slice %15 {offsets = [0, 30], sizes = [8, 1], strides = [1, 1]} : vector<8x72xf32> to vector<8x1xf32>
    %466 = vector.extract_strided_slice %428 {offsets = [6, 0], sizes = [1, 256], strides = [1, 1]} : vector<8x256xf32> to vector<1x256xf32>
    %467 = vector.broadcast %465 : vector<8x1xf32> to vector<8x256xf32>
    %468 = vector.broadcast %466 : vector<1x256xf32> to vector<8x256xf32>
    %469 = arith.mulf %467, %468 : vector<8x256xf32>
    %470 = arith.addf %464, %469 : vector<8x256xf32>
    %471 = vector.extract_strided_slice %15 {offsets = [0, 31], sizes = [8, 1], strides = [1, 1]} : vector<8x72xf32> to vector<8x1xf32>
    %472 = vector.extract_strided_slice %428 {offsets = [7, 0], sizes = [1, 256], strides = [1, 1]} : vector<8x256xf32> to vector<1x256xf32>
    %473 = vector.broadcast %471 : vector<8x1xf32> to vector<8x256xf32>
    %474 = vector.broadcast %472 : vector<1x256xf32> to vector<8x256xf32>
    %475 = arith.mulf %473, %474 : vector<8x256xf32>
    %476 = arith.addf %470, %475 : vector<8x256xf32>
    %477 = vector.extract_strided_slice %279 {offsets = [0, 128], sizes = [8, 256], strides = [1, 1]} : vector<8x512xf32> to vector<8x256xf32>
    %478 = vector.extract_strided_slice %15 {offsets = [0, 32], sizes = [8, 1], strides = [1, 1]} : vector<8x72xf32> to vector<8x1xf32>
    %479 = vector.extract_strided_slice %477 {offsets = [0, 0], sizes = [1, 256], strides = [1, 1]} : vector<8x256xf32> to vector<1x256xf32>
    %480 = vector.broadcast %478 : vector<8x1xf32> to vector<8x256xf32>
    %481 = vector.broadcast %479 : vector<1x256xf32> to vector<8x256xf32>
    %482 = arith.mulf %480, %481 : vector<8x256xf32>
    %483 = arith.addf %476, %482 : vector<8x256xf32>
    %484 = vector.extract_strided_slice %15 {offsets = [0, 33], sizes = [8, 1], strides = [1, 1]} : vector<8x72xf32> to vector<8x1xf32>
    %485 = vector.extract_strided_slice %477 {offsets = [1, 0], sizes = [1, 256], strides = [1, 1]} : vector<8x256xf32> to vector<1x256xf32>
    %486 = vector.broadcast %484 : vector<8x1xf32> to vector<8x256xf32>
    %487 = vector.broadcast %485 : vector<1x256xf32> to vector<8x256xf32>
    %488 = arith.mulf %486, %487 : vector<8x256xf32>
    %489 = arith.addf %483, %488 : vector<8x256xf32>
    %490 = vector.extract_strided_slice %15 {offsets = [0, 34], sizes = [8, 1], strides = [1, 1]} : vector<8x72xf32> to vector<8x1xf32>
    %491 = vector.extract_strided_slice %477 {offsets = [2, 0], sizes = [1, 256], strides = [1, 1]} : vector<8x256xf32> to vector<1x256xf32>
    %492 = vector.broadcast %490 : vector<8x1xf32> to vector<8x256xf32>
    %493 = vector.broadcast %491 : vector<1x256xf32> to vector<8x256xf32>
    %494 = arith.mulf %492, %493 : vector<8x256xf32>
    %495 = arith.addf %489, %494 : vector<8x256xf32>
    %496 = vector.extract_strided_slice %15 {offsets = [0, 35], sizes = [8, 1], strides = [1, 1]} : vector<8x72xf32> to vector<8x1xf32>
    %497 = vector.extract_strided_slice %477 {offsets = [3, 0], sizes = [1, 256], strides = [1, 1]} : vector<8x256xf32> to vector<1x256xf32>
    %498 = vector.broadcast %496 : vector<8x1xf32> to vector<8x256xf32>
    %499 = vector.broadcast %497 : vector<1x256xf32> to vector<8x256xf32>
    %500 = arith.mulf %498, %499 : vector<8x256xf32>
    %501 = arith.addf %495, %500 : vector<8x256xf32>
    %502 = vector.extract_strided_slice %15 {offsets = [0, 36], sizes = [8, 1], strides = [1, 1]} : vector<8x72xf32> to vector<8x1xf32>
    %503 = vector.extract_strided_slice %477 {offsets = [4, 0], sizes = [1, 256], strides = [1, 1]} : vector<8x256xf32> to vector<1x256xf32>
    %504 = vector.broadcast %502 : vector<8x1xf32> to vector<8x256xf32>
    %505 = vector.broadcast %503 : vector<1x256xf32> to vector<8x256xf32>
    %506 = arith.mulf %504, %505 : vector<8x256xf32>
    %507 = arith.addf %501, %506 : vector<8x256xf32>
    %508 = vector.extract_strided_slice %15 {offsets = [0, 37], sizes = [8, 1], strides = [1, 1]} : vector<8x72xf32> to vector<8x1xf32>
    %509 = vector.extract_strided_slice %477 {offsets = [5, 0], sizes = [1, 256], strides = [1, 1]} : vector<8x256xf32> to vector<1x256xf32>
    %510 = vector.broadcast %508 : vector<8x1xf32> to vector<8x256xf32>
    %511 = vector.broadcast %509 : vector<1x256xf32> to vector<8x256xf32>
    %512 = arith.mulf %510, %511 : vector<8x256xf32>
    %513 = arith.addf %507, %512 : vector<8x256xf32>
    %514 = vector.extract_strided_slice %15 {offsets = [0, 38], sizes = [8, 1], strides = [1, 1]} : vector<8x72xf32> to vector<8x1xf32>
    %515 = vector.extract_strided_slice %477 {offsets = [6, 0], sizes = [1, 256], strides = [1, 1]} : vector<8x256xf32> to vector<1x256xf32>
    %516 = vector.broadcast %514 : vector<8x1xf32> to vector<8x256xf32>
    %517 = vector.broadcast %515 : vector<1x256xf32> to vector<8x256xf32>
    %518 = arith.mulf %516, %517 : vector<8x256xf32>
    %519 = arith.addf %513, %518 : vector<8x256xf32>
    %520 = vector.extract_strided_slice %15 {offsets = [0, 39], sizes = [8, 1], strides = [1, 1]} : vector<8x72xf32> to vector<8x1xf32>
    %521 = vector.extract_strided_slice %477 {offsets = [7, 0], sizes = [1, 256], strides = [1, 1]} : vector<8x256xf32> to vector<1x256xf32>
    %522 = vector.broadcast %520 : vector<8x1xf32> to vector<8x256xf32>
    %523 = vector.broadcast %521 : vector<1x256xf32> to vector<8x256xf32>
    %524 = arith.mulf %522, %523 : vector<8x256xf32>
    %525 = arith.addf %519, %524 : vector<8x256xf32>
    %526 = vector.extract_strided_slice %279 {offsets = [0, 129], sizes = [8, 256], strides = [1, 1]} : vector<8x512xf32> to vector<8x256xf32>
    %527 = vector.extract_strided_slice %15 {offsets = [0, 40], sizes = [8, 1], strides = [1, 1]} : vector<8x72xf32> to vector<8x1xf32>
    %528 = vector.extract_strided_slice %526 {offsets = [0, 0], sizes = [1, 256], strides = [1, 1]} : vector<8x256xf32> to vector<1x256xf32>
    %529 = vector.broadcast %527 : vector<8x1xf32> to vector<8x256xf32>
    %530 = vector.broadcast %528 : vector<1x256xf32> to vector<8x256xf32>
    %531 = arith.mulf %529, %530 : vector<8x256xf32>
    %532 = arith.addf %525, %531 : vector<8x256xf32>
    %533 = vector.extract_strided_slice %15 {offsets = [0, 41], sizes = [8, 1], strides = [1, 1]} : vector<8x72xf32> to vector<8x1xf32>
    %534 = vector.extract_strided_slice %526 {offsets = [1, 0], sizes = [1, 256], strides = [1, 1]} : vector<8x256xf32> to vector<1x256xf32>
    %535 = vector.broadcast %533 : vector<8x1xf32> to vector<8x256xf32>
    %536 = vector.broadcast %534 : vector<1x256xf32> to vector<8x256xf32>
    %537 = arith.mulf %535, %536 : vector<8x256xf32>
    %538 = arith.addf %532, %537 : vector<8x256xf32>
    %539 = vector.extract_strided_slice %15 {offsets = [0, 42], sizes = [8, 1], strides = [1, 1]} : vector<8x72xf32> to vector<8x1xf32>
    %540 = vector.extract_strided_slice %526 {offsets = [2, 0], sizes = [1, 256], strides = [1, 1]} : vector<8x256xf32> to vector<1x256xf32>
    %541 = vector.broadcast %539 : vector<8x1xf32> to vector<8x256xf32>
    %542 = vector.broadcast %540 : vector<1x256xf32> to vector<8x256xf32>
    %543 = arith.mulf %541, %542 : vector<8x256xf32>
    %544 = arith.addf %538, %543 : vector<8x256xf32>
    %545 = vector.extract_strided_slice %15 {offsets = [0, 43], sizes = [8, 1], strides = [1, 1]} : vector<8x72xf32> to vector<8x1xf32>
    %546 = vector.extract_strided_slice %526 {offsets = [3, 0], sizes = [1, 256], strides = [1, 1]} : vector<8x256xf32> to vector<1x256xf32>
    %547 = vector.broadcast %545 : vector<8x1xf32> to vector<8x256xf32>
    %548 = vector.broadcast %546 : vector<1x256xf32> to vector<8x256xf32>
    %549 = arith.mulf %547, %548 : vector<8x256xf32>
    %550 = arith.addf %544, %549 : vector<8x256xf32>
    %551 = vector.extract_strided_slice %15 {offsets = [0, 44], sizes = [8, 1], strides = [1, 1]} : vector<8x72xf32> to vector<8x1xf32>
    %552 = vector.extract_strided_slice %526 {offsets = [4, 0], sizes = [1, 256], strides = [1, 1]} : vector<8x256xf32> to vector<1x256xf32>
    %553 = vector.broadcast %551 : vector<8x1xf32> to vector<8x256xf32>
    %554 = vector.broadcast %552 : vector<1x256xf32> to vector<8x256xf32>
    %555 = arith.mulf %553, %554 : vector<8x256xf32>
    %556 = arith.addf %550, %555 : vector<8x256xf32>
    %557 = vector.extract_strided_slice %15 {offsets = [0, 45], sizes = [8, 1], strides = [1, 1]} : vector<8x72xf32> to vector<8x1xf32>
    %558 = vector.extract_strided_slice %526 {offsets = [5, 0], sizes = [1, 256], strides = [1, 1]} : vector<8x256xf32> to vector<1x256xf32>
    %559 = vector.broadcast %557 : vector<8x1xf32> to vector<8x256xf32>
    %560 = vector.broadcast %558 : vector<1x256xf32> to vector<8x256xf32>
    %561 = arith.mulf %559, %560 : vector<8x256xf32>
    %562 = arith.addf %556, %561 : vector<8x256xf32>
    %563 = vector.extract_strided_slice %15 {offsets = [0, 46], sizes = [8, 1], strides = [1, 1]} : vector<8x72xf32> to vector<8x1xf32>
    %564 = vector.extract_strided_slice %526 {offsets = [6, 0], sizes = [1, 256], strides = [1, 1]} : vector<8x256xf32> to vector<1x256xf32>
    %565 = vector.broadcast %563 : vector<8x1xf32> to vector<8x256xf32>
    %566 = vector.broadcast %564 : vector<1x256xf32> to vector<8x256xf32>
    %567 = arith.mulf %565, %566 : vector<8x256xf32>
    %568 = arith.addf %562, %567 : vector<8x256xf32>
    %569 = vector.extract_strided_slice %15 {offsets = [0, 47], sizes = [8, 1], strides = [1, 1]} : vector<8x72xf32> to vector<8x1xf32>
    %570 = vector.extract_strided_slice %526 {offsets = [7, 0], sizes = [1, 256], strides = [1, 1]} : vector<8x256xf32> to vector<1x256xf32>
    %571 = vector.broadcast %569 : vector<8x1xf32> to vector<8x256xf32>
    %572 = vector.broadcast %570 : vector<1x256xf32> to vector<8x256xf32>
    %573 = arith.mulf %571, %572 : vector<8x256xf32>
    %574 = arith.addf %568, %573 : vector<8x256xf32>
    %575 = vector.extract_strided_slice %279 {offsets = [0, 137], sizes = [8, 256], strides = [1, 1]} : vector<8x512xf32> to vector<8x256xf32>
    %576 = vector.extract_strided_slice %15 {offsets = [0, 48], sizes = [8, 1], strides = [1, 1]} : vector<8x72xf32> to vector<8x1xf32>
    %577 = vector.extract_strided_slice %575 {offsets = [0, 0], sizes = [1, 256], strides = [1, 1]} : vector<8x256xf32> to vector<1x256xf32>
    %578 = vector.broadcast %576 : vector<8x1xf32> to vector<8x256xf32>
    %579 = vector.broadcast %577 : vector<1x256xf32> to vector<8x256xf32>
    %580 = arith.mulf %578, %579 : vector<8x256xf32>
    %581 = arith.addf %574, %580 : vector<8x256xf32>
    %582 = vector.extract_strided_slice %15 {offsets = [0, 49], sizes = [8, 1], strides = [1, 1]} : vector<8x72xf32> to vector<8x1xf32>
    %583 = vector.extract_strided_slice %575 {offsets = [1, 0], sizes = [1, 256], strides = [1, 1]} : vector<8x256xf32> to vector<1x256xf32>
    %584 = vector.broadcast %582 : vector<8x1xf32> to vector<8x256xf32>
    %585 = vector.broadcast %583 : vector<1x256xf32> to vector<8x256xf32>
    %586 = arith.mulf %584, %585 : vector<8x256xf32>
    %587 = arith.addf %581, %586 : vector<8x256xf32>
    %588 = vector.extract_strided_slice %15 {offsets = [0, 50], sizes = [8, 1], strides = [1, 1]} : vector<8x72xf32> to vector<8x1xf32>
    %589 = vector.extract_strided_slice %575 {offsets = [2, 0], sizes = [1, 256], strides = [1, 1]} : vector<8x256xf32> to vector<1x256xf32>
    %590 = vector.broadcast %588 : vector<8x1xf32> to vector<8x256xf32>
    %591 = vector.broadcast %589 : vector<1x256xf32> to vector<8x256xf32>
    %592 = arith.mulf %590, %591 : vector<8x256xf32>
    %593 = arith.addf %587, %592 : vector<8x256xf32>
    %594 = vector.extract_strided_slice %15 {offsets = [0, 51], sizes = [8, 1], strides = [1, 1]} : vector<8x72xf32> to vector<8x1xf32>
    %595 = vector.extract_strided_slice %575 {offsets = [3, 0], sizes = [1, 256], strides = [1, 1]} : vector<8x256xf32> to vector<1x256xf32>
    %596 = vector.broadcast %594 : vector<8x1xf32> to vector<8x256xf32>
    %597 = vector.broadcast %595 : vector<1x256xf32> to vector<8x256xf32>
    %598 = arith.mulf %596, %597 : vector<8x256xf32>
    %599 = arith.addf %593, %598 : vector<8x256xf32>
    %600 = vector.extract_strided_slice %15 {offsets = [0, 52], sizes = [8, 1], strides = [1, 1]} : vector<8x72xf32> to vector<8x1xf32>
    %601 = vector.extract_strided_slice %575 {offsets = [4, 0], sizes = [1, 256], strides = [1, 1]} : vector<8x256xf32> to vector<1x256xf32>
    %602 = vector.broadcast %600 : vector<8x1xf32> to vector<8x256xf32>
    %603 = vector.broadcast %601 : vector<1x256xf32> to vector<8x256xf32>
    %604 = arith.mulf %602, %603 : vector<8x256xf32>
    %605 = arith.addf %599, %604 : vector<8x256xf32>
    %606 = vector.extract_strided_slice %15 {offsets = [0, 53], sizes = [8, 1], strides = [1, 1]} : vector<8x72xf32> to vector<8x1xf32>
    %607 = vector.extract_strided_slice %575 {offsets = [5, 0], sizes = [1, 256], strides = [1, 1]} : vector<8x256xf32> to vector<1x256xf32>
    %608 = vector.broadcast %606 : vector<8x1xf32> to vector<8x256xf32>
    %609 = vector.broadcast %607 : vector<1x256xf32> to vector<8x256xf32>
    %610 = arith.mulf %608, %609 : vector<8x256xf32>
    %611 = arith.addf %605, %610 : vector<8x256xf32>
    %612 = vector.extract_strided_slice %15 {offsets = [0, 54], sizes = [8, 1], strides = [1, 1]} : vector<8x72xf32> to vector<8x1xf32>
    %613 = vector.extract_strided_slice %575 {offsets = [6, 0], sizes = [1, 256], strides = [1, 1]} : vector<8x256xf32> to vector<1x256xf32>
    %614 = vector.broadcast %612 : vector<8x1xf32> to vector<8x256xf32>
    %615 = vector.broadcast %613 : vector<1x256xf32> to vector<8x256xf32>
    %616 = arith.mulf %614, %615 : vector<8x256xf32>
    %617 = arith.addf %611, %616 : vector<8x256xf32>
    %618 = vector.extract_strided_slice %15 {offsets = [0, 55], sizes = [8, 1], strides = [1, 1]} : vector<8x72xf32> to vector<8x1xf32>
    %619 = vector.extract_strided_slice %575 {offsets = [7, 0], sizes = [1, 256], strides = [1, 1]} : vector<8x256xf32> to vector<1x256xf32>
    %620 = vector.broadcast %618 : vector<8x1xf32> to vector<8x256xf32>
    %621 = vector.broadcast %619 : vector<1x256xf32> to vector<8x256xf32>
    %622 = arith.mulf %620, %621 : vector<8x256xf32>
    %623 = arith.addf %617, %622 : vector<8x256xf32>
    %624 = vector.extract_strided_slice %279 {offsets = [0, 138], sizes = [8, 256], strides = [1, 1]} : vector<8x512xf32> to vector<8x256xf32>
    %625 = vector.extract_strided_slice %15 {offsets = [0, 56], sizes = [8, 1], strides = [1, 1]} : vector<8x72xf32> to vector<8x1xf32>
    %626 = vector.extract_strided_slice %624 {offsets = [0, 0], sizes = [1, 256], strides = [1, 1]} : vector<8x256xf32> to vector<1x256xf32>
    %627 = vector.broadcast %625 : vector<8x1xf32> to vector<8x256xf32>
    %628 = vector.broadcast %626 : vector<1x256xf32> to vector<8x256xf32>
    %629 = arith.mulf %627, %628 : vector<8x256xf32>
    %630 = arith.addf %623, %629 : vector<8x256xf32>
    %631 = vector.extract_strided_slice %15 {offsets = [0, 57], sizes = [8, 1], strides = [1, 1]} : vector<8x72xf32> to vector<8x1xf32>
    %632 = vector.extract_strided_slice %624 {offsets = [1, 0], sizes = [1, 256], strides = [1, 1]} : vector<8x256xf32> to vector<1x256xf32>
    %633 = vector.broadcast %631 : vector<8x1xf32> to vector<8x256xf32>
    %634 = vector.broadcast %632 : vector<1x256xf32> to vector<8x256xf32>
    %635 = arith.mulf %633, %634 : vector<8x256xf32>
    %636 = arith.addf %630, %635 : vector<8x256xf32>
    %637 = vector.extract_strided_slice %15 {offsets = [0, 58], sizes = [8, 1], strides = [1, 1]} : vector<8x72xf32> to vector<8x1xf32>
    %638 = vector.extract_strided_slice %624 {offsets = [2, 0], sizes = [1, 256], strides = [1, 1]} : vector<8x256xf32> to vector<1x256xf32>
    %639 = vector.broadcast %637 : vector<8x1xf32> to vector<8x256xf32>
    %640 = vector.broadcast %638 : vector<1x256xf32> to vector<8x256xf32>
    %641 = arith.mulf %639, %640 : vector<8x256xf32>
    %642 = arith.addf %636, %641 : vector<8x256xf32>
    %643 = vector.extract_strided_slice %15 {offsets = [0, 59], sizes = [8, 1], strides = [1, 1]} : vector<8x72xf32> to vector<8x1xf32>
    %644 = vector.extract_strided_slice %624 {offsets = [3, 0], sizes = [1, 256], strides = [1, 1]} : vector<8x256xf32> to vector<1x256xf32>
    %645 = vector.broadcast %643 : vector<8x1xf32> to vector<8x256xf32>
    %646 = vector.broadcast %644 : vector<1x256xf32> to vector<8x256xf32>
    %647 = arith.mulf %645, %646 : vector<8x256xf32>
    %648 = arith.addf %642, %647 : vector<8x256xf32>
    %649 = vector.extract_strided_slice %15 {offsets = [0, 60], sizes = [8, 1], strides = [1, 1]} : vector<8x72xf32> to vector<8x1xf32>
    %650 = vector.extract_strided_slice %624 {offsets = [4, 0], sizes = [1, 256], strides = [1, 1]} : vector<8x256xf32> to vector<1x256xf32>
    %651 = vector.broadcast %649 : vector<8x1xf32> to vector<8x256xf32>
    %652 = vector.broadcast %650 : vector<1x256xf32> to vector<8x256xf32>
    %653 = arith.mulf %651, %652 : vector<8x256xf32>
    %654 = arith.addf %648, %653 : vector<8x256xf32>
    %655 = vector.extract_strided_slice %15 {offsets = [0, 61], sizes = [8, 1], strides = [1, 1]} : vector<8x72xf32> to vector<8x1xf32>
    %656 = vector.extract_strided_slice %624 {offsets = [5, 0], sizes = [1, 256], strides = [1, 1]} : vector<8x256xf32> to vector<1x256xf32>
    %657 = vector.broadcast %655 : vector<8x1xf32> to vector<8x256xf32>
    %658 = vector.broadcast %656 : vector<1x256xf32> to vector<8x256xf32>
    %659 = arith.mulf %657, %658 : vector<8x256xf32>
    %660 = arith.addf %654, %659 : vector<8x256xf32>
    %661 = vector.extract_strided_slice %15 {offsets = [0, 62], sizes = [8, 1], strides = [1, 1]} : vector<8x72xf32> to vector<8x1xf32>
    %662 = vector.extract_strided_slice %624 {offsets = [6, 0], sizes = [1, 256], strides = [1, 1]} : vector<8x256xf32> to vector<1x256xf32>
    %663 = vector.broadcast %661 : vector<8x1xf32> to vector<8x256xf32>
    %664 = vector.broadcast %662 : vector<1x256xf32> to vector<8x256xf32>
    %665 = arith.mulf %663, %664 : vector<8x256xf32>
    %666 = arith.addf %660, %665 : vector<8x256xf32>
    %667 = vector.extract_strided_slice %15 {offsets = [0, 63], sizes = [8, 1], strides = [1, 1]} : vector<8x72xf32> to vector<8x1xf32>
    %668 = vector.extract_strided_slice %624 {offsets = [7, 0], sizes = [1, 256], strides = [1, 1]} : vector<8x256xf32> to vector<1x256xf32>
    %669 = vector.broadcast %667 : vector<8x1xf32> to vector<8x256xf32>
    %670 = vector.broadcast %668 : vector<1x256xf32> to vector<8x256xf32>
    %671 = arith.mulf %669, %670 : vector<8x256xf32>
    %672 = arith.addf %666, %671 : vector<8x256xf32>
    %673 = vector.extract_strided_slice %279 {offsets = [0, 139], sizes = [8, 256], strides = [1, 1]} : vector<8x512xf32> to vector<8x256xf32>
    %674 = vector.extract_strided_slice %15 {offsets = [0, 64], sizes = [8, 1], strides = [1, 1]} : vector<8x72xf32> to vector<8x1xf32>
    %675 = vector.extract_strided_slice %673 {offsets = [0, 0], sizes = [1, 256], strides = [1, 1]} : vector<8x256xf32> to vector<1x256xf32>
    %676 = vector.broadcast %674 : vector<8x1xf32> to vector<8x256xf32>
    %677 = vector.broadcast %675 : vector<1x256xf32> to vector<8x256xf32>
    %678 = arith.mulf %676, %677 : vector<8x256xf32>
    %679 = arith.addf %672, %678 : vector<8x256xf32>
    %680 = vector.extract_strided_slice %15 {offsets = [0, 65], sizes = [8, 1], strides = [1, 1]} : vector<8x72xf32> to vector<8x1xf32>
    %681 = vector.extract_strided_slice %673 {offsets = [1, 0], sizes = [1, 256], strides = [1, 1]} : vector<8x256xf32> to vector<1x256xf32>
    %682 = vector.broadcast %680 : vector<8x1xf32> to vector<8x256xf32>
    %683 = vector.broadcast %681 : vector<1x256xf32> to vector<8x256xf32>
    %684 = arith.mulf %682, %683 : vector<8x256xf32>
    %685 = arith.addf %679, %684 : vector<8x256xf32>
    %686 = vector.extract_strided_slice %15 {offsets = [0, 66], sizes = [8, 1], strides = [1, 1]} : vector<8x72xf32> to vector<8x1xf32>
    %687 = vector.extract_strided_slice %673 {offsets = [2, 0], sizes = [1, 256], strides = [1, 1]} : vector<8x256xf32> to vector<1x256xf32>
    %688 = vector.broadcast %686 : vector<8x1xf32> to vector<8x256xf32>
    %689 = vector.broadcast %687 : vector<1x256xf32> to vector<8x256xf32>
    %690 = arith.mulf %688, %689 : vector<8x256xf32>
    %691 = arith.addf %685, %690 : vector<8x256xf32>
    %692 = vector.extract_strided_slice %15 {offsets = [0, 67], sizes = [8, 1], strides = [1, 1]} : vector<8x72xf32> to vector<8x1xf32>
    %693 = vector.extract_strided_slice %673 {offsets = [3, 0], sizes = [1, 256], strides = [1, 1]} : vector<8x256xf32> to vector<1x256xf32>
    %694 = vector.broadcast %692 : vector<8x1xf32> to vector<8x256xf32>
    %695 = vector.broadcast %693 : vector<1x256xf32> to vector<8x256xf32>
    %696 = arith.mulf %694, %695 : vector<8x256xf32>
    %697 = arith.addf %691, %696 : vector<8x256xf32>
    %698 = vector.extract_strided_slice %15 {offsets = [0, 68], sizes = [8, 1], strides = [1, 1]} : vector<8x72xf32> to vector<8x1xf32>
    %699 = vector.extract_strided_slice %673 {offsets = [4, 0], sizes = [1, 256], strides = [1, 1]} : vector<8x256xf32> to vector<1x256xf32>
    %700 = vector.broadcast %698 : vector<8x1xf32> to vector<8x256xf32>
    %701 = vector.broadcast %699 : vector<1x256xf32> to vector<8x256xf32>
    %702 = arith.mulf %700, %701 : vector<8x256xf32>
    %703 = arith.addf %697, %702 : vector<8x256xf32>
    %704 = vector.extract_strided_slice %15 {offsets = [0, 69], sizes = [8, 1], strides = [1, 1]} : vector<8x72xf32> to vector<8x1xf32>
    %705 = vector.extract_strided_slice %673 {offsets = [5, 0], sizes = [1, 256], strides = [1, 1]} : vector<8x256xf32> to vector<1x256xf32>
    %706 = vector.broadcast %704 : vector<8x1xf32> to vector<8x256xf32>
    %707 = vector.broadcast %705 : vector<1x256xf32> to vector<8x256xf32>
    %708 = arith.mulf %706, %707 : vector<8x256xf32>
    %709 = arith.addf %703, %708 : vector<8x256xf32>
    %710 = vector.extract_strided_slice %15 {offsets = [0, 70], sizes = [8, 1], strides = [1, 1]} : vector<8x72xf32> to vector<8x1xf32>
    %711 = vector.extract_strided_slice %673 {offsets = [6, 0], sizes = [1, 256], strides = [1, 1]} : vector<8x256xf32> to vector<1x256xf32>
    %712 = vector.broadcast %710 : vector<8x1xf32> to vector<8x256xf32>
    %713 = vector.broadcast %711 : vector<1x256xf32> to vector<8x256xf32>
    %714 = arith.mulf %712, %713 : vector<8x256xf32>
    %715 = arith.addf %709, %714 : vector<8x256xf32>
    %716 = vector.extract_strided_slice %15 {offsets = [0, 71], sizes = [8, 1], strides = [1, 1]} : vector<8x72xf32> to vector<8x1xf32>
    %717 = vector.extract_strided_slice %673 {offsets = [7, 0], sizes = [1, 256], strides = [1, 1]} : vector<8x256xf32> to vector<1x256xf32>
    %718 = vector.broadcast %716 : vector<8x1xf32> to vector<8x256xf32>
    %719 = vector.broadcast %717 : vector<1x256xf32> to vector<8x256xf32>
    %720 = arith.mulf %718, %719 : vector<8x256xf32>
    %721 = arith.addf %715, %720 : vector<8x256xf32>
    %722 = vector.extract_strided_slice %16 {offsets = [0, 2], sizes = [8, 1], strides = [1, 1]} : vector<8x4xf32> to vector<8x1xf32>
    %723 = vector.extract_strided_slice %16 {offsets = [0, 3], sizes = [8, 1], strides = [1, 1]} : vector<8x4xf32> to vector<8x1xf32>
    %cst_28 = arith.constant 0.000000e+00 : f32
    %724 = vector.shape_cast %2 : vector<1x256xi1> to vector<1x256xi1>
    %725 = vector.broadcast %724 : vector<1x256xi1> to vector<8x256xi1>
    %726 = vector.broadcast %cst_28 : f32 to vector<8x256xf32>
    %727 = arith.select %725, %721, %726 : vector<8x256xi1>, vector<8x256xf32>
    %cst_29 = arith.constant dense<0.000000e+00> : vector<8xf32>
    %728 = vector.multi_reduction <add>, %727, %cst_29 [1] : vector<8x256xf32> to vector<8xf32>
    %729 = vector.shape_cast %728 : vector<8xf32> to vector<8x1xf32>
    %cst_30 = arith.constant 7.812500e-03 : f32
    %730 = vector.broadcast %cst_30 : f32 to vector<8x1xf32>
    %731 = arith.mulf %729, %730 : vector<8x1xf32>
    %732 = vector.broadcast %731 : vector<8x1xf32> to vector<8x256xf32>
    %733 = arith.subf %721, %732 : vector<8x256xf32>
    %cst_31 = arith.constant 0.000000e+00 : f32
    %734 = vector.shape_cast %2 : vector<1x256xi1> to vector<1x256xi1>
    %735 = vector.broadcast %734 : vector<1x256xi1> to vector<8x256xi1>
    %736 = vector.broadcast %cst_31 : f32 to vector<8x256xf32>
    %737 = arith.select %735, %733, %736 : vector<8x256xi1>, vector<8x256xf32>
    %738 = arith.mulf %737, %737 : vector<8x256xf32>
    %cst_32 = arith.constant dense<0.000000e+00> : vector<8xf32>
    %739 = vector.multi_reduction <add>, %738, %cst_32 [1] : vector<8x256xf32> to vector<8xf32>
    %740 = vector.shape_cast %739 : vector<8xf32> to vector<8x1xf32>
    %cst_33 = arith.constant 7.812500e-03 : f32
    %741 = vector.broadcast %cst_33 : f32 to vector<8x1xf32>
    %742 = arith.mulf %740, %741 : vector<8x1xf32>
    %cst_34 = arith.constant 9.99999974E-6 : f32
    %743 = vector.broadcast %cst_34 : f32 to vector<8x1xf32>
    %744 = arith.addf %742, %743 : vector<8x1xf32>
    %745 = math.rsqrt %744 : vector<8x1xf32>
    %746 = arith.mulf %722, %745 : vector<8x1xf32>
    %747 = vector.broadcast %746 : vector<8x1xf32> to vector<8x256xf32>
    %748 = arith.mulf %737, %747 : vector<8x256xf32>
    %749 = vector.broadcast %723 : vector<8x1xf32> to vector<8x256xf32>
    %750 = arith.addf %748, %749 : vector<8x256xf32>
    %cst_35 = arith.constant 0.000000e+00 : f32
    %751 = vector.broadcast %cst_35 : f32 to vector<8x256xf32>
    %752 = arith.maximumf %750, %751 : vector<8x256xf32>
    %753 = vector.broadcast %0 : vector<1x256xf32> to vector<8x256xf32>
    %754 = arith.mulf %752, %753 : vector<8x256xf32>
    %c0_36 = arith.constant 0 : index
    %c0_37 = arith.constant 0 : index
    %755 = vector.load %arg6[%c0_36, %c0_37] : memref<8x256xf32, #tpu.memory_space<vmem>>, vector<8x256xf32>
    tpu.vector_store %arg6[%c0_36, %c0_37], %754 {strides = array<i32>} : memref<8x256xf32, #tpu.memory_space<vmem>>, vector<8x256xf32>,
    return
  }
  func.func @transform_0(%arg0: i32) -> (i32, i32, i32) {
    %c0_i32 = arith.constant 0 : i32
    %c0_i32_0 = arith.constant 0 : i32
    %c0_i32_1 = arith.constant 0 : i32
    %c0_i32_2 = arith.constant 0 : i32
    return %c0_i32, %c0_i32_0, %c0_i32_1 : i32, i32, i32
  }
  func.func @transform_1(%arg0: i32) -> (i32, i32) {
    %c0_i32 = arith.constant 0 : i32
    %c0_i32_0 = arith.constant 0 : i32
    %c0_i32_1 = arith.constant 0 : i32
    return %c0_i32, %c0_i32_0 : i32, i32
  }
  func.func @transform_2(%arg0: i32) -> (i32, i32) {
    %c0_i32 = arith.constant 0 : i32
    %c0_i32_0 = arith.constant 0 : i32
    %c0_i32_1 = arith.constant 0 : i32
    return %c0_i32, %c0_i32_0 : i32, i32
  }
  func.func @transform_3(%arg0: i32) -> (i32, i32) {
    %c0_i32 = arith.constant 0 : i32
    %c0_i32_0 = arith.constant 0 : i32
    %c0_i32_1 = arith.constant 0 : i32
    return %c0_i32, %c0_i32_0 : i32, i32
  }
  func.func @transform_4(%arg0: i32) -> (i32, i32) {
    %c0_i32 = arith.constant 0 : i32
    %c0_i32_0 = arith.constant 0 : i32
    %c0_i32_1 = arith.constant 0 : i32
    return %c0_i32, %c0_i32_0 : i32, i32
  }
  func.func @transform_5(%arg0: i32) -> (i32, i32) {
    %c0_i32 = arith.constant 0 : i32
    %c0_i32_0 = arith.constant 0 : i32
    %c0_i32_1 = arith.constant 0 : i32
    return %c0_i32, %c0_i32_0 : i32, i32
  }
}

</mosaic_0001>

<bundles_post_ra>
// kernel: tpu_custom_call.1
= control target key start
LH: loop header
LB: loop body
LE: loop exit
PB: predicated region body
PF: predicated region fallthrough
CT: control target
= control target key end

     0   :  { %10 = vsyncpa [#allocation3], 0  ;;  %s5284_s0 = inlined_call_operand.hbm [shape: f32[4,4,256], index: 0, kind: input, shape index: {}]   ;;  %s5285_s1 = inlined_call_operand.vmem [shape: f32[8,36], index: 1, kind: input, shape index: {}]   ;;  %s5286_s2 = inlined_call_operand.vmem [shape: f32[8,72], index: 2, kind: input, shape index: {}]   ;;  %s5287_s3 = inlined_call_operand.vmem [shape: f32[8,4], index: 3, kind: input, shape index: {}]   ;;  %s5288_s4 = inlined_call_operand.vmem [shape: f32[1,256], index: 4, kind: input, shape index: {}]   ;;  %s5289_s5 = inlined_call_operand.hbm [shape: f32[8,256], index: 5, kind: output, shape index: {}]  }
   0x1   :  { %11 = vsyncpa [#allocation4], 0  ;;  %s2966_s18 = smov [#allocation2]   ;;  %s2918_s22 = scalar_lea.hbm %s5284_s0, 512 }
   0x2   :  { %s17_s19 = sshll.u32 %s2966_s18, 4  ;;  %p2919_p0 = scmp.ne.s32.totalorder %s5284_s0, %s2918_s22  ;;  %s18_s19 = int_to_ptr.vmem [resolvable:$true] %s17_s19 }
   0x3   :  { %p2922_p1 = scmp.lt.u32.totalorder %s2918_s22, %s5284_s0 }
   0x5   :  { %p2924_p2 = pnand %p2922_p1, %p2919_p0 }
   0x7   :  { %2927 = shalt.err (!%p2924_p2)
}
   0x8   :  { %s2928_s27 = scalar_lea.vmem %s18_s19, 512  ;;  %p2933_p4 = scmp.lt.s32.totalorder %s18_s19, %s18_s19 }
   0x9   :  { %p2929_p3 = scmp.ne.s32.totalorder %s18_s19, %s2928_s27  ;;  %p2934_p5 = scmp.lt.s32.totalorder %s2928_s27, %s2928_s27 }
   0xb   :  { %p2935_p6 = por %p2934_p5, %p2933_p4 }
   0xd   :  { %p2936_p7 = pnand %p2935_p6, %p2929_p3 }
   0xf   :  { %2939 = shalt.err (!%p2936_p7)
}
  0x10   :  { %s2967_s28 = smov 128   ;;  %s2968_s29 = smov 8  }
  0x11   :  { %23 = dma.hbm_to_vmem [thread:$0]  %s5284_s0, 512, %s18_s19, [#allocation3], %s2967_s28, %s2967_s28, %s2968_s29  }
  0x12   :  { %2962 = dma.done.wait [#allocation3], 512  }
  0x13   :  { %2963 = vsyncadd [#allocation3], 4294966784  ;;  %v5333_v0 = vmov 2   ;;  %v5321_v1 = vmov 0   ;;  %v3098_v2 = vld [vmem:[%s5285_s1] sm:$0xff]  ;;  %v5290_v3 = vmov 3   ;;  %v61_v37 = vlaneseq }
  0x14   :  { %2801 = vset.pattern.permute.xlu1 %v5333_v0  ;;  %2799 = vset.pattern.permute.xlu0 %v5321_v1  ;;  %v2972_v4 = vmov 1   ;;  %v5320_v5 = vmov 4   ;;  %v5318_v6 = vmov 7   ;;  %v5319_v7 = vmov 5   ;;  %v37_v38 = vld [vmem:[#allocation2] sm:$0xff]  ;;  %v39_v39 = vld [vmem:[#allocation2 + $0x8] sm:$0xff] }
  0x15   :  { %97 = vperm.xlu1 %2801, %v3098_v2   ;;  %55 = vperm.xlu0 %2799, %v3098_v2   ;;  %v5315_v8 = vmov 10   ;;  %v2977_v9 = vmov 6   ;;  %v5312_v10 = vmov 13   ;;  %v5317_v11 = vmov 8   ;;  %v42_v40 = vld [vmem:[#allocation2 + $0x10] sm:$0xff]  ;;  %v44_v41 = vld [vmem:[#allocation2 + $0x18] sm:$0xff] }
  0x16   :  { %v5309_v12 = vmov 16   ;;  %v5316_v13 = vmov 9   ;;  %v5306_v14 = vmov 19   ;;  %v5314_v15 = vmov 11   ;;  %s3005_s0 = smov 127   ;;  %s3006_s1 = smov 126  }
  0x17   :  { %v5304_v16 = vmov 22   ;;  %v5313_v17 = vmov 12   ;;  %v5302_v18 = vmov 25   ;;  %v5311_v19 = vmov 14   ;;  %s3007_s9 = smov 118   ;;  %s3008_s10 = smov 117  }
  0x18   :  { %v5300_v20 = vmov 28   ;;  %v5310_v21 = vmov 15   ;;  %v5298_v22 = vmov 31   ;;  %v5308_v23 = vmov 17   ;;  %s3009_s11 = smov 116   ;;  %s3010_s12 = smov 108  }
  0x19   :  { %2802 = vset.pattern.permute.xlu1 %v5290_v3  ;;  %2800 = vset.pattern.permute.xlu0 %v2972_v4  ;;  %v5296_v24 = vmov 34   ;;  %v5307_v25 = vmov 18   ;;  %v2994_v26 = vmov 20   ;;  %v5305_v27 = vmov 21   ;;  %s3011_s13 = smov 107   ;;  %s3012_s14 = smov 106  }
  0x1a   :  { %118 = vperm.xlu1 %2802, %v3098_v2   ;;  %76 = vperm.xlu0 %2800, %v3098_v2   ;;  %v5295_v28 = vmov 23   ;;  %v5303_v29 = vmov 24   ;;  %v5294_v30 = vmov 26   ;;  %v5301_v31 = vmov 27   ;;  %s3013_s19 = smov 11   ;;  %s3050_s26 = smov [#allocation5]  }
  0x1b   :  { %v5293_v32 = vmov 29   ;;  %v5299_v33 = vmov 30   ;;  %v5292_v34 = vmov 32   ;;  %v5297_v35 = vmov 33   ;;  %s2705_s27 = sshll.u32 %s3050_s26, 4  ;;  %s2706_s27 = int_to_ptr.vmem [resolvable:$true] %s2705_s27 }
  0x1c   :  { %v5291_v36 = vmov 35   ;;  %v3174_v43 = vshrl.u32 %v61_v37, 7  ;;  %v40_v44 = vmax.f32 %v37_v38, %v39_v39  ;;  %v45_v45 = vmax.f32 %v42_v40, %v44_v41  ;;  %p2945_p9 = scmp.lt.s32.totalorder %s2706_s27, %s2706_s27 }
  0x1d   :  { %vm154_vm0 = vcmask 1039360   ;;  %vm251_vm1 = vcmask 1031168   ;;  %vm348_vm2 = vcmask 965632   ;;  %vm522_vm3 = vcmask 949248  }
  0x1e   :  { %2803 = vset.pattern.permute.xlu1 %v5320_v5  ;;  %2806 = vset.pattern.permute.xlu0 %v5318_v6  ;;  %5435 = vst [vmem:[#allocation9_spill] sm:$0xff] %v3174_v43  ;;  %v3177_v46 = vsub.s32 0, %v3174_v43  ;;  %v46_v48 = vmax.f32 %v40_v44, %v45_v45  ;;  %v3185_v50 = vsub.s32 1, %v3174_v43  ;;  %v3201_v61 = vsub.s32 2, %v3174_v43 }
  0x1f   :  { %139 = vperm.xlu1 %2803, %v3098_v2   ;;  %212 = vperm.xlu0 %2806, %v3098_v2   ;;  %v3214_v39 = vsub.s32 3, %v3174_v43  ;;  %vm619_vm4 = vcmask 883712   ;;  %vm716_vm5 = vcmask 875520   ;;  %vm813_vm6 = vcmask 867328  }
  0x20   :  { %5436 = vst [vmem:[#allocation10_spill] sm:$0xff] %v3177_v46  ;;  %v3182_v49 = vrot.slane %v46_v48, %v3177_v46  ;;  %5438 = vst [vmem:[#allocation12_spill] sm:$0xff] %v3185_v50  ;;  %v51_v52 = vcombine.high %v46_v48, %v46_v48  ;;  %v3196_v57 = vrot.slane %v46_v48, %v3185_v50  ;;  %vm441_vm7 = vcmask 957440  }
  0x21   :  { %5441 = vst [vmem:[#allocation15_spill] sm:$0xff] %v3201_v61  ;;  %5443 = vst [vmem:[#allocation17_spill] sm:$0xff] %v3214_v39  ;;  %v3218_v41 = vrot.slane %v46_v48, %v3201_v61  ;;  %vm914_vm9 = vcmask 89088  }
  0x22   :  { %5437 = vst [vmem:[#allocation11_spill] sm:$0xff] %v3182_v49  ;;  %v3189_v55 = vrot.slane %v51_v52, %v3177_v46  ;;  %5440 = vst [vmem:[#allocation14_spill] sm:$0xff] %v3196_v57  ;;  %v3208_v37 = vrot.slane %v51_v52, %v3185_v50  ;;  %v3211_v38 = vrot.slane %v51_v52, %v3201_v61  ;;  %v5463_v46 = vmov 5  }
  0x23   :  { %2804 = vset.pattern.permute.xlu1 %v5319_v7  ;;  %2809 = vset.pattern.permute.xlu0 %v5315_v8  ;;  %5444 = vst [vmem:[#allocation18_spill] sm:$0xff] %v3218_v41 }
  0x24   :  { %164 = vperm.xlu1 %2804, %v3098_v2   ;;  %285 = vperm.xlu0 %2809, %v3098_v2  }
  0x28   :  { %2805 = vset.pattern.permute.xlu1 %v2977_v9  ;;  %2812 = vset.pattern.permute.xlu0 %v5312_v10 }
  0x29   :  { %188 = vperm.xlu1 %2805, %v3098_v2   ;;  %358 = vperm.xlu0 %2812, %v3098_v2  }
  0x2d   :  { %2807 = vset.pattern.permute.xlu1 %v5317_v11  ;;  %2815 = vset.pattern.permute.xlu0 %v5309_v12 }
  0x2e   :  { %236 = vperm.xlu1 %2807, %v3098_v2   ;;  %430 = vperm.xlu0 %2815, %v3098_v2  }
  0x32   :  { %2808 = vset.pattern.permute.xlu1 %v5316_v13  ;;  %2818 = vset.pattern.permute.xlu0 %v5306_v14 }
  0x33   :  { %261 = vperm.xlu1 %2808, %v3098_v2   ;;  %488 = vperm.xlu0 %2818, %v3098_v2  }
  0x37   :  { %2810 = vset.pattern.permute.xlu1 %v5314_v15  ;;  %2821 = vset.pattern.permute.xlu0 %v5304_v16 }
  0x38   :  { %309 = vperm.xlu1 %2810, %v3098_v2   ;;  %556 = vperm.xlu0 %2821, %v3098_v2  }
  0x3c   :  { %2811 = vset.pattern.permute.xlu1 %v5313_v17  ;;  %2824 = vset.pattern.permute.xlu0 %v5302_v18 }
  0x3d   :  { %333 = vperm.xlu1 %2811, %v3098_v2   ;;  %629 = vperm.xlu0 %2824, %v3098_v2  }
  0x41   :  { %2813 = vset.pattern.permute.xlu1 %v5311_v19  ;;  %2827 = vset.pattern.permute.xlu0 %v5300_v20 }
  0x42   :  { %382 = vperm.xlu1 %2813, %v3098_v2   ;;  %701 = vperm.xlu0 %2827, %v3098_v2  }
  0x46   :  { %2814 = vset.pattern.permute.xlu1 %v5310_v21  ;;  %2830 = vset.pattern.permute.xlu0 %v5298_v22 }
  0x47   :  { %406 = vperm.xlu1 %2814, %v3098_v2   ;;  %774 = vperm.xlu0 %2830, %v3098_v2  }
  0x4b   :  { %2816 = vset.pattern.permute.xlu1 %v5308_v23  ;;  %2833 = vset.pattern.permute.xlu0 %v5296_v24 }
  0x4c   :  { %450 = vperm.xlu1 %2816, %v3098_v2   ;;  %847 = vperm.xlu0 %2833, %v3098_v2  }
  0x50   :  { %2817 = vset.pattern.permute.xlu1 %v5307_v25  ;;  %2839 = vset.pattern.permute.xlu0 %v5290_v3  ;;  %v3233_v3 = vrot.slane %v51_v52, %v3214_v39 }
  0x51   :  { %469 = vperm.xlu1 %2817, %v3098_v2  }
  0x55   :  { %2819 = vset.pattern.permute.xlu1 %v2994_v26 }
  0x56   :  { %507 = vperm.xlu1 %2819, %v3098_v2  }
  0x5a   :  { %2820 = vset.pattern.permute.xlu1 %v5305_v27 }
  0x5b   :  { %532 = vperm.xlu1 %2820, %v3098_v2  }
  0x5f   :  { %2822 = vset.pattern.permute.xlu1 %v5295_v28 }
  0x60   :  { %580 = vperm.xlu1 %2822, %v3098_v2  }
  0x64   :  { %2823 = vset.pattern.permute.xlu1 %v5303_v29 }
  0x65   :  { %604 = vperm.xlu1 %2823, %v3098_v2  }
  0x69   :  { %2825 = vset.pattern.permute.xlu1 %v5294_v30 }
  0x6a   :  { %653 = vperm.xlu1 %2825, %v3098_v2  }
  0x6e   :  { %2826 = vset.pattern.permute.xlu1 %v5301_v31 }
  0x6f   :  { %677 = vperm.xlu1 %2826, %v3098_v2  }
  0x73   :  { %2828 = vset.pattern.permute.xlu1 %v5293_v32 }
  0x74   :  { %726 = vperm.xlu1 %2828, %v3098_v2  }
  0x78   :  { %2829 = vset.pattern.permute.xlu1 %v5299_v33 }
  0x79   :  { %750 = vperm.xlu1 %2829, %v3098_v2  }
  0x7d   :  { %2831 = vset.pattern.permute.xlu1 %v5292_v34 }
  0x7e   :  { %798 = vperm.xlu1 %2831, %v3098_v2  }
  0x82   :  { %2832 = vset.pattern.permute.xlu1 %v5297_v35 }
  0x83   :  { %823 = vperm.xlu1 %2832, %v3098_v2  }
  0x87   :  { %2834 = vset.pattern.permute.xlu1 %v5291_v36 }
  0x88   :  { %871 = vperm.xlu1 %2834, %v3098_v2  }
  0x8c   :  { %2835 = vset.pattern.permute.xlu1 %v2972_v4 }
  0x94   :  { %v3172_v42 = vpop.permute.xlu1 %97  ;;  %v3193_v56 = vpop.permute.xlu0 %55 }
  0x95   :  { %5434 = vst [vmem:[#allocation8_spill] sm:$0xff] %v3172_v42  ;;  %5439 = vst [vmem:[#allocation13_spill] sm:$0xff] %v3193_v56 }
  0x99   :  { %v3179_v47 = vpop.permute.xlu1 %118  ;;  %v3205_v63 = vpop.permute.xlu0 %76 }
  0x9a   :  { %5442 = vst [vmem:[#allocation16_spill] sm:$0xff] %v3205_v63 }
  0x9e   :  { %v140_v51 = vpop.permute.xlu1 %139 }
  0x9f   :  { %v142_v53 = vmul.f32 0.0, %v140_v51  ;;  %v143_v54 = vmul.f32 %v140_v51, %v3182_v49  ;;  %v144_v59 = vmul.f32 %v140_v51, %v3189_v55  ;;  %v213_v51 = vpop.permute.xlu0 %212 }
  0xa1   :  { %148 = vrot.lane.b32.xlu0 %v142_v53, %s3005_s0  ;;  %150 = vrot.lane.b32.xlu1 %v143_v54, %s3005_s0  ;;  %v3224_v53 = vrot.slane %v46_v48, %v3214_v39  ;;  %v217_v48 = vmul.f32 %v213_v51, %v3233_v3  ;;  %v5459_v39 = vmov 4  }
  0xa3   :  { %v165_v58 = vpop.permute.xlu1 %164  ;;  %5445 = vst [vmem:[#allocation19_spill] sm:$0xff] %v3224_v53  ;;  %v286_v52 = vpop.permute.xlu0 %285 }
  0xa4   :  { %v168_v60 = vmul.f32 %v165_v58, %v3196_v57  ;;  %v167_v62 = vmul.f32 0.0, %v165_v58  ;;  %v169_v44 = vmul.f32 %v165_v58, %v3208_v37 }
  0xa5   :  { %152 = vrot.lane.b32.xlu0 %v144_v59, %s3005_s0  ;;  %v216_v59 = vmul.f32 %v213_v51, %v3224_v53 }
  0xa6   :  { %175 = vrot.lane.b32.xlu1 %v168_v60, %s3005_s0 }
  0xa8   :  { %v189_v2 = vpop.permute.xlu1 %188 }
  0xa9   :  { %173 = vrot.lane.b32.xlu0 %v167_v62, %s3005_s0  ;;  %v191_v40 = vmul.f32 0.0, %v189_v2  ;;  %v193_v45 = vmul.f32 %v189_v2, %v3211_v38  ;;  %v192_v54 = vmul.f32 %v189_v2, %v3218_v41  ;;  %v215_v62 = vmul.f32 0.0, %v213_v51 }
  0xab   :  { %197 = vrot.lane.b32.xlu1 %v191_v40, %s3005_s0 }
  0xad   :  { %177 = vrot.lane.b32.xlu0 %v169_v44, %s3005_s0  ;;  %v237_v60 = vpop.permute.xlu1 %236 }
  0xae   :  { %v239_v58 = vmul.f32 0.0, %v237_v60  ;;  %v241_v2 = vmul.f32 %v237_v60, %v3189_v55 }
  0xaf   :  { %201 = vrot.lane.b32.xlu1 %v193_v45, %s3005_s0  ;;  %v240_v45 = vmul.f32 %v237_v60, %v3182_v49  ;;  %v290_v60 = vmul.f32 %v286_v52, %v3211_v38 }
  0xb1   :  { %199 = vrot.lane.b32.xlu0 %v192_v54, %s3005_s0 }
  0xb2   :  { %v262_v40 = vpop.permute.xlu1 %261 }
  0xb3   :  { %223 = vrot.lane.b32.xlu1 %v216_v59, %s3005_s0  ;;  %v265_v54 = vmul.f32 %v262_v40, %v3196_v57 }
  0xb5   :  { %221 = vrot.lane.b32.xlu0 %v215_v62, %s3005_s0  ;;  %v264_v62 = vmul.f32 0.0, %v262_v40 }
  0xb7   :  { %245 = vrot.lane.b32.xlu1 %v239_v58, %s3006_s1  ;;  %v310_v44 = vpop.permute.xlu1 %309  ;;  %v288_v58 = vmul.f32 0.0, %v286_v52 }
  0xb9   :  { %225 = vrot.lane.b32.xlu0 %v217_v48, %s3005_s0  ;;  %v266_v48 = vmul.f32 %v262_v40, %v3208_v37  ;;  %v314_v40 = vmul.f32 %v310_v44, %v3233_v3 }
  0xbb   :  { %249 = vrot.lane.b32.xlu1 %v241_v2, %s3006_s1  ;;  %v289_v2 = vmul.f32 %v286_v52, %v3218_v41  ;;  %v359_v52 = vpop.permute.xlu0 %358 }
  0xbc   :  { %v334_v59 = vpop.permute.xlu1 %333 }
  0xbd   :  { %247 = vrot.lane.b32.xlu0 %v240_v45, %s3006_s1  ;;  %v313_v45 = vmul.f32 %v310_v44, %v3224_v53 }
  0xbf   :  { %272 = vrot.lane.b32.xlu1 %v265_v54, %s3006_s1  ;;  %v312_v54 = vmul.f32 0.0, %v310_v44  ;;  %v431_v32 = vpop.permute.xlu0 %430 }
  0xc1   :  { %270 = vrot.lane.b32.xlu0 %v264_v62, %s3006_s1  ;;  %v383_v51 = vpop.permute.xlu1 %382  ;;  %v336_v62 = vmul.f32 0.0, %v334_v59 }
  0xc2   :  { %v385_v44 = vmul.f32 0.0, %v383_v51 }
  0xc3   :  { %294 = vrot.lane.b32.xlu1 %v288_v58, %s3006_s1 }
  0xc5   :  { %274 = vrot.lane.b32.xlu0 %v266_v48, %s3006_s1 }
  0xc6   :  { %v407_v36 = vpop.permute.xlu1 %406 }
  0xc7   :  { %298 = vrot.lane.b32.xlu1 %v290_v60, %s3006_s1  ;;  %v338_v60 = vmul.f32 %v334_v59, %v3189_v55 }
  0xc9   :  { %296 = vrot.lane.b32.xlu0 %v289_v2, %s3006_s1  ;;  %v337_v2 = vmul.f32 %v334_v59, %v3182_v49  ;;  %v387_v59 = vmul.f32 %v383_v51, %v3211_v38 }
  0xcb   :  { %320 = vrot.lane.b32.xlu1 %v313_v45, %s3006_s1  ;;  %v451_v58 = vpop.permute.xlu1 %450  ;;  %v362_v45 = vmul.f32 %v359_v52, %v3196_v57 }
  0xcd   :  { %318 = vrot.lane.b32.xlu0 %v312_v54, %s3006_s1  ;;  %v361_v54 = vmul.f32 0.0, %v359_v52 }
  0xcf   :  { %342 = vrot.lane.b32.xlu1 %v336_v62, %s3007_s9 }
  0xd0   :  { %v470_v48 = vpop.permute.xlu1 %469 }
  0xd1   :  { %322 = vrot.lane.b32.xlu0 %v314_v40, %s3006_s1  ;;  %v363_v40 = vmul.f32 %v359_v52, %v3208_v37  ;;  %v409_v52 = vmul.f32 0.0, %v407_v36  ;;  %v472_v30 = vmul.f32 %v470_v48, %v3218_v41 }
  0xd3   :  { %346 = vrot.lane.b32.xlu1 %v338_v60, %s3007_s9  ;;  %v386_v60 = vmul.f32 %v383_v51, %v3218_v41  ;;  %v411_v51 = vmul.f32 %v407_v36, %v3233_v3 }
  0xd5   :  { %344 = vrot.lane.b32.xlu0 %v337_v2, %s3007_s9  ;;  %v508_v34 = vpop.permute.xlu1 %507 }
  0xd7   :  { %369 = vrot.lane.b32.xlu1 %v362_v45, %s3007_s9  ;;  %v410_v45 = vmul.f32 %v407_v36, %v3224_v53 }
  0xd9   :  { %367 = vrot.lane.b32.xlu0 %v361_v54, %s3007_s9  ;;  %v433_v54 = vmul.f32 %v431_v32, %v3182_v49 }
  0xda   :  { %v533_v62 = vpop.permute.xlu1 %532 }
  0xdb   :  { %391 = vrot.lane.b32.xlu1 %v385_v44, %s3007_s9 }
  0xdd   :  { %371 = vrot.lane.b32.xlu0 %v363_v40, %s3007_s9  ;;  %v453_v40 = vmul.f32 %v451_v58, %v3196_v57 }
  0xdf   :  { %395 = vrot.lane.b32.xlu1 %v387_v59, %s3007_s9  ;;  %v3272_v2 = vpop.permute.xlu1 %580  ;;  %v434_v59 = vmul.f32 %v431_v32, %v3189_v55  ;;  %v473_v32 = vmul.f32 %v470_v48, %v3211_v38  ;;  %v511_v48 = vmul.f32 %v508_v34, %v3189_v55 }
  0xe1   :  { %393 = vrot.lane.b32.xlu0 %v386_v60, %s3007_s9 }
  0xe3   :  { %417 = vrot.lane.b32.xlu1 %v410_v45, %s3007_s9  ;;  %v489_v45 = vpop.permute.xlu0 %488 }
  0xe4   :  { %v3278_v44 = vpop.permute.xlu1 %604  ;;  %v491_v36 = vmul.f32 %v489_v45, %v3224_v53 }
  0xe5   :  { %415 = vrot.lane.b32.xlu0 %v409_v52, %s3007_s9  ;;  %v454_v52 = vmul.f32 %v451_v58, %v3208_v37 }
  0xe7   :  { %437 = vrot.lane.b32.xlu1 %v433_v54, %s3008_s10 }
  0xe9   :  { %419 = vrot.lane.b32.xlu0 %v411_v51, %s3007_s9  ;;  %v3286_v60 = vpop.permute.xlu1 %653  ;;  %v492_v51 = vmul.f32 %v489_v45, %v3233_v3  ;;  %v536_v45 = vmul.f32 %v533_v62, %v3208_v37 }
  0xea   :  { %v657_v31 = vmul.f32 %v3286_v60, %v3211_v38 }
  0xeb   :  { %457 = vrot.lane.b32.xlu1 %v453_v40, %s3008_s10  ;;  %v510_v40 = vmul.f32 %v508_v34, %v3182_v49 }
  0xed   :  { %439 = vrot.lane.b32.xlu0 %v434_v59, %s3008_s10  ;;  %v557_v59 = vpop.permute.xlu0 %556 }
  0xee   :  { %v3294_v54 = vpop.permute.xlu1 %677 }
  0xef   :  { %476 = vrot.lane.b32.xlu1 %v472_v30, %s3008_s10  ;;  %v512_v30 = vmul.f32 0.0, %v508_v34  ;;  %v537_v34 = vmul.f32 0.0, %v533_v62 }
  0xf1   :  { %459 = vrot.lane.b32.xlu0 %v454_v52, %s3008_s10  ;;  %v630_v52 = vpop.permute.xlu0 %629 }
  0xf2   :  { %v633_v22 = vmul.f32 %v630_v52, %v3208_v37  ;;  %v634_v33 = vmul.f32 0.0, %v630_v52 }
  0xf3   :  { %495 = vrot.lane.b32.xlu1 %v491_v36, %s3008_s10  ;;  %v3302_v58 = vpop.permute.xlu1 %726 }
  0xf5   :  { %478 = vrot.lane.b32.xlu0 %v473_v32, %s3008_s10  ;;  %v535_v32 = vmul.f32 %v533_v62, %v3196_v57  ;;  %v583_v62 = vmul.f32 %v3272_v2, %v3224_v53 }
  0xf7   :  { %516 = vrot.lane.b32.xlu1 %v510_v40, %s3009_s11  ;;  %v702_v40 = vpop.permute.xlu0 %701 }
  0xf8   :  { %v3308_v36 = vpop.permute.xlu1 %750  ;;  %v706_v29 = vmul.f32 0.0, %v702_v40  ;;  %v705_v27 = vmul.f32 %v702_v40, %v3189_v55 }
  0xf9   :  { %497 = vrot.lane.b32.xlu0 %v492_v51, %s3008_s10  ;;  %v559_v51 = vmul.f32 %v557_v59, %v3218_v41  ;;  %v754_v23 = vmul.f32 %v3308_v36, %v3211_v38 }
  0xfb   :  { %520 = vrot.lane.b32.xlu1 %v512_v30, %s3009_s11  ;;  %v561_v30 = vmul.f32 0.0, %v557_v59 }
  0xfd   :  { %518 = vrot.lane.b32.xlu0 %v511_v48, %s3009_s11  ;;  %v3316_v28 = vpop.permute.xlu1 %798  ;;  %v560_v48 = vmul.f32 %v557_v59, %v3211_v38 }
  0xfe   :  { %v803_v19 = vmul.f32 0.0, %v3316_v28 }
  0xff   :  { %543 = vrot.lane.b32.xlu1 %v536_v45, %s3009_s11  ;;  %v3322_v45 = vpop.permute.xlu0 %774 }
 0x100   :  { %v779_v21 = vmul.f32 0.0, %v3322_v45 }
 0x101   :  { %541 = vrot.lane.b32.xlu0 %v535_v32, %s3009_s11  ;;  %v584_v32 = vmul.f32 %v3272_v2, %v3233_v3 }
 0x102   :  { %v3324_v24 = vpop.permute.xlu1 %823 }
 0x103   :  { %565 = vrot.lane.b32.xlu1 %v559_v51, %s3009_s11  ;;  %v607_v51 = vmul.f32 %v3278_v44, %v3182_v49  ;;  %v3335_v59 = vpop.permute.xlu0 %847  ;;  %v828_v15 = vmul.f32 0.0, %v3324_v24 }
 0x105   :  { %545 = vrot.lane.b32.xlu0 %v537_v34, %s3009_s11 }
 0x107   :  { %569 = vrot.lane.b32.xlu1 %v561_v30, %s3009_s11  ;;  %v3337_v34 = vpop.permute.xlu1 %871  ;;  %v585_v30 = vmul.f32 0.0, %v3272_v2 }
 0x108   :  { %v876_v6 = vmul.f32 0.0, %v3337_v34 }
 0x109   :  { %567 = vrot.lane.b32.xlu0 %v560_v48, %s3009_s11  ;;  %v609_v48 = vmul.f32 0.0, %v3278_v44 }
 0x10b   :  { %591 = vrot.lane.b32.xlu1 %v584_v32, %s3009_s11 }
 0x10d   :  { %589 = vrot.lane.b32.xlu0 %v583_v62, %s3009_s11  ;;  %v608_v62 = vmul.f32 %v3278_v44, %v3189_v55 }
 0x10f   :  { %613 = vrot.lane.b32.xlu1 %v607_v51, %s3010_s12  ;;  %v632_v51 = vmul.f32 %v630_v52, %v3196_v57 }
 0x111   :  { %593 = vrot.lane.b32.xlu0 %v585_v30, %s3009_s11 }
 0x113   :  { %v3343_v32 = vpop.permute.xlu0 %148  ;;  %617 = vrot.lane.b32.xlu1 %v609_v48, %s3010_s12  ;;  %v3348_v35 = vpop.permute.xlu1 %150  ;;  %v656_v48 = vmul.f32 %v3286_v60, %v3218_v41 }
 0x115   :  { %615 = vrot.lane.b32.xlu0 %v608_v62, %s3010_s12  ;;  %v658_v62 = vmul.f32 0.0, %v3286_v60 }
 0x117   :  { %640 = vrot.lane.b32.xlu1 %v633_v22, %s3010_s12  ;;  %v3353_v2 = vpop.permute.xlu0 %152 }
 0x118   :  { %v3356_v30 = vpop.permute.xlu1 %175 }
 0x119   :  { %638 = vrot.lane.b32.xlu0 %v632_v51, %s3010_s12  ;;  %v681_v51 = vmul.f32 %v3294_v54, %v3233_v3 }
 0x11b   :  { %662 = vrot.lane.b32.xlu1 %v656_v48, %s3010_s12  ;;  %v3362_v44 = vpop.permute.xlu0 %173 }
 0x11d   :  { %v3365_v20 = vpop.permute.xlu1 %197  ;;  %642 = vrot.lane.b32.xlu0 %v634_v33, %s3010_s12  ;;  %v680_v33 = vmul.f32 %v3294_v54, %v3224_v53 }
 0x11f   :  { %666 = vrot.lane.b32.xlu1 %v658_v62, %s3010_s12  ;;  %v3369_v22 = vpop.permute.xlu0 %177  ;;  %v704_v62 = vmul.f32 %v702_v40, %v3182_v49  ;;  %v731_v40 = vmul.f32 0.0, %v3302_v58 }
 0x121   :  { %v3375_v48 = vpop.permute.xlu1 %201  ;;  %664 = vrot.lane.b32.xlu0 %v657_v31, %s3010_s12  ;;  %v682_v31 = vmul.f32 0.0, %v3294_v54 }
 0x123   :  { %688 = vrot.lane.b32.xlu1 %v681_v51, %s3010_s12  ;;  %v3379_v52 = vpop.permute.xlu0 %199 }
 0x125   :  { %v3384_v18 = vpop.permute.xlu1 %223  ;;  %686 = vrot.lane.b32.xlu0 %v680_v33, %s3010_s12  ;;  %v730_v33 = vmul.f32 %v3302_v58, %v3208_v37 }
 0x127   :  { %710 = vrot.lane.b32.xlu1 %v704_v62, %s3011_s13  ;;  %v3388_v60 = vpop.permute.xlu0 %221  ;;  %v729_v62 = vmul.f32 %v3302_v58, %v3196_v57  ;;  %v778_v58 = vmul.f32 %v3322_v45, %v3233_v3 }
 0x129   :  { %v3391_v51 = vpop.permute.xlu1 %245  ;;  %690 = vrot.lane.b32.xlu0 %v682_v31, %s3010_s12 }
 0x12b   :  { %714 = vrot.lane.b32.xlu1 %v706_v29, %s3011_s13  ;;  %v3395_v16 = vpop.permute.xlu0 %225  ;;  %v753_v29 = vmul.f32 %v3308_v36, %v3218_v41 }
 0x12d   :  { %v3400_v14 = vpop.permute.xlu1 %249  ;;  %712 = vrot.lane.b32.xlu0 %v705_v27, %s3011_s13  ;;  %v755_v27 = vmul.f32 0.0, %v3308_v36  ;;  %v801_v36 = vmul.f32 %v3316_v28, %v3182_v49  ;;  %v71_v49 = vmul.f32 %v3189_v55, %v3193_v56 }
 0x12f   :  { %737 = vrot.lane.b32.xlu1 %v730_v33, %s3011_s13  ;;  %v3404_v54 = vpop.permute.xlu0 %247 }
 0x131   :  { %v3410_v31 = vpop.permute.xlu1 %272  ;;  %735 = vrot.lane.b32.xlu0 %v729_v62, %s3011_s13 }
 0x133   :  { %759 = vrot.lane.b32.xlu1 %v753_v29, %s3011_s13  ;;  %v3415_v25 = vpop.permute.xlu0 %270  ;;  %v777_v29 = vmul.f32 %v3322_v45, %v3224_v53  ;;  %v827_v45 = vmul.f32 %v3324_v24, %v3208_v37 }
 0x135   :  { %v3418_v33 = vpop.permute.xlu1 %294  ;;  %739 = vrot.lane.b32.xlu0 %v731_v40, %s3011_s13 }
 0x137   :  { %763 = vrot.lane.b32.xlu1 %v755_v27, %s3011_s13  ;;  %v3424_v12 = vpop.permute.xlu0 %274 }
 0x139   :  { %v3428_v62 = vpop.permute.xlu1 %298  ;;  %761 = vrot.lane.b32.xlu0 %v754_v23, %s3011_s13 }
 0x13b   :  { %785 = vrot.lane.b32.xlu1 %v778_v58, %s3011_s13  ;;  %v3434_v40 = vpop.permute.xlu0 %296  ;;  %v802_v58 = vmul.f32 %v3316_v28, %v3189_v55  ;;  %v850_v28 = vmul.f32 %v3335_v59, %v3218_v41  ;;  %v132_v55 = vmul.f32 0.0, %v3179_v47 }
 0x13d   :  { %v3438_v27 = vpop.permute.xlu1 %320  ;;  %783 = vrot.lane.b32.xlu0 %v777_v29, %s3011_s13 }
 0x13f   :  { %807 = vrot.lane.b32.xlu1 %v801_v36, %s3012_s14  ;;  %v3443_v23 = vpop.permute.xlu0 %318  ;;  %v826_v36 = vmul.f32 %v3324_v24, %v3196_v57  ;;  %v875_v24 = vmul.f32 %v3337_v34, %v3233_v3 }
 0x141   :  { %v3446_v10 = vpop.permute.xlu1 %342  ;;  %787 = vrot.lane.b32.xlu0 %v779_v21, %s3011_s13 }
 0x143   :  { %811 = vrot.lane.b32.xlu1 %v803_v19, %s3012_s14  ;;  %v3452_v17 = vpop.permute.xlu0 %322 }
 0x145   :  { %v3456_v29 = vpop.permute.xlu1 %346  ;;  %809 = vrot.lane.b32.xlu0 %v802_v58, %s3012_s14  ;;  %v852_v58 = vmul.f32 0.0, %v3335_v59 }
 0x147   :  { %834 = vrot.lane.b32.xlu1 %v827_v45, %s3012_s14  ;;  %v3462_v21 = vpop.permute.xlu0 %344  ;;  %v851_v45 = vmul.f32 %v3335_v59, %v3211_v38  ;;  %v49_v59 = vld [vmem:[%s5287_s3] sm:$0xff] }
 0x149   :  { %v3466_v19 = vpop.permute.xlu1 %369  ;;  %832 = vrot.lane.b32.xlu0 %v826_v36, %s3012_s14 }
 0x14a   :  { %5446 = vst [vmem:[#allocation20_spill] sm:$0xff] %v3466_v19 }
 0x14b   :  { %856 = vrot.lane.b32.xlu1 %v850_v28, %s3012_s14  ;;  %v3471_v8 = vpop.permute.xlu0 %367  ;;  %v874_v28 = vmul.f32 %v3337_v34, %v3224_v53  ;;  %v90_v53 = vmul.f32 0.0, %v3205_v63 }
 0x14d   :  { %v3474_v13 = vpop.permute.xlu1 %391  ;;  %836 = vrot.lane.b32.xlu0 %v828_v15, %s3012_s14 }
 0x14f   :  { %860 = vrot.lane.b32.xlu1 %v852_v58, %s3012_s14  ;;  %v3480_v11 = vpop.permute.xlu0 %371 }
 0x151   :  { %v3484_v36 = vpop.permute.xlu1 %395  ;;  %858 = vrot.lane.b32.xlu0 %v851_v45, %s3012_s14  ;;  %v3504_v45 = vld [vmem:[%s5286_s2] sm:$0xff] }
 0x152   :  { %5447 = vst [vmem:[#allocation21_spill] sm:$0xff] %v3484_v36  ;;  %5450 = vst [vmem:[#allocation24_spill] sm:$0xff] %v3504_v45 }
 0x153   :  { %882 = vrot.lane.b32.xlu1 %v875_v24, %s3012_s14  ;;  %v3490_v15 = vpop.permute.xlu0 %393 }
 0x154   :  { %5448 = vst [vmem:[#allocation22_spill] sm:$0xff] %v3490_v15 }
 0x155   :  { %v3495_v58 = vpop.permute.xlu1 %417  ;;  %880 = vrot.lane.b32.xlu0 %v874_v28, %s3012_s14 }
 0x156   :  { %5449 = vst [vmem:[#allocation23_spill] sm:$0xff] %v3495_v58 }
 0x157   :  { %v3499_v7 = vpop.permute.xlu0 %415  ;;  %961 = vperm.xlu1 %2835, %v49_v59  }
 0x159   :  { %v3506_v24 = vpop.permute.xlu1 %437  ;;  %884 = vrot.lane.b32.xlu0 %v876_v6, %s3012_s14 }
 0x15a   :  { %5451 = vst [vmem:[#allocation25_spill] sm:$0xff] %v3506_v24 }
 0x15b   :  { %v3509_v5 = vpop.permute.xlu0 %419  ;;  %2836 = vset.pattern.permute.xlu1 %v5321_v1 }
 0x15c   :  { %5452 = vst [vmem:[#allocation26_spill] sm:$0xff] %v3509_v5  ;;  %983 = vperm.xlu1 %2836, %v3504_v45  }
 0x15d   :  { %v3513_v28 = vpop.permute.xlu1 %457  ;;  %1037 = vperm.xlu0 %2839, %v3504_v45  }
 0x15e   :  { %5453 = vst [vmem:[#allocation27_spill] sm:$0xff] %v3513_v28 }
 0x15f   :  { %v3516_v34 = vpop.permute.xlu0 %439 }
 0x160   :  { %2837 = vset.pattern.permute.xlu1 %v2972_v4 }
 0x161   :  { %v3519_v59 = vpop.permute.xlu1 %476  ;;  %1001 = vperm.xlu1 %2837, %v3504_v45   ;;  %2842 = vset.pattern.permute.xlu0 %v2977_v9 }
 0x162   :  { %5454 = vst [vmem:[#allocation28_spill] sm:$0xff] %v3519_v59  ;;  %1097 = vperm.xlu0 %2842, %v3504_v45  }
 0x163   :  { %v3524_v6 = vpop.permute.xlu0 %459 }
 0x164   :  { %5455 = vst [vmem:[#allocation29_spill] sm:$0xff] %v3524_v6 }
 0x165   :  { %v3526_v1 = vpop.permute.xlu1 %495  ;;  %2838 = vset.pattern.permute.xlu1 %v5333_v0 }
 0x166   :  { %5456 = vst [vmem:[#allocation30_spill] sm:$0xff] %v3526_v1  ;;  %1019 = vperm.xlu1 %2838, %v3504_v45   ;;  %2856 = vset.pattern.permute.xlu0 %v2994_v26  ;;  %v69_v26 = vmul.f32 0.0, %v3193_v56 }
 0x167   :  { %v3531_v43 = vpop.permute.xlu0 %478 }
 0x168   :  { %5457 = vst [vmem:[#allocation31_spill] sm:$0xff] %v3531_v43 }
 0x169   :  { %v3533_v4 = vpop.permute.xlu1 %516 }
 0x16a   :  { %5458 = vst [vmem:[#allocation32_spill] sm:$0xff] %v3533_v4  ;;  %2840 = vset.pattern.permute.xlu1 %v5459_v39  ;;  %v5466_v39 = vmov 7  }
 0x16b   :  { %v3536_v61 = vpop.permute.xlu0 %497  ;;  %1055 = vperm.xlu1 %2840, %v3504_v45  }
 0x16c   :  { %5460 = vst [vmem:[#allocation33_spill] sm:$0xff] %v3536_v61  ;;  %v93_v61 = vadd.f32 %v90_v53, %v69_v26 }
 0x16d   :  { %v3539_v9 = vpop.permute.xlu1 %520 }
 0x16e   :  { %5461 = vst [vmem:[#allocation34_spill] sm:$0xff] %v3539_v9 }
 0x16f   :  { %v3541_v50 = vpop.permute.xlu0 %518  ;;  %2841 = vset.pattern.permute.xlu1 %v5463_v46  ;;  %v92_v46 = vmul.f32 %v3208_v37, %v3205_v63  ;;  %v155_v37 = vsel %vm154_vm0, %v3343_v32, %v3348_v35 }
 0x170   :  { %5462 = vst [vmem:[#allocation35_spill] sm:$0xff] %v3541_v50  ;;  %1076 = vperm.xlu1 %2841, %v3504_v45  }
 0x171   :  { %v3545_v0 = vpop.permute.xlu1 %543  ;;  %v95_v9 = vadd.f32 %v92_v46, %v71_v49  ;;  %v134_v49 = vmul.f32 %v3233_v3, %v3179_v47  ;;  %v203_v46 = vsel %vm154_vm0, %v3365_v20, %v3379_v52 }
 0x172   :  { %5464 = vst [vmem:[#allocation36_spill] sm:$0xff] %v3545_v0  ;;  %v111_v0 = vmul.f32 0.0, %v3172_v42 }
 0x173   :  { %v3549_v41 = vpop.permute.xlu0 %541 }
 0x174   :  { %5465 = vst [vmem:[#allocation37_spill] sm:$0xff] %v3549_v41  ;;  %2843 = vset.pattern.permute.xlu1 %v5466_v39  ;;  %v114_v43 = vadd.f32 %v111_v0, %v93_v61  ;;  %v113_v39 = vmul.f32 %v3211_v38, %v3172_v42  ;;  %v179_v0 = vsel %vm154_vm0, %v3362_v44, %v3356_v30 }
 0x175   :  { %v3552_v57 = vpop.permute.xlu1 %565 }
 0x176   :  { %5467 = vst [vmem:[#allocation38_spill] sm:$0xff] %v3552_v57  ;;  %v135_v53 = vadd.f32 %v132_v55, %v114_v43  ;;  %v116_v26 = vadd.f32 %v113_v39, %v95_v9  ;;  %v227_v9 = vsel %vm154_vm0, %v3388_v60, %v3384_v18  ;;  %v252_v55 = vsel %vm251_vm1, %v3391_v51, %v3404_v54 }
 0x177   :  { %v3558_v45 = vpop.permute.xlu0 %545 }
 0x178   :  { %v160_v61 = vadd.f32 %v155_v37, %v135_v53  ;;  %v137_v42 = vadd.f32 %v134_v49, %v116_v26  ;;  %v276_v26 = vsel %vm251_vm1, %v3415_v25, %v3410_v31 }
 0x179   :  { %v3561_v50 = vpop.permute.xlu1 %569 }
 0x17a   :  { %v184_v32 = vadd.f32 %v179_v0, %v160_v61  ;;  %v162_v44 = vadd.f32 %v3353_v2, %v137_v42  ;;  %v300_v42 = vsel %vm251_vm1, %v3418_v33, %v3434_v40 }
 0x17b   :  { %v3563_v6 = vpop.permute.xlu0 %567 }
 0x17c   :  { %v208_v39 = vadd.f32 %v203_v46, %v184_v32  ;;  %v186_v20 = vadd.f32 %v3369_v22, %v162_v44  ;;  %v324_v46 = vsel %vm251_vm1, %v3443_v23, %v3438_v27  ;;  %v349_v44 = vsel %vm348_vm2, %v3446_v10, %v3462_v21 }
 0x17d   :  { %v3568_v56 = vpop.permute.xlu1 %591  ;;  %v397_v23 = vsel %vm348_vm2, %v3474_v13, %v3490_v15  ;;  %v421_v10 = vsel %vm348_vm2, %v3499_v7, %v3495_v58 }
 0x17e   :  { %v232_v37 = vadd.f32 %v227_v9, %v208_v39  ;;  %v210_v49 = vadd.f32 %v3375_v48, %v186_v20 }
 0x17f   :  { %v3573_v63 = vpop.permute.xlu0 %589 }
 0x180   :  { %5468 = vst [vmem:[#allocation39_spill] sm:$0xff] %v3573_v63  ;;  %v257_v0 = vadd.f32 %v252_v55, %v232_v37  ;;  %v234_v32 = vadd.f32 %v3395_v16, %v210_v49  ;;  %v373_v55 = vsel %vm348_vm2, %v3471_v8, %v3466_v19 }
 0x181   :  { %v3580_v38 = vpop.permute.xlu1 %613 }
 0x182   :  { %5469 = vst [vmem:[#allocation40_spill] sm:$0xff] %v3580_v38  ;;  %v281_v61 = vadd.f32 %v276_v26, %v257_v0  ;;  %v259_v20 = vadd.f32 %v3400_v14, %v234_v32 }
 0x183   :  { %v3585_v43 = vpop.permute.xlu0 %593 }
 0x184   :  { %v305_v25 = vadd.f32 %v300_v42, %v281_v61  ;;  %v283_v0 = vadd.f32 %v3424_v12, %v259_v20 }
 0x185   :  { %v3591_v3 = vpop.permute.xlu1 %617 }
 0x186   :  { %v329_v33 = vadd.f32 %v324_v46, %v305_v25  ;;  %v307_v8 = vadd.f32 %v3428_v62, %v283_v0 }
 0x187   :  { %v3597_v53 = vpop.permute.xlu0 %615 }
 0x188   :  { %v354_v37 = vadd.f32 %v349_v44, %v329_v33  ;;  %v331_v44 = vadd.f32 %v3452_v17, %v307_v8 }
 0x189   :  { %v3602_v60 = vpop.permute.xlu1 %640 }
 0x18a   :  { %v378_v42 = vadd.f32 %v373_v55, %v354_v37  ;;  %v356_v20 = vadd.f32 %v3456_v29, %v331_v44 }
 0x18b   :  { %v3608_v51 = vpop.permute.xlu0 %638 }
 0x18c   :  { %v402_v61 = vadd.f32 %v397_v23, %v378_v42  ;;  %v380_v7 = vadd.f32 %v3480_v11, %v356_v20 }
 0x18d   :  { %v3614_v9 = vpop.permute.xlu1 %662 }
 0x18e   :  { %v426_v32 = vadd.f32 %v421_v10, %v402_v61  ;;  %v404_v61 = vadd.f32 %v3484_v36, %v380_v7  ;;  %v5471_v7 = vld [vmem:[#allocation31_spill] sm:$0xff] }
 0x18f   :  { %v643_v39 = vpop.permute.xlu0 %642 }
 0x190   :  { %v446_v33 = vadd.f32 %v3506_v24, %v426_v32  ;;  %v428_v32 = vadd.f32 %v3509_v5, %v404_v61  ;;  %v5472_v61 = vld [vmem:[#allocation34_spill] sm:$0xff]  ;;  %v5473_v5 = vld [vmem:[#allocation35_spill] sm:$0xff] }
 0x191   :  { %v667_v26 = vpop.permute.xlu1 %666 }
 0x192   :  { %v465_v23 = vadd.f32 %v3513_v28, %v446_v33  ;;  %v448_v33 = vadd.f32 %v3516_v34, %v428_v32 }
 0x193   :  { %v3627_v49 = vpop.permute.xlu0 %664 }
 0x194   :  { %v484_v0 = vadd.f32 %v3519_v59, %v465_v23  ;;  %v5470_v23 = vld [vmem:[#allocation29_spill] sm:$0xff] }
 0x195   :  { %v3632_v46 = vpop.permute.xlu1 %688  ;;  %v467_v59 = vadd.f32 %v5470_v23, %v448_v33  ;;  %v5475_v33 = vld [vmem:[#allocation36_spill] sm:$0xff] }
 0x196   :  { %v503_v8 = vadd.f32 %v3526_v1, %v484_v0 }
 0x197   :  { %v3635_v25 = vpop.permute.xlu0 %686  ;;  %v486_v36 = vadd.f32 %v5471_v7, %v467_v59 }
 0x198   :  { %v528_v44 = vadd.f32 %v3533_v4, %v503_v8  ;;  %v524_v8 = vsel %vm522_vm3, %v5473_v5, %v5472_v61  ;;  %v5474_v4 = vld [vmem:[#allocation33_spill] sm:$0xff] }
 0x199   :  { %v3638_v13 = vpop.permute.xlu1 %710  ;;  %v505_v19 = vadd.f32 %v5474_v4, %v486_v36 }
 0x19a   :  { %v552_v20 = vadd.f32 %v3549_v41, %v528_v44  ;;  %v548_v41 = vsel %vm522_vm3, %v5475_v33, %v3558_v45 }
 0x19b   :  { %v691_v55 = vpop.permute.xlu0 %690  ;;  %v530_v23 = vadd.f32 %v524_v8, %v505_v19  ;;  %v621_v8 = vsel %vm619_vm4, %v3597_v53, %v3591_v3 }
 0x19c   :  { %v576_v0 = vadd.f32 %v3552_v57, %v552_v20  ;;  %v572_v20 = vsel %vm522_vm3, %v3563_v6, %v3561_v50 }
 0x19d   :  { %v715_v37 = vpop.permute.xlu1 %714  ;;  %v554_v57 = vadd.f32 %v548_v41, %v530_v23  ;;  %v645_v41 = vsel %vm619_vm4, %v3602_v60, %v643_v39 }
 0x19e   :  { %v600_v32 = vadd.f32 %v3573_v63, %v576_v0  ;;  %v596_v0 = vsel %vm522_vm3, %v3568_v56, %v3585_v43 }
 0x19f   :  { %v3644_v42 = vpop.permute.xlu0 %712  ;;  %v578_v63 = vadd.f32 %v572_v20, %v554_v57  ;;  %v669_v57 = vsel %vm619_vm4, %v3627_v49, %v667_v26 }
 0x1a0   :  { %v625_v61 = vadd.f32 %v3580_v38, %v600_v32  ;;  %v718_v39 = vsel %vm716_vm5, %v3644_v42, %v715_v37 }
 0x1a1   :  { %v3647_v10 = vpop.permute.xlu1 %737  ;;  %v602_v33 = vadd.f32 %v596_v0, %v578_v63  ;;  %v693_v63 = vsel %vm619_vm4, %v3632_v46, %v691_v55 }
 0x1a2   :  { %v649_v45 = vadd.f32 %v3608_v51, %v625_v61 }
 0x1a3   :  { %v3651_v58 = vpop.permute.xlu0 %735  ;;  %v627_v23 = vadd.f32 %v621_v8, %v602_v33 }
 0x1a4   :  { %v673_v32 = vadd.f32 %v3614_v9, %v649_v45 }
 0x1a5   :  { %v3655_v24 = vpop.permute.xlu1 %759  ;;  %v651_v43 = vadd.f32 %v645_v41, %v627_v23 }
 0x1a6   :  { %v697_v20 = vadd.f32 %v3635_v25, %v673_v32 }
 0x1a7   :  { %v740_v28 = vpop.permute.xlu0 %739  ;;  %v675_v3 = vadd.f32 %v669_v57, %v651_v43 }
 0x1a8   :  { %v722_v33 = vadd.f32 %v3638_v13, %v697_v20  ;;  %v742_v26 = vsel %vm716_vm5, %v3647_v10, %v740_v28 }
 0x1a9   :  { %v764_v15 = vpop.permute.xlu1 %763  ;;  %v699_v45 = vadd.f32 %v693_v63, %v675_v3 }
 0x1aa   :  { %v746_v41 = vadd.f32 %v3651_v58, %v722_v33 }
 0x1ab   :  { %v3662_v1 = vpop.permute.xlu0 %761  ;;  %v724_v8 = vadd.f32 %v718_v39, %v699_v45 }
 0x1ac   :  { %v766_v55 = vsel %vm716_vm5, %v3662_v1, %v764_v15  ;;  %v770_v43 = vadd.f32 %v3655_v24, %v746_v41 }
 0x1ad   :  { %v3669_v44 = vpop.permute.xlu1 %785  ;;  %v748_v57 = vadd.f32 %v742_v26, %v724_v8 }
 0x1af   :  { %v3674_v59 = vpop.permute.xlu0 %783  ;;  %v772_v20 = vadd.f32 %v766_v55, %v748_v57 }
 0x1b0   :  { %v794_v3 = vadd.f32 %v3674_v59, %v770_v43 }
 0x1b1   :  { %v3680_v36 = vpop.permute.xlu1 %807 }
 0x1b2   :  { %v819_v8 = vadd.f32 %v3680_v36, %v794_v3  ;;  %v5479_v3 = vld [vmem:[#allocation24_spill] sm:$0xff] }
 0x1b3   :  { %v788_v19 = vpop.permute.xlu0 %787 }
 0x1b4   :  { %v790_v37 = vsel %vm716_vm5, %v3669_v44, %v788_v19 }
 0x1b5   :  { %v812_v50 = vpop.permute.xlu1 %811  ;;  %v796_v39 = vadd.f32 %v790_v37, %v772_v20 }
 0x1b7   :  { %v3692_v38 = vpop.permute.xlu0 %809 }
 0x1b8   :  { %v815_v28 = vsel %vm813_vm6, %v3692_v38, %v812_v50 }
 0x1b9   :  { %v3697_v61 = vpop.permute.xlu1 %834  ;;  %v821_v45 = vadd.f32 %v815_v28, %v796_v39  ;;  %v5480_v39 = vmov 8  }
 0x1bb   :  { %v3701_v0 = vpop.permute.xlu0 %832 }
 0x1bc   :  { %v843_v55 = vadd.f32 %v3701_v0, %v819_v8  ;;  %v5485_v8 = vmov 13  }
 0x1bd   :  { %v3709_v23 = vpop.permute.xlu1 %856 }
 0x1bf   :  { %v837_v32 = vpop.permute.xlu0 %836 }
 0x1c0   :  { %v839_v15 = vsel %vm813_vm6, %v3697_v61, %v837_v32  ;;  %v867_v32 = vadd.f32 %v3709_v23, %v843_v55  ;;  %v5487_v55 = vmov 15  }
 0x1c1   :  { %v861_v33 = vpop.permute.xlu1 %860  ;;  %v845_v41 = vadd.f32 %v839_v15, %v821_v45  ;;  %v5482_v15 = vmov 10   ;;  %v5483_v45 = vmov 11  }
 0x1c3   :  { %v3716_v63 = vpop.permute.xlu0 %858 }
 0x1c4   :  { %v863_v19 = vsel %vm813_vm6, %v3716_v63, %v861_v33  ;;  %v5481_v33 = vmov 9  }
 0x1c5   :  { %v869_v57 = vadd.f32 %v863_v19, %v845_v41  ;;  %v3729_v50 = vpop.permute.xlu1 %882  ;;  %v5484_v19 = vmov 12   ;;  %v5486_v41 = vmov 14  }
 0x1c7   :  { %v3723_v26 = vpop.permute.xlu0 %880 }
 0x1c8   :  { %5476 = vst [vmem:[#allocation31_spill] sm:$0xff] %v3723_v26  ;;  %v3739_v28 = vadd.f32 %v3723_v26, %v867_v32  ;;  %v5491_v32 = vmov 19   ;;  %v5503_v26 = vmov 28  }
 0x1ca   :  { %5478 = vst [vmem:[#allocation35_spill] sm:$0xff] %v3739_v28 }
 0x1cb   :  { %v885_v43 = vpop.permute.xlu0 %884 }
 0x1cc   :  { %v887_v37 = vsel %vm813_vm6, %v3729_v50, %v885_v43  ;;  %v5489_v43 = vmov 17  }
 0x1cd   :  { %v3733_v20 = vadd.f32 %v887_v37, %v869_v57  ;;  %v5488_v57 = vmov 16   ;;  %v5490_v37 = vmov 18  }
 0x1cf   :  { %5477 = vst [vmem:[#allocation34_spill] sm:$0xff] %v3733_v20  ;;  %912 = vrot.lane.b32.xlu1 %v3733_v20, %s3013_s19 }
 0x1d3   :  { %908 = vrot.lane.b32.xlu1 %v3739_v28, %s3013_s19 }
 0x1d7   :  { %1118 = vperm.xlu1 %2843, %v5479_v3  }
 0x1db   :  { %2844 = vset.pattern.permute.xlu1 %v5480_v39  ;;  %v5492_v39 = vmov 21  }
 0x1dc   :  { %1139 = vperm.xlu1 %2844, %v5479_v3  }
 0x1e0   :  { %2845 = vset.pattern.permute.xlu1 %v5481_v33  ;;  %v5493_v33 = vmov 22  }
 0x1e1   :  { %1163 = vperm.xlu1 %2845, %v5479_v3  }
 0x1e5   :  { %2846 = vset.pattern.permute.xlu1 %v5482_v15  ;;  %v5494_v15 = vmov 24  }
 0x1e6   :  { %1187 = vperm.xlu1 %2846, %v5479_v3  }
 0x1ea   :  { %2847 = vset.pattern.permute.xlu1 %v5483_v45  ;;  %v5495_v45 = vmov 25  }
 0x1eb   :  { %1211 = vperm.xlu1 %2847, %v5479_v3  }
 0x1ef   :  { %2848 = vset.pattern.permute.xlu1 %v5484_v19  ;;  %v5496_v19 = vld [vmem:[#allocation13_spill] sm:$0xff] }
 0x1f0   :  { %1235 = vperm.xlu1 %2848, %v5479_v3  }
 0x1f4   :  { %2849 = vset.pattern.permute.xlu1 %v5485_v8  ;;  %v5497_v8 = vld [vmem:[#allocation11_spill] sm:$0xff] }
 0x1f5   :  { %1259 = vperm.xlu1 %2849, %v5479_v3  }
 0x1f9   :  { %2850 = vset.pattern.permute.xlu1 %v5486_v41  ;;  %v70_v41 = vmul.f32 %v5497_v8, %v5496_v19  ;;  %v5504_v19 = vld [vmem:[#allocation19_spill] sm:$0xff] }
 0x1fa   :  { %1283 = vperm.xlu1 %2850, %v5479_v3   ;;  %v133_v8 = vmul.f32 %v5504_v19, %v3179_v47  ;;  %v204_v47 = vsel %vm154_vm0, %v3379_v52, %v3375_v48  ;;  %v277_v48 = vsel %vm251_vm1, %v3410_v31, %v3424_v12  ;;  %v350_v12 = vsel %vm348_vm2, %v3462_v21, %v3456_v29  ;;  %v5513_v29 = vld [vmem:[#allocation23_spill] sm:$0xff] }
 0x1fb   :  { %v5508_v19 = vmov 34  }
 0x1fe   :  { %2851 = vset.pattern.permute.xlu1 %v5487_v55  ;;  %v5498_v55 = vld [vmem:[#allocation16_spill] sm:$0xff] }
 0x1ff   :  { %1307 = vperm.xlu1 %2851, %v5479_v3  }
 0x203   :  { %2852 = vset.pattern.permute.xlu1 %v5488_v57  ;;  %v5499_v57 = vld [vmem:[#allocation14_spill] sm:$0xff] }
 0x204   :  { %1331 = vperm.xlu1 %2852, %v5479_v3  }
 0x208   :  { %2853 = vset.pattern.permute.xlu1 %v5489_v43  ;;  %v91_v43 = vmul.f32 %v5499_v57, %v5498_v55  ;;  %v156_v55 = vsel %vm154_vm0, %v3348_v35, %v3353_v2  ;;  %v228_v35 = vsel %vm154_vm0, %v3384_v18, %v3395_v16  ;;  %v301_v16 = vsel %vm251_vm1, %v3434_v40, %v3428_v62  ;;  %v5509_v62 = vld [vmem:[#allocation20_spill] sm:$0xff] }
 0x209   :  { %1355 = vperm.xlu1 %2853, %v5479_v3   ;;  %v5507_v18 = vmov 33   ;;  %v374_v40 = vsel %vm348_vm2, %v5509_v62, %v3480_v11  ;;  %v5514_v11 = vld [vmem:[#allocation25_spill] sm:$0xff]  ;;  %v3016_v62 = vmov 39  }
 0x20d   :  { %2854 = vset.pattern.permute.xlu1 %v5490_v37  ;;  %v3780_v37 = vpop.permute.xlu1 %961 }
 0x20e   :  { %1379 = vperm.xlu1 %2854, %v5479_v3  }
 0x211   :  { %v3786_v28 = vpop.permute.xlu1 %983 }
 0x212   :  { %2855 = vset.pattern.permute.xlu1 %v5491_v32  ;;  %v5500_v32 = vmov 27  }
 0x213   :  { %1403 = vperm.xlu1 %2855, %v5479_v3  }
 0x215   :  { %v3795_v57 = vpop.permute.xlu1 %1001 }
 0x217   :  { %2857 = vset.pattern.permute.xlu1 %v5492_v39  ;;  %v94_v39 = vadd.f32 %v91_v43, %v70_v41  ;;  %v180_v43 = vsel %vm154_vm0, %v3356_v30, %v3369_v22  ;;  %v253_v30 = vsel %vm251_vm1, %v3404_v54, %v3400_v14  ;;  %v325_v14 = vsel %vm251_vm1, %v3438_v27, %v3452_v17 }
 0x218   :  { %1451 = vperm.xlu1 %2857, %v5479_v3  }
 0x21c   :  { %2858 = vset.pattern.permute.xlu1 %v5493_v33  ;;  %v5501_v33 = vld [vmem:[#allocation8_spill] sm:$0xff] }
 0x21d   :  { %1475 = vperm.xlu1 %2858, %v5479_v3  }
 0x221   :  { %2860 = vset.pattern.permute.xlu1 %v5494_v15  ;;  %v5502_v15 = vld [vmem:[#allocation18_spill] sm:$0xff] }
 0x222   :  { %1523 = vperm.xlu1 %2860, %v5479_v3   ;;  %v112_v20 = vmul.f32 %v5502_v15, %v5501_v33  ;;  %v5506_v33 = vmov 31  }
 0x226   :  { %2861 = vset.pattern.permute.xlu1 %v5495_v45  ;;  %v115_v45 = vadd.f32 %v112_v20, %v94_v39  ;;  %v3808_v39 = vpop.permute.xlu1 %1019 }
 0x227   :  { %1547 = vperm.xlu1 %2861, %v5479_v3  }
 0x228   :  { %v136_v41 = vadd.f32 %v133_v8, %v115_v45 }
 0x22a   :  { %v161_v20 = vadd.f32 %v156_v55, %v136_v41  ;;  %v3822_v45 = vpop.permute.xlu1 %1055  ;;  %v5510_v41 = vld [vmem:[#allocation21_spill] sm:$0xff] }
 0x22b   :  { %2863 = vset.pattern.permute.xlu1 %v5500_v32  ;;  %v5505_v32 = vmov 30  }
 0x22c   :  { %1595 = vperm.xlu1 %2863, %v5479_v3  }
 0x22e   :  { %v3836_v55 = vpop.permute.xlu1 %1076 }
 0x230   :  { %2864 = vset.pattern.permute.xlu1 %v5503_v26  ;;  %v185_v26 = vadd.f32 %v180_v43, %v161_v20  ;;  %v5511_v43 = vld [vmem:[#allocation22_spill] sm:$0xff]  ;;  %v3014_v20 = vmov 36  }
 0x231   :  { %1619 = vperm.xlu1 %2864, %v5479_v3   ;;  %v398_v17 = vsel %vm348_vm2, %v5511_v43, %v5510_v41 }
 0x232   :  { %v209_v2 = vadd.f32 %v204_v47, %v185_v26  ;;  %v442_v26 = vsel %vm441_vm7, %v5514_v11, %v3516_v34 }
 0x234   :  { %v233_v22 = vadd.f32 %v228_v35, %v209_v2 }
 0x235   :  { %2866 = vset.pattern.permute.xlu1 %v5505_v32  ;;  %v5512_v32 = vld [vmem:[#allocation26_spill] sm:$0xff] }
 0x236   :  { %1667 = vperm.xlu1 %2866, %v5479_v3   ;;  %v258_v52 = vadd.f32 %v253_v30, %v233_v22  ;;  %v422_v21 = vsel %vm348_vm2, %v5513_v29, %v5512_v32  ;;  %v5516_v30 = vld [vmem:[#allocation27_spill] sm:$0xff]  ;;  %v3017_v29 = vmov 40  }
 0x238   :  { %v282_v15 = vadd.f32 %v277_v48, %v258_v52  ;;  %v3015_v52 = vmov 37  }
 0x23a   :  { %2867 = vset.pattern.permute.xlu1 %v5506_v33  ;;  %v306_v54 = vadd.f32 %v301_v16, %v282_v15  ;;  %v5515_v33 = vld [vmem:[#allocation29_spill] sm:$0xff]  ;;  %v5517_v16 = vld [vmem:[#allocation28_spill] sm:$0xff] }
 0x23b   :  { %1691 = vperm.xlu1 %2867, %v5479_v3   ;;  %v461_v22 = vsel %vm441_vm7, %v5516_v30, %v5515_v33  ;;  %v3018_v30 = vmov 42  }
 0x23c   :  { %v330_v31 = vadd.f32 %v325_v14, %v306_v54  ;;  %v5518_v14 = vld [vmem:[#allocation30_spill] sm:$0xff] }
 0x23d   :  { %v499_v34 = vsel %vm441_vm7, %v5518_v14, %v5474_v4  ;;  %v5522_v4 = vld [vmem:[#allocation38_spill] sm:$0xff]  ;;  %v765_v14 = vsel %vm716_vm5, %v3655_v24, %v3662_v1 }
 0x23e   :  { %v355_v8 = vadd.f32 %v350_v12, %v330_v31  ;;  %v5519_v31 = vld [vmem:[#allocation32_spill] sm:$0xff] }
 0x23f   :  { %2869 = vset.pattern.permute.xlu1 %v5507_v18  ;;  %v480_v18 = vsel %vm441_vm7, %v5517_v16, %v5471_v7  ;;  %v5520_v7 = vld [vmem:[#allocation36_spill] sm:$0xff]  ;;  %v3019_v16 = vmov 43  }
 0x240   :  { %1734 = vperm.xlu1 %2869, %v5479_v3   ;;  %v379_v27 = vadd.f32 %v374_v40, %v355_v8  ;;  %v5521_v8 = vld [vmem:[#allocation37_spill] sm:$0xff] }
 0x241   :  { %v3848_v2 = vpop.permute.xlu1 %912  ;;  %v547_v41 = vsel %vm522_vm3, %v5521_v8, %v5520_v7  ;;  %v3022_v8 = vmov 48  }
 0x242   :  { %v403_v47 = vadd.f32 %v398_v17, %v379_v27  ;;  %v571_v27 = vsel %vm522_vm3, %v5522_v4, %v3563_v6  ;;  %v644_v6 = vsel %vm619_vm4, %v3608_v51, %v3602_v60  ;;  %v3024_v4 = vmov 51  }
 0x244   :  { %2870 = vset.pattern.permute.xlu1 %v5508_v19  ;;  %v427_v35 = vadd.f32 %v422_v21, %v403_v47  ;;  %v523_v19 = vsel %vm522_vm3, %v5519_v31, %v5473_v5  ;;  %v5523_v5 = vld [vmem:[#allocation39_spill] sm:$0xff]  ;;  %v5524_v47 = vld [vmem:[#allocation40_spill] sm:$0xff]  ;;  %v3021_v31 = vmov 46  }
 0x245   :  { %1753 = vperm.xlu1 %2870, %v5479_v3   ;;  %v3860_v12 = vpop.permute.xlu1 %908  ;;  %v595_v21 = vsel %vm522_vm3, %v5523_v5, %v3568_v56  ;;  %v620_v11 = vsel %vm619_vm4, %v5524_v47, %v3597_v53  ;;  %v668_v56 = vsel %vm619_vm4, %v3614_v9, %v3627_v49  ;;  %v741_v49 = vsel %vm716_vm5, %v3651_v58, %v3647_v10 }
 0x246   :  { %v447_v48 = vadd.f32 %v442_v26, %v427_v35  ;;  %v789_v58 = vsel %vm716_vm5, %v3674_v59, %v3669_v44  ;;  %v862_v59 = vsel %vm813_vm6, %v3709_v23, %v3716_v63  ;;  %v3023_v63 = vmov 49  }
 0x248   :  { %v466_v15 = vadd.f32 %v461_v22, %v447_v48 }
 0x249   :  { %2872 = vset.pattern.permute.xlu1 %v3014_v20 }
 0x24a   :  { %1791 = vperm.xlu1 %2872, %v5479_v3   ;;  %v485_v54 = vadd.f32 %v480_v18, %v466_v15  ;;  %v717_v18 = vsel %vm716_vm5, %v3638_v13, %v3644_v42 }
 0x24c   :  { %v504_v40 = vadd.f32 %v499_v34, %v485_v54  ;;  %v3020_v34 = vmov 45   ;;  %v814_v54 = vsel %vm813_vm6, %v3680_v36, %v3692_v38 }
 0x24e   :  { %2873 = vset.pattern.permute.xlu1 %v3015_v52  ;;  %v529_v43 = vadd.f32 %v523_v19, %v504_v40  ;;  %v692_v52 = vsel %vm619_vm4, %v3635_v25, %v3632_v46  ;;  %v838_v19 = vsel %vm813_vm6, %v3701_v0, %v3697_v61  ;;  %v5525_v40 = vld [vmem:[#allocation31_spill] sm:$0xff] }
 0x24f   :  { %1810 = vperm.xlu1 %2873, %v5479_v3   ;;  %v886_v7 = vsel %vm813_vm6, %v5525_v40, %v3729_v50 }
 0x250   :  { %v553_v32 = vadd.f32 %v547_v41, %v529_v43 }
 0x252   :  { %v577_v20 = vadd.f32 %v571_v27, %v553_v32 }
 0x253   :  { %2875 = vset.pattern.permute.xlu1 %v3016_v62 }
 0x254   :  { %1848 = vperm.xlu1 %2875, %v5479_v3   ;;  %v601_v35 = vadd.f32 %v595_v21, %v577_v20  ;;  %v3026_v20 = vmov 53  }
 0x256   :  { %v3869_v17 = vpop.permute.xlu1 %1118  ;;  %v626_v22 = vadd.f32 %v620_v11, %v601_v35  ;;  %v3027_v35 = vmov 54  }
 0x258   :  { %2876 = vset.pattern.permute.xlu1 %v3017_v29  ;;  %v650_v53 = vadd.f32 %v644_v6, %v626_v22  ;;  %v3025_v29 = vmov 52   ;;  %v3029_v22 = vmov 56  }
 0x259   :  { %1867 = vperm.xlu1 %2876, %v5479_v3  }
 0x25a   :  { %v674_v51 = vadd.f32 %v668_v56, %v650_v53  ;;  %v5526_v56 = vmov 23   ;;  %v3030_v53 = vmov 57  }
 0x25b   :  { %v3881_v26 = vpop.permute.xlu1 %1139 }
 0x25c   :  { %v1142_v33 = vmul.f32 0.0, %v3881_v26  ;;  %v698_v9 = vadd.f32 %v692_v52, %v674_v51  ;;  %v5527_v52 = vmov 26   ;;  %v5528_v51 = vmov 29  }
 0x25d   :  { %2878 = vset.pattern.permute.xlu1 %v3018_v30  ;;  %v3028_v30 = vmov 55  }
 0x25e   :  { %1148 = vrot.lane.b32.xlu0 %v1142_v33, %s3005_s0  ;;  %1915 = vperm.xlu1 %2878, %v5479_v3   ;;  %v723_v46 = vadd.f32 %v717_v18, %v698_v9  ;;  %v5529_v18 = vmov 32   ;;  %v3033_v9 = vmov 60  }
 0x260   :  { %v3892_v48 = vpop.permute.xlu1 %1163  ;;  %v747_v13 = vadd.f32 %v741_v49, %v723_v46  ;;  %v5530_v49 = vmov 35   ;;  %v3034_v46 = vmov 61  }
 0x261   :  { %v1166_v60 = vmul.f32 0.0, %v3892_v48 }
 0x262   :  { %2879 = vset.pattern.permute.xlu1 %v3019_v16  ;;  %v771_v42 = vadd.f32 %v765_v14, %v747_v13  ;;  %v3032_v16 = vmov 59   ;;  %v3036_v14 = vmov 62   ;;  %v3038_v13 = vmov 63  }
 0x263   :  { %1172 = vrot.lane.b32.xlu0 %v1166_v60, %s3005_s0  ;;  %1939 = vperm.xlu1 %2879, %v5479_v3   ;;  %v3031_v60 = vmov 58  }
 0x264   :  { %v795_v24 = vadd.f32 %v789_v58, %v771_v42  ;;  %v3039_v58 = vmov 44   ;;  %v3040_v42 = vmov 64  }
 0x265   :  { %v3906_v15 = vpop.permute.xlu1 %1187 }
 0x266   :  { %v1190_v25 = vmul.f32 0.0, %v3906_v15  ;;  %v820_v44 = vadd.f32 %v814_v54, %v795_v24  ;;  %v3041_v54 = vmov 65   ;;  %v3997_v24 = vpop.permute.xlu0 %1037 }
 0x267   :  { %2881 = vset.pattern.permute.xlu1 %v3020_v34  ;;  %v3037_v34 = vmov 41  }
 0x268   :  { %1196 = vrot.lane.b32.xlu0 %v1190_v25, %s3005_s0  ;;  %1987 = vperm.xlu1 %2881, %v5479_v3   ;;  %v844_v38 = vadd.f32 %v838_v19, %v820_v44  ;;  %v3035_v25 = vmov 38  }
 0x26a   :  { %v3917_v10 = vpop.permute.xlu1 %1211  ;;  %v868_v61 = vadd.f32 %v862_v59, %v844_v38  ;;  %v4008_v59 = vld [vmem:[%s5288_s4] sm:$0x3] }
 0x26b   :  { %v1214_v1 = vmul.f32 0.0, %v3917_v10  ;;  %vm36_vm8 = vcmp.gt.f32.partialorder %v4008_v59, 0.0 }
 0x26c   :  { %2882 = vset.pattern.permute.xlu1 %v3021_v31  ;;  %v3939_v0 = vadd.f32 %v886_v7, %v868_v61  ;;  %v3999_v31 = vpop.permute.xlu0 %1097 }
 0x26d   :  { %1220 = vrot.lane.b32.xlu0 %v1214_v1, %s3005_s0  ;;  %2011 = vperm.xlu1 %2882, %v5479_v3   ;;  %v5531_v1 = vmov 2  }
 0x26f   :  { %v3931_v62 = vpop.permute.xlu1 %1235 }
 0x270   :  { %v1238_v36 = vmul.f32 0.0, %v3931_v62 }
 0x271   :  { %2884 = vset.pattern.permute.xlu1 %v3022_v8  ;;  %v5536_v8 = vmov 0  }
 0x272   :  { %1244 = vrot.lane.b32.xlu0 %v1238_v36, %s3005_s0  ;;  %2059 = vperm.xlu1 %2884, %v5479_v3   ;;  %v894_v61 = vsel %vm36_vm8, 1, %v5536_v8 }
 0x274   :  { %v3941_v41 = vpop.permute.xlu1 %1259 }
 0x275   :  { %v1262_v23 = vmul.f32 0.0, %v3941_v41 }
 0x276   :  { %910 = vrot.lane.b32.xlu0 %v3939_v0, %s3013_s19  ;;  %2885 = vset.pattern.permute.xlu1 %v3023_v63 }
 0x277   :  { %2083 = vperm.xlu1 %2885, %v5479_v3  }
 0x279   :  { %v3947_v50 = vpop.permute.xlu1 %1283 }
 0x27a   :  { %1268 = vrot.lane.b32.xlu0 %v1262_v23, %s3005_s0  ;;  %v1286_v43 = vmul.f32 0.0, %v3947_v50  ;;  %v5537_v23 = vld [vmem:[#allocation10_spill] sm:$0xff] }
 0x27b   :  { %2887 = vset.pattern.permute.xlu1 %v3024_v4  ;;  %v898_v63 = vrot.slane %v894_v61, %v5537_v23 }
 0x27c   :  { %2131 = vperm.xlu1 %2887, %v5479_v3  }
 0x27d   :  { %vm4026_vm10 = vcmp.eq.s32.totalorder %v898_v63, 1 }
 0x27e   :  { %1292 = vrot.lane.b32.xlu0 %v1286_v43, %s3005_s0  ;;  %v3953_v27 = vpop.permute.xlu1 %1307  ;;  %v5538_v43 = vld [vmem:[#allocation12_spill] sm:$0xff] }
 0x27f   :  { %v1310_v32 = vmul.f32 0.0, %v3953_v27  ;;  %v902_v4 = vrot.slane %v894_v61, %v5538_v43 }
 0x280   :  { %2888 = vset.pattern.permute.xlu1 %v3025_v29 }
 0x281   :  { %2155 = vperm.xlu1 %2888, %v5479_v3   ;;  %vm4030_vm11 = vcmp.eq.s32.totalorder %v902_v4, 1 }
 0x282   :  { %1316 = vrot.lane.b32.xlu0 %v1310_v32, %s3005_s0 }
 0x283   :  { %v3958_v5 = vpop.permute.xlu1 %1331 }
 0x284   :  { %v1334_v21 = vmul.f32 0.0, %v3958_v5 }
 0x285   :  { %2889 = vset.pattern.permute.xlu1 %v3026_v20  ;;  %v5543_v20 = vmov 0 }
 0x286   :  { %1340 = vrot.lane.b32.xlu0 %v1334_v21, %s3006_s1  ;;  %2179 = vperm.xlu1 %2889, %v5479_v3   ;;  %v5540_v21 = vmov 0  ;;  %v5544_v20 = vsel %vm4030_vm11, 4294967295, %v5543_v20 }
 0x287   :  { %v5541_v21 = vsel %vm4026_vm10, 4294967295, %v5540_v21  ;;  %5545 = vst [vmem:[#allocation8_spill] sm:$0xff] %v5544_v20 }
 0x288   :  { %v3963_v47 = vpop.permute.xlu1 %1355  ;;  %5542 = vst [vmem:[#allocation14_spill] sm:$0xff] %v5541_v21 }
 0x289   :  { %v1358_v11 = vmul.f32 0.0, %v3963_v47 }
 0x28a   :  { %2890 = vset.pattern.permute.xlu1 %v3027_v35 }
 0x28b   :  { %1364 = vrot.lane.b32.xlu0 %v1358_v11, %s3006_s1  ;;  %2203 = vperm.xlu1 %2890, %v5479_v3  }
 0x28d   :  { %v3968_v33 = vpop.permute.xlu1 %1379 }
 0x28e   :  { %v1382_v6 = vmul.f32 0.0, %v3968_v33 }
 0x28f   :  { %2891 = vset.pattern.permute.xlu1 %v3028_v30 }
 0x290   :  { %1388 = vrot.lane.b32.xlu0 %v1382_v6, %s3006_s1  ;;  %2227 = vperm.xlu1 %2891, %v5479_v3  }
 0x292   :  { %v4012_v36 = vpop.permute.xlu1 %1403 }
 0x294   :  { %1427 = vperm.xlu0 %2856, %v5479_v3   ;;  %2892 = vset.pattern.permute.xlu1 %v3029_v22 }
 0x295   :  { %2251 = vperm.xlu1 %2892, %v5479_v3  }
 0x297   :  { %v4015_v40 = vpop.permute.xlu1 %1451 }
 0x298   :  { %2859 = vset.pattern.permute.xlu0 %v5526_v56  ;;  %v1454_v63 = vmul.f32 0.0, %v4015_v40 }
 0x299   :  { %1499 = vperm.xlu0 %2859, %v5479_v3   ;;  %2893 = vset.pattern.permute.xlu1 %v3030_v53 }
 0x29a   :  { %2275 = vperm.xlu1 %2893, %v5479_v3  }
 0x29c   :  { %v4024_v29 = vpop.permute.xlu1 %1475 }
 0x29d   :  { %2862 = vset.pattern.permute.xlu0 %v5527_v52 }
 0x29e   :  { %1571 = vperm.xlu0 %2862, %v5479_v3   ;;  %2894 = vset.pattern.permute.xlu1 %v3031_v60 }
 0x29f   :  { %2299 = vperm.xlu1 %2894, %v5479_v3  }
 0x2a1   :  { %v4034_v35 = vpop.permute.xlu1 %1523 }
 0x2a2   :  { %2865 = vset.pattern.permute.xlu0 %v5528_v51 }
 0x2a3   :  { %1643 = vperm.xlu0 %2865, %v5479_v3   ;;  %2895 = vset.pattern.permute.xlu1 %v3032_v16 }
 0x2a4   :  { %2323 = vperm.xlu1 %2895, %v5479_v3  }
 0x2a6   :  { %v4044_v52 = vpop.permute.xlu1 %1547 }
 0x2a7   :  { %2868 = vset.pattern.permute.xlu0 %v5529_v18 }
 0x2a8   :  { %1715 = vperm.xlu0 %2868, %v5479_v3   ;;  %2896 = vset.pattern.permute.xlu1 %v3033_v9 }
 0x2a9   :  { %2347 = vperm.xlu1 %2896, %v5479_v3  }
 0x2ab   :  { %v4048_v51 = vpop.permute.xlu1 %1595 }
 0x2ac   :  { %2871 = vset.pattern.permute.xlu0 %v5530_v49 }
 0x2ad   :  { %1772 = vperm.xlu0 %2871, %v5479_v3   ;;  %2897 = vset.pattern.permute.xlu1 %v3034_v46  ;;  %v3042_v46 = vmov 47  }
 0x2ae   :  { %2371 = vperm.xlu1 %2897, %v5479_v3  }
 0x2b1   :  { %2874 = vset.pattern.permute.xlu0 %v3035_v25 }
 0x2b2   :  { %1829 = vperm.xlu0 %2874, %v5479_v3   ;;  %2898 = vset.pattern.permute.xlu1 %v3036_v14 }
 0x2b3   :  { %2395 = vperm.xlu1 %2898, %v5479_v3  }
 0x2b6   :  { %2877 = vset.pattern.permute.xlu0 %v3037_v34  ;;  %v3043_v34 = vmov 50  }
 0x2b7   :  { %1891 = vperm.xlu0 %2877, %v5479_v3   ;;  %2899 = vset.pattern.permute.xlu1 %v3038_v13 }
 0x2b8   :  { %2419 = vperm.xlu1 %2899, %v5479_v3  }
 0x2bb   :  { %2880 = vset.pattern.permute.xlu0 %v3039_v58  ;;  %v1406_v58 = vmul.f32 0.0, %v4012_v36 }
 0x2bc   :  { %2900 = vset.pattern.permute.xlu1 %v3040_v42 }
 0x2bd   :  { %2443 = vperm.xlu1 %2900, %v5479_v3  }
 0x2c1   :  { %2901 = vset.pattern.permute.xlu1 %v3041_v54  ;;  %v3044_v54 = vmov 66  }
 0x2c2   :  { %2467 = vperm.xlu1 %2901, %v5479_v3  }
 0x2c6   :  { %2909 = vset.pattern.permute.xlu1 %v5531_v1 }
 0x2d0   :  { %v4001_v19 = vpop.permute.xlu0 %1148 }
 0x2d1   :  { %5532 = vst [vmem:[#allocation33_spill] sm:$0xff] %v4001_v19 }
 0x2d5   :  { %v4003_v44 = vpop.permute.xlu0 %1172 }
 0x2d6   :  { %5533 = vst [vmem:[#allocation24_spill] sm:$0xff] %v4003_v44  ;;  %v3049_v44 = vmov 71  }
 0x2da   :  { %v4010_v38 = vpop.permute.xlu0 %1196 }
 0x2db   :  { %5534 = vst [vmem:[#allocation13_spill] sm:$0xff] %v4010_v38 }
 0x2df   :  { %v4017_v7 = vpop.permute.xlu0 %1220 }
 0x2e0   :  { %5535 = vst [vmem:[#allocation11_spill] sm:$0xff] %v4017_v7  ;;  %v3047_v7 = vmov 69  }
 0x2e4   :  { %v4022_v32 = vpop.permute.xlu0 %1244 }
 0x2e5   :  { %5539 = vst [vmem:[#allocation16_spill] sm:$0xff] %v4022_v32 }
 0x2e8   :  { %v911_v11 = vpop.permute.xlu0 %910 }
 0x2e9   :  { %v915_v6 = vsel %vm914_vm9, %v3860_v12, %v911_v11  ;;  %v916_v30 = vsel %vm914_vm9, %v911_v11, %v3848_v2  ;;  %v4052_v12 = vpop.permute.xlu1 %1619 }
 0x2ea   :  { %v919_v22 = vsel %vm4026_vm10, %v915_v6, 0.0  ;;  %v920_v56 = vsel %vm4030_vm11, %v916_v30, 0.0 }
 0x2eb   :  { %v921_v53 = vadd.f32 %v920_v56, %v919_v22  ;;  %v1526_v56 = vmul.f32 0.0, %v4034_v35 }
 0x2ec   :  { %v4046_v60 = vpop.permute.xlu0 %1268 }
 0x2ed   :  { %922 = vadd.xlane.f32.xlu0 %v921_v53  ;;  %5546 = vst [vmem:[#allocation18_spill] sm:$0xff] %v4046_v60  ;;  %v4056_v2 = vpop.permute.xlu1 %1667 }
 0x2f0   :  { %v4050_v16 = vpop.permute.xlu0 %1292 }
 0x2f1   :  { %5547 = vst [vmem:[#allocation19_spill] sm:$0xff] %v4050_v16  ;;  %v4061_v49 = vpop.permute.xlu1 %1691 }
 0x2f2   :  { %v1694_v60 = vmul.f32 0.0, %v4061_v49 }
 0x2f4   :  { %v4054_v18 = vpop.permute.xlu0 %1316 }
 0x2f5   :  { %5548 = vst [vmem:[#allocation20_spill] sm:$0xff] %v4054_v18  ;;  %v4066_v14 = vpop.permute.xlu1 %1734 }
 0x2f8   :  { %v4058_v9 = vpop.permute.xlu0 %1340 }
 0x2f9   :  { %5549 = vst [vmem:[#allocation21_spill] sm:$0xff] %v4058_v9  ;;  %v4072_v42 = vpop.permute.xlu1 %1753 }
 0x2fa   :  { %5552 = vst [vmem:[#allocation23_spill] sm:$0xff] %v4072_v42 }
 0x2fd   :  { %v4063_v25 = vpop.permute.xlu0 %1364  ;;  %v4080_v4 = vpop.permute.xlu1 %1791 }
 0x2fe   :  { %5550 = vst [vmem:[#allocation22_spill] sm:$0xff] %v4063_v25  ;;  %5553 = vst [vmem:[#allocation25_spill] sm:$0xff] %v4080_v4 }
 0x301   :  { %v4086_v6 = vpop.permute.xlu1 %1810 }
 0x302   :  { %v4069_v13 = vpop.permute.xlu0 %1388  ;;  %5554 = vst [vmem:[#allocation29_spill] sm:$0xff] %v4086_v6 }
 0x303   :  { %1963 = vperm.xlu0 %2880, %v5479_v3   ;;  %5551 = vst [vmem:[#allocation26_spill] sm:$0xff] %v4069_v13 }
 0x305   :  { %v4094_v53 = vpop.permute.xlu1 %1848 }
 0x307   :  { %2883 = vset.pattern.permute.xlu0 %v3042_v46 }
 0x308   :  { %2035 = vperm.xlu0 %2883, %v5479_v3  }
 0x30c   :  { %2886 = vset.pattern.permute.xlu0 %v3043_v34  ;;  %v1550_v34 = vmul.f32 0.0, %v4044_v52 }
 0x30d   :  { %2107 = vperm.xlu0 %2886, %v5479_v3   ;;  %v1478_v3 = vmul.f32 0.0, %v4024_v29 }
 0x311   :  { %1412 = vrot.lane.b32.xlu0 %v1406_v58, %s3006_s1 }
 0x312   :  { %2902 = vset.pattern.permute.xlu0 %v3044_v54  ;;  %v4102_v54 = vpop.permute.xlu1 %1867 }
 0x313   :  { %v4075_v1 = vpop.permute.xlu0 %1427 }
 0x314   :  { %v1430_v61 = vmul.f32 0.0, %v4075_v1 }
 0x316   :  { %1436 = vrot.lane.b32.xlu0 %v1430_v61, %s3006_s1 }
 0x318   :  { %v4084_v11 = vpop.permute.xlu0 %1499 }
 0x319   :  { %v1502_v30 = vmul.f32 0.0, %v4084_v11 }
 0x31a   :  { %1460 = vrot.lane.b32.xlu0 %v1454_v63, %s3006_s1 }
 0x31d   :  { %v4090_v22 = vpop.permute.xlu0 %1571 }
 0x31e   :  { %1484 = vrot.lane.b32.xlu0 %v1478_v3, %s3006_s1  ;;  %v1574_v61 = vmul.f32 0.0, %v4090_v22  ;;  %v4109_v3 = vpop.permute.xlu1 %1915 }
 0x31f   :  { %5556 = vst [vmem:[#allocation28_spill] sm:$0xff] %v4109_v3 }
 0x322   :  { %1508 = vrot.lane.b32.xlu0 %v1502_v30, %s3006_s1  ;;  %v4096_v46 = vpop.permute.xlu0 %1643  ;;  %v1598_v30 = vmul.f32 0.0, %v4048_v51  ;;  %v4116_v25 = vpop.permute.xlu1 %1939 }
 0x323   :  { %5558 = vst [vmem:[#allocation32_spill] sm:$0xff] %v4116_v25  ;;  %v1944_v18 = vmul.f32 0.0, %v4116_v25 }
 0x326   :  { %1532 = vrot.lane.b32.xlu0 %v1526_v56, %s3007_s9  ;;  %v1622_v56 = vmul.f32 0.0, %v4052_v12  ;;  %v4126_v16 = vpop.permute.xlu1 %1987 }
 0x327   :  { %v4100_v58 = vpop.permute.xlu0 %1715  ;;  %5559 = vst [vmem:[#allocation36_spill] sm:$0xff] %v4126_v16 }
 0x32a   :  { %1556 = vrot.lane.b32.xlu0 %v1550_v34, %s3007_s9  ;;  %v1646_v34 = vmul.f32 0.0, %v4096_v46  ;;  %v4138_v32 = vpop.permute.xlu1 %2011 }
 0x32b   :  { %5560 = vst [vmem:[#allocation37_spill] sm:$0xff] %v4138_v32 }
 0x32c   :  { %v4106_v63 = vpop.permute.xlu0 %1772 }
 0x32d   :  { %5555 = vst [vmem:[#allocation27_spill] sm:$0xff] %v4106_v63 }
 0x32e   :  { %1580 = vrot.lane.b32.xlu0 %v1574_v61, %s3007_s9 }
 0x331   :  { %v4112_v13 = vpop.permute.xlu0 %1829 }
 0x332   :  { %5557 = vst [vmem:[#allocation30_spill] sm:$0xff] %v4112_v13  ;;  %1604 = vrot.lane.b32.xlu0 %v1598_v30, %s3007_s9  ;;  %v1670_v30 = vmul.f32 0.0, %v4056_v2 }
 0x336   :  { %1628 = vrot.lane.b32.xlu0 %v1622_v56, %s3007_s9  ;;  %v4120_v9 = vpop.permute.xlu0 %1891  ;;  %v1992_v56 = vmul.f32 0.0, %v4126_v16 }
 0x337   :  { %v1896_v61 = vmul.f32 0.0, %v4120_v9 }
 0x339   :  { %1904 = vrot.lane.b32.xlu1 %v1896_v61, %s3009_s11  ;;  %v3045_v61 = vmov 67  }
 0x33a   :  { %1652 = vrot.lane.b32.xlu0 %v1646_v34, %s3007_s9  ;;  %v2915_v34 = vld [vmem:[%s5286_s2] sm:$0xff] }
 0x33d   :  { %1952 = vrot.lane.b32.xlu1 %v1944_v18, %s3009_s11  ;;  %v3046_v18 = vmov 68  }
 0x33e   :  { %1676 = vrot.lane.b32.xlu0 %v1670_v30, %s3007_s9  ;;  %v4140_v30 = vpop.permute.xlu1 %2059 }
 0x33f   :  { %5561 = vst [vmem:[#allocation38_spill] sm:$0xff] %v4140_v30 }
 0x341   :  { %2000 = vrot.lane.b32.xlu1 %v1992_v56, %s3009_s11 }
 0x342   :  { %1700 = vrot.lane.b32.xlu0 %v1694_v60, %s3007_s9  ;;  %v4142_v56 = vpop.permute.xlu1 %2083  ;;  %v3048_v60 = vmov 70  }
 0x343   :  { %5562 = vst [vmem:[#allocation39_spill] sm:$0xff] %v4142_v56 }
 0x346   :  { %2491 = vperm.xlu0 %2902, %v2915_v34   ;;  %v4144_v38 = vpop.permute.xlu1 %2131 }
 0x347   :  { %5563 = vst [vmem:[#allocation40_spill] sm:$0xff] %v4144_v38 }
 0x34a   :  { %2903 = vset.pattern.permute.xlu0 %v3045_v61  ;;  %v1872_v61 = vmul.f32 0.0, %v4102_v54  ;;  %v4147_v19 = vpop.permute.xlu1 %2155 }
 0x34b   :  { %2515 = vperm.xlu0 %2903, %v2915_v34   ;;  %5564 = vst [vmem:[#allocation31_spill] sm:$0xff] %v4147_v19 }
 0x34f   :  { %2904 = vset.pattern.permute.xlu0 %v3046_v18  ;;  %v4153_v18 = vpop.permute.xlu1 %2179 }
 0x350   :  { %2539 = vperm.xlu0 %2904, %v2915_v34   ;;  %5565 = vst [vmem:[#allocation10_spill] sm:$0xff] %v4153_v18 }
 0x354   :  { %2905 = vset.pattern.permute.xlu0 %v3047_v7  ;;  %v1920_v7 = vmul.f32 0.0, %v4109_v3  ;;  %v2064_v3 = vmul.f32 0.0, %v4140_v30 }
 0x355   :  { %2563 = vperm.xlu0 %2905, %v2915_v34  }
 0x359   :  { %2906 = vset.pattern.permute.xlu0 %v3048_v60  ;;  %v4155_v60 = vpop.permute.xlu1 %2203 }
 0x35a   :  { %2587 = vperm.xlu0 %2906, %v2915_v34   ;;  %5566 = vst [vmem:[#allocation12_spill] sm:$0xff] %v4155_v60 }
 0x35d   :  { %v4157_v13 = vpop.permute.xlu1 %2227 }
 0x35e   :  { %2907 = vset.pattern.permute.xlu0 %v3049_v44  ;;  %5567 = vst [vmem:[#allocation41_spill] sm:$0xff] %v4157_v13 }
 0x35f   :  { %2611 = vperm.xlu0 %2907, %v2915_v34  }
 0x361   :  { %v4159_v44 = vpop.permute.xlu1 %2251 }
 0x362   :  { %5568 = vst [vmem:[#allocation42_spill] sm:$0xff] %v4159_v44 }
 0x363   :  { %1880 = vrot.lane.b32.xlu0 %v1872_v61, %s3009_s11 }
 0x364   :  { %2908 = vset.pattern.permute.xlu0 %v5536_v8 }
 0x365   :  { %v4161_v6 = vpop.permute.xlu1 %2275 }
 0x366   :  { %5569 = vst [vmem:[#allocation43_spill] sm:$0xff] %v4161_v6 }
 0x367   :  { %1928 = vrot.lane.b32.xlu0 %v1920_v7, %s3009_s11  ;;  %v2016_v7 = vmul.f32 0.0, %v4138_v32 }
 0x369   :  { %v4166_v8 = vpop.permute.xlu1 %2299 }
 0x36a   :  { %5571 = vst [vmem:[#allocation45_spill] sm:$0xff] %v4166_v8 }
 0x36d   :  { %v4175_v25 = vpop.permute.xlu1 %2323 }
 0x36e   :  { %5573 = vst [vmem:[#allocation47_spill] sm:$0xff] %v4175_v25 }
 0x37a   :  { %v923_v34 = vpop.xlane.xlu0 %922 }
 0x382   :  { %v4163_v4 = vpop.permute.xlu0 %1963 }
 0x383   :  { %5570 = vst [vmem:[#allocation44_spill] sm:$0xff] %v4163_v4  ;;  %v1968_v61 = vmul.f32 0.0, %v4163_v4  ;;  %v2088_v4 = vmul.f32 0.0, %v4142_v56  ;;  %v2184_v56 = vmul.f32 0.0, %v4153_v18 }
 0x385   :  { %1976 = vrot.lane.b32.xlu0 %v1968_v61, %s3009_s11 }
 0x387   :  { %v4170_v16 = vpop.permute.xlu0 %2035 }
 0x388   :  { %5572 = vst [vmem:[#allocation46_spill] sm:$0xff] %v4170_v16  ;;  %v2040_v63 = vmul.f32 0.0, %v4170_v16  ;;  %v2136_v16 = vmul.f32 0.0, %v4144_v38 }
 0x389   :  { %2024 = vrot.lane.b32.xlu0 %v2016_v7, %s3009_s11  ;;  %v4187_v7 = vpop.permute.xlu1 %2347 }
 0x38a   :  { %2048 = vrot.lane.b32.xlu1 %v2040_v63, %s3009_s11  ;;  %5576 = vst [vmem:[#allocation50_spill] sm:$0xff] %v4187_v7  ;;  %v2160_v63 = vmul.f32 0.0, %v4147_v19 }
 0x38c   :  { %v4179_v42 = vpop.permute.xlu0 %2107 }
 0x38d   :  { %5574 = vst [vmem:[#allocation48_spill] sm:$0xff] %v4179_v42  ;;  %v2112_v61 = vmul.f32 0.0, %v4179_v42  ;;  %2072 = vrot.lane.b32.xlu0 %v2064_v3, %s3010_s12  ;;  %v2208_v3 = vmul.f32 0.0, %v4155_v60  ;;  %v2304_v60 = vmul.f32 0.0, %v4166_v8 }
 0x38e   :  { %2096 = vrot.lane.b32.xlu1 %v2088_v4, %s3010_s12  ;;  %v4197_v4 = vpop.permute.xlu1 %2371 }
 0x38f   :  { %5578 = vst [vmem:[#allocation52_spill] sm:$0xff] %v4197_v4 }
 0x390   :  { %v4185_v32 = vpop.permute.xlu0 %1412 }
 0x391   :  { %5575 = vst [vmem:[#allocation49_spill] sm:$0xff] %v4185_v32  ;;  %2120 = vrot.lane.b32.xlu0 %v2112_v61, %s3010_s12  ;;  %v2232_v32 = vmul.f32 0.0, %v4157_v13  ;;  %v2256_v61 = vmul.f32 0.0, %v4159_v44 }
 0x392   :  { %2144 = vrot.lane.b32.xlu1 %v2136_v16, %s3010_s12  ;;  %v2280_v16 = vmul.f32 0.0, %v4161_v6 }
 0x394   :  { %v4193_v30 = vpop.permute.xlu0 %1436 }
 0x395   :  { %5577 = vst [vmem:[#allocation51_spill] sm:$0xff] %v4193_v30  ;;  %2168 = vrot.lane.b32.xlu0 %v2160_v63, %s3010_s12  ;;  %v924_v30 = vmul.f32 0.0078125, %v923_v34 }
 0x396   :  { %2192 = vrot.lane.b32.xlu1 %v2184_v56, %s3010_s12  ;;  %v4209_v56 = vpop.permute.xlu1 %2395 }
 0x397   :  { %5581 = vst [vmem:[#allocation55_spill] sm:$0xff] %v4209_v56 }
 0x398   :  { %v4201_v38 = vpop.permute.xlu0 %1460 }
 0x399   :  { %5579 = vst [vmem:[#allocation53_spill] sm:$0xff] %v4201_v38  ;;  %2216 = vrot.lane.b32.xlu0 %v2208_v3, %s3010_s12  ;;  %v5582_v38 = vld [vmem:[#allocation35_spill] sm:$0xff] }
 0x39a   :  { %2240 = vrot.lane.b32.xlu1 %v2232_v32, %s3010_s12  ;;  %v925_v13 = vsub.f32 %v5582_v38, %v924_v30  ;;  %v2352_v32 = vmul.f32 0.0, %v4187_v7  ;;  %v4220_v34 = vpop.permute.xlu1 %2419  ;;  %v5586_v38 = vld [vmem:[#allocation34_spill] sm:$0xff] }
 0x39b   :  { %5584 = vst [vmem:[#allocation56_spill] sm:$0xff] %v4220_v34 }
 0x39c   :  { %v4207_v63 = vpop.permute.xlu0 %1484 }
 0x39d   :  { %5580 = vst [vmem:[#allocation54_spill] sm:$0xff] %v4207_v63  ;;  %2264 = vrot.lane.b32.xlu0 %v2256_v61, %s3011_s13  ;;  %v926_v63 = vsub.f32 %v3939_v0, %v924_v30  ;;  %v2400_v61 = vmul.f32 0.0, %v4209_v56  ;;  %v2328_v0 = vmul.f32 0.0, %v4175_v25 }
 0x39e   :  { %2288 = vrot.lane.b32.xlu1 %v2280_v16, %s3011_s13  ;;  %v927_v16 = vsub.f32 %v5586_v38, %v924_v30  ;;  %v4231_v7 = vpop.permute.xlu1 %2443 }
 0x39f   :  { %5588 = vst [vmem:[#allocation58_spill] sm:$0xff] %v4231_v7 }
 0x3a0   :  { %v4215_v3 = vpop.permute.xlu0 %1508 }
 0x3a1   :  { %5583 = vst [vmem:[#allocation35_spill] sm:$0xff] %v4215_v3  ;;  %2312 = vrot.lane.b32.xlu0 %v2304_v60, %s3011_s13 }
 0x3a2   :  { %931 = vrot.lane.b32.xlu1 %v925_v13, %s3013_s19  ;;  %v2448_v13 = vmul.f32 0.0, %v4231_v7 }
 0x3a4   :  { %v4223_v6 = vpop.permute.xlu0 %1532 }
 0x3a5   :  { %5585 = vst [vmem:[#allocation57_spill] sm:$0xff] %v4223_v6  ;;  %2360 = vrot.lane.b32.xlu0 %v2352_v32, %s3011_s13  ;;  %v2424_v32 = vmul.f32 0.0, %v4220_v34 }
 0x3a6   :  { %933 = vrot.lane.b32.xlu1 %v926_v63, %s3013_s19  ;;  %v2376_v63 = vmul.f32 0.0, %v4197_v4 }
 0x3a8   :  { %v4229_v3 = vpop.permute.xlu0 %1556 }
 0x3a9   :  { %5587 = vst [vmem:[#allocation34_spill] sm:$0xff] %v4229_v3  ;;  %2408 = vrot.lane.b32.xlu0 %v2400_v61, %s3011_s13  ;;  %v4248_v61 = vpop.permute.xlu1 %2467 }
 0x3aa   :  { %935 = vrot.lane.b32.xlu1 %v927_v16, %s3013_s19  ;;  %5592 = vst [vmem:[#allocation62_spill] sm:$0xff] %v4248_v61  ;;  %v2472_v16 = vmul.f32 0.0, %v4248_v61 }
 0x3ac   :  { %v4237_v60 = vpop.permute.xlu0 %1580 }
 0x3ad   :  { %5589 = vst [vmem:[#allocation59_spill] sm:$0xff] %v4237_v60  ;;  %2456 = vrot.lane.b32.xlu0 %v2448_v13, %s3012_s14 }
 0x3ae   :  { %2336 = vrot.lane.b32.xlu1 %v2328_v0, %s3011_s13 }
 0x3b0   :  { %v4242_v30 = vpop.permute.xlu0 %1604 }
 0x3b1   :  { %5590 = vst [vmem:[#allocation60_spill] sm:$0xff] %v4242_v30 }
 0x3b2   :  { %2384 = vrot.lane.b32.xlu1 %v2376_v63, %s3011_s13 }
 0x3b4   :  { %v4246_v38 = vpop.permute.xlu0 %1628 }
 0x3b5   :  { %5591 = vst [vmem:[#allocation61_spill] sm:$0xff] %v4246_v38 }
 0x3b6   :  { %2432 = vrot.lane.b32.xlu1 %v2424_v32, %s3011_s13 }
 0x3b8   :  { %v4252_v60 = vpop.permute.xlu0 %1652 }
 0x3b9   :  { %5593 = vst [vmem:[#allocation63_spill] sm:$0xff] %v4252_v60 }
 0x3ba   :  { %2480 = vrot.lane.b32.xlu1 %v2472_v16, %s3012_s14 }
 0x3bc   :  { %v4255_v13 = vpop.permute.xlu0 %1676 }
 0x3bd   :  { %5594 = vst [vmem:[#allocation64_spill] sm:$0xff] %v4255_v13 }
 0x3c0   :  { %v4257_v0 = vpop.permute.xlu0 %1700 }
 0x3c1   :  { %5595 = vst [vmem:[#allocation65_spill] sm:$0xff] %v4257_v0 }
 0x3c5   :  { %v4259_v30 = vpop.permute.xlu0 %2491 }
 0x3c6   :  { %5596 = vst [vmem:[#allocation66_spill] sm:$0xff] %v4259_v30  ;;  %v2496_v63 = vmul.f32 0.0, %v4259_v30 }
 0x3c8   :  { %2504 = vrot.lane.b32.xlu0 %v2496_v63, %s3012_s14 }
 0x3ca   :  { %v4263_v38 = vpop.permute.xlu0 %2515 }
 0x3cb   :  { %5597 = vst [vmem:[#allocation67_spill] sm:$0xff] %v4263_v38  ;;  %v2520_v61 = vmul.f32 0.0, %v4263_v38  ;;  %v4279_v38 = vpop.permute.xlu1 %1904 }
 0x3cc   :  { %5601 = vst [vmem:[#allocation71_spill] sm:$0xff] %v4279_v38 }
 0x3cd   :  { %2528 = vrot.lane.b32.xlu1 %v2520_v61, %s3012_s14 }
 0x3cf   :  { %v4267_v32 = vpop.permute.xlu0 %2539  ;;  %v4281_v61 = vpop.permute.xlu1 %1952 }
 0x3d0   :  { %5598 = vst [vmem:[#allocation68_spill] sm:$0xff] %v4267_v32  ;;  %v2544_v16 = vmul.f32 0.0, %v4267_v32  ;;  %5602 = vst [vmem:[#allocation72_spill] sm:$0xff] %v4281_v61 }
 0x3d2   :  { %2552 = vrot.lane.b32.xlu0 %v2544_v16, %s3012_s14 }
 0x3d3   :  { %v4283_v30 = vpop.permute.xlu1 %2000 }
 0x3d4   :  { %v4271_v13 = vpop.permute.xlu0 %2563  ;;  %5603 = vst [vmem:[#allocation73_spill] sm:$0xff] %v4283_v30 }
 0x3d5   :  { %5599 = vst [vmem:[#allocation69_spill] sm:$0xff] %v4271_v13  ;;  %v2568_v0 = vmul.f32 0.0, %v4271_v13 }
 0x3d7   :  { %2576 = vrot.lane.b32.xlu1 %v2568_v0, %s3012_s14 }
 0x3d9   :  { %v4275_v60 = vpop.permute.xlu0 %2587 }
 0x3da   :  { %5600 = vst [vmem:[#allocation70_spill] sm:$0xff] %v4275_v60  ;;  %v2592_v63 = vmul.f32 0.0, %v4275_v60 }
 0x3dc   :  { %2600 = vrot.lane.b32.xlu0 %v2592_v63, %s3012_s14 }
 0x3fc   :  { %v4285_v32 = vpop.permute.xlu1 %2048 }
 0x3fd   :  { %5604 = vst [vmem:[#allocation74_spill] sm:$0xff] %v4285_v32 }
 0x400   :  { %v4287_v16 = vpop.permute.xlu1 %2096 }
 0x401   :  { %5605 = vst [vmem:[#allocation75_spill] sm:$0xff] %v4287_v16 }
 0x404   :  { %v4289_v3 = vpop.permute.xlu1 %2144 }
 0x405   :  { %5606 = vst [vmem:[#allocation76_spill] sm:$0xff] %v4289_v3 }
 0x408   :  { %v4291_v13 = vpop.permute.xlu1 %2192 }
 0x409   :  { %5607 = vst [vmem:[#allocation77_spill] sm:$0xff] %v4291_v13 }
 0x40c   :  { %v4293_v0 = vpop.permute.xlu1 %2240 }
 0x40d   :  { %5608 = vst [vmem:[#allocation78_spill] sm:$0xff] %v4293_v0 }
 0x410   :  { %v4295_v6 = vpop.permute.xlu1 %2288 }
 0x411   :  { %5609 = vst [vmem:[#allocation79_spill] sm:$0xff] %v4295_v6 }
 0x414   :  { %v932_v60 = vpop.permute.xlu1 %931 }
 0x418   :  { %v934_v63 = vpop.permute.xlu1 %933 }
 0x419   :  { %v937_v38 = vsel %vm914_vm9, %v932_v60, %v934_v63 }
 0x41a   :  { %v941_v61 = vsel %vm4026_vm10, %v937_v38, 0.0 }
 0x41b   :  { %v943_v3 = vmul.f32 %v941_v61, %v941_v61 }
 0x41c   :  { %v936_v30 = vpop.permute.xlu1 %935 }
 0x41d   :  { %v938_v32 = vsel %vm914_vm9, %v934_v63, %v936_v30 }
 0x41e   :  { %v942_v16 = vsel %vm4030_vm11, %v938_v32, 0.0 }
 0x41f   :  { %v944_v7 = vmul.f32 %v942_v16, %v942_v16 }
 0x420   :  { %v4303_v0 = vpop.permute.xlu1 %2336 }
 0x421   :  { %v945_v13 = vadd.f32 %v944_v7, %v943_v3  ;;  %5610 = vst [vmem:[#allocation80_spill] sm:$0xff] %v4303_v0  ;;  %v2916_v7 = vld [vmem:[%s5287_s3] sm:$0xff] }
 0x423   :  { %946 = vadd.xlane.f32.xlu1 %v945_v13  ;;  %v5616_v13 = vmov 3  }
 0x424   :  { %v4305_v6 = vpop.permute.xlu1 %2384 }
 0x425   :  { %5611 = vst [vmem:[#allocation81_spill] sm:$0xff] %v4305_v6 }
 0x428   :  { %v4307_v34 = vpop.permute.xlu1 %2432 }
 0x429   :  { %5612 = vst [vmem:[#allocation82_spill] sm:$0xff] %v4307_v34  ;;  %v4319_v34 = vpop.permute.xlu0 %2611 }
 0x42a   :  { %5617 = vst [vmem:[#allocation86_spill] sm:$0xff] %v4319_v34 }
 0x42c   :  { %v4309_v60 = vpop.permute.xlu1 %2480 }
 0x42d   :  { %5613 = vst [vmem:[#allocation83_spill] sm:$0xff] %v4309_v60  ;;  %v4321_v60 = vpop.permute.xlu0 %1880 }
 0x42e   :  { %5618 = vst [vmem:[#allocation87_spill] sm:$0xff] %v4321_v60 }
 0x43f   :  { %v4311_v21 = vpop.permute.xlu1 %2528 }
 0x440   :  { %5614 = vst [vmem:[#allocation84_spill] sm:$0xff] %v4311_v21  ;;  %v4323_v21 = vpop.permute.xlu0 %1928 }
 0x441   :  { %5619 = vst [vmem:[#allocation88_spill] sm:$0xff] %v4323_v21 }
 0x449   :  { %v4313_v38 = vpop.permute.xlu1 %2576 }
 0x44a   :  { %5615 = vst [vmem:[#allocation85_spill] sm:$0xff] %v4313_v38  ;;  %v4325_v38 = vpop.permute.xlu0 %1976 }
 0x44b   :  { %5620 = vst [vmem:[#allocation89_spill] sm:$0xff] %v4325_v38 }
 0x4b0   :  { %v947_v30 = vpop.xlane.xlu1 %946 }
 0x4b1   :  { %v948_v63 = vmul.f32 0.0078125, %v947_v30  ;;  %v4327_v30 = vpop.permute.xlu0 %2024 }
 0x4b2   :  { %5621 = vst [vmem:[#allocation90_spill] sm:$0xff] %v4327_v30 }
 0x4b3   :  { %v949_v20 = vadd.f32 1e-05, %v948_v63 }
 0x4b5   :  { %2911 = vrsqrt.f32 %v949_v20  ;;  %v4329_v20 = vpop.permute.xlu0 %2072 }
 0x4b6   :  { %5622 = vst [vmem:[#allocation91_spill] sm:$0xff] %v4329_v20 }
 0x4b9   :  { %v4331_v63 = vpop.permute.xlu0 %2120 }
 0x4ba   :  { %5623 = vst [vmem:[#allocation92_spill] sm:$0xff] %v4331_v63 }
 0x4bd   :  { %v4333_v6 = vpop.permute.xlu0 %2168 }
 0x4be   :  { %5624 = vst [vmem:[#allocation93_spill] sm:$0xff] %v4333_v6 }
 0x4bf   :  { %v2912_v32 = vpop.eup %2911 }
 0x4c0   :  { %v951_v3 = vmul.f32 %v2916_v7, %v2912_v32 }
 0x4c1   :  { %v4335_v32 = vpop.permute.xlu0 %2216 }
 0x4c2   :  { %954 = vperm.xlu0 %2908, %v951_v3   ;;  %5625 = vst [vmem:[#allocation94_spill] sm:$0xff] %v4335_v32 }
 0x4c5   :  { %v4337_v7 = vpop.permute.xlu0 %2264 }
 0x4c6   :  { %2910 = vset.pattern.permute.xlu0 %v5616_v13  ;;  %5626 = vst [vmem:[#allocation95_spill] sm:$0xff] %v4337_v7  ;;  %v4355_v7 = vrot.slane %v4008_v59, %v5537_v23 }
 0x4c8   :  { %5634 = vst [vmem:[#allocation103_spill] sm:$0xff] %v4355_v7 }
 0x4c9   :  { %v4339_v3 = vpop.permute.xlu0 %2312 }
 0x4ca   :  { %5627 = vst [vmem:[#allocation96_spill] sm:$0xff] %v4339_v3 }
 0x4cd   :  { %v4341_v13 = vpop.permute.xlu0 %2360 }
 0x4ce   :  { %5628 = vst [vmem:[#allocation97_spill] sm:$0xff] %v4341_v13  ;;  %v4359_v13 = vrot.slane %v4008_v59, %v5538_v43 }
 0x4d0   :  { %5635 = vst [vmem:[#allocation104_spill] sm:$0xff] %v4359_v13 }
 0x4d1   :  { %v4343_v0 = vpop.permute.xlu0 %2408 }
 0x4d2   :  { %5629 = vst [vmem:[#allocation98_spill] sm:$0xff] %v4343_v0 }
 0x4d5   :  { %v4345_v21 = vpop.permute.xlu0 %2456 }
 0x4d6   :  { %5630 = vst [vmem:[#allocation99_spill] sm:$0xff] %v4345_v21 }
 0x4d9   :  { %v4347_v38 = vpop.permute.xlu0 %2504 }
 0x4da   :  { %5631 = vst [vmem:[#allocation100_spill] sm:$0xff] %v4347_v38 }
 0x4dd   :  { %v4349_v30 = vpop.permute.xlu0 %2552 }
 0x4de   :  { %5632 = vst [vmem:[#allocation101_spill] sm:$0xff] %v4349_v30 }
 0x4e1   :  { %v4351_v20 = vpop.permute.xlu0 %2600 }
 0x4e2   :  { %5633 = vst [vmem:[#allocation102_spill] sm:$0xff] %v4351_v20 }
 0x541   :  { %v955_v63 = vpop.permute.xlu0 %954 }
 0x542   :  { %v957_v6 = vmul.f32 %v955_v63, %v941_v61  ;;  %v958_v60 = vmul.f32 %v955_v63, %v942_v16 }
 0x544   :  { %v964_v0 = vadd.f32 %v3780_v37, %v957_v6  ;;  %v965_v21 = vadd.f32 %v3780_v37, %v958_v60  ;;  %v5636_v6 = vld [vmem:[#allocation15_spill] sm:$0xff] }
 0x546   :  { %v966_v38 = vmax.f32 %v964_v0, 0.0  ;;  %v967_v3 = vmax.f32 %v965_v21, 0.0  ;;  %v5637_v0 = vld [vmem:[#allocation17_spill] sm:$0xff] }
 0x548   :  { %v979_v30 = vmul.f32 %v4355_v7, %v966_v38  ;;  %v4365_v20 = vmul.f32 %v4359_v13, %v967_v3 }
 0x54a   :  { %v4368_v61 = vrot.slane %v979_v30, %v5537_v23  ;;  %v4371_v16 = vrot.slane %v979_v30, %v5538_v43  ;;  %v4375_v59 = vrot.slane %v4365_v20, %v5537_v23  ;;  %v4378_v63 = vrot.slane %v979_v30, %v5636_v6 }
 0x54b   :  { %v4385_v60 = vrot.slane %v979_v30, %v5637_v0  ;;  %v4391_v23 = vrot.slane %v4365_v20, %v5538_v43 }
 0x54c   :  { %v995_v37 = vmul.f32 %v4368_v61, %v3786_v28  ;;  %v1013_v21 = vmul.f32 %v4371_v16, %v3795_v57  ;;  %v1031_v3 = vmul.f32 %v4378_v63, %v3808_v39  ;;  %v1144_v13 = vmul.f32 %v3881_v26, %v4375_v59 }
 0x54d   :  { %v1049_v32 = vmul.f32 %v4385_v60, %v3997_v24  ;;  %v1143_v34 = vmul.f32 %v3881_v26, %v4368_v61  ;;  %v1168_v43 = vmul.f32 %v3892_v48, %v4391_v23  ;;  %v5638_v26 = vld [vmem:[#allocation9_spill] sm:$0xff] }
 0x54e   :  { %v1016_v38 = vadd.f32 %v1013_v21, %v995_v37  ;;  %1152 = vrot.lane.b32.xlu0 %v1144_v13, %s3005_s0  ;;  %v4403_v21 = vrot.slane %v4365_v20, %v5636_v6  ;;  %v1084_v13 = vsub.s32 5, %v5638_v26 }
 0x54f   :  { %1150 = vrot.lane.b32.xlu1 %v1143_v34, %s3005_s0 }
 0x550   :  { %v1034_v7 = vadd.f32 %v1031_v3, %v1016_v38  ;;  %v1167_v38 = vmul.f32 %v3892_v48, %v4371_v16  ;;  %v1063_v3 = vsub.s32 4, %v5638_v26  ;;  %v1192_v34 = vmul.f32 %v3906_v15, %v4403_v21 }
 0x551   :  { %v1105_v48 = vsub.s32 6, %v5638_v26  ;;  %v4434_v56 = vrot.slane %v979_v30, %v1084_v13  ;;  %v1032_v8 = vmul.f32 %v4403_v21, %v3808_v39 }
 0x552   :  { %v1052_v37 = vadd.f32 %v1049_v32, %v1034_v7  ;;  %1176 = vrot.lane.b32.xlu0 %v1168_v43, %s3005_s0  ;;  %v4414_v32 = vrot.slane %v4365_v20, %v5637_v0  ;;  %v1191_v7 = vmul.f32 %v3906_v15, %v4378_v63  ;;  %v4424_v6 = vrot.slane %v979_v30, %v1063_v3 }
 0x553   :  { %1174 = vrot.lane.b32.xlu1 %v1167_v38, %s3005_s0  ;;  %v4427_v43 = vrot.slane %v4365_v20, %v1063_v3  ;;  %v1215_v38 = vmul.f32 %v3917_v10, %v4385_v60  ;;  %v1126_v15 = vsub.s32 7, %v5638_v26  ;;  %v4445_v4 = vrot.slane %v979_v30, %v1105_v48 }
 0x554   :  { %v1216_v0 = vmul.f32 %v3917_v10, %v4414_v32  ;;  %v1070_v3 = vmul.f32 %v4424_v6, %v3822_v45  ;;  %v1239_v26 = vmul.f32 %v3931_v62, %v4424_v6  ;;  %v4462_v18 = vrot.slane %v4365_v20, %v1105_v48 }
 0x555   :  { %v1240_v10 = vmul.f32 %v3931_v62, %v4427_v43  ;;  %v4455_v25 = vrot.slane %v979_v30, %v1126_v15  ;;  %v1112_v19 = vmul.f32 %v4445_v4, %v3999_v31 }
 0x556   :  { %1200 = vrot.lane.b32.xlu0 %v1192_v34, %s3005_s0  ;;  %v1014_v34 = vmul.f32 %v4391_v23, %v3795_v57 }
 0x557   :  { %1198 = vrot.lane.b32.xlu1 %v1191_v7, %s3005_s0  ;;  %v4443_v7 = vrot.slane %v4365_v20, %v1084_v13  ;;  %v1073_v13 = vadd.f32 %v1070_v3, %v1052_v37  ;;  %v1050_v37 = vmul.f32 %v4414_v32, %v3997_v24  ;;  %v1133_v48 = vmul.f32 %v4455_v25, %v3869_v17 }
 0x559   :  { %v1264_v62 = vmul.f32 %v3941_v41, %v4443_v7 }
 0x55a   :  { %1224 = vrot.lane.b32.xlu0 %v1216_v0, %s3005_s0  ;;  %v996_v0 = vmul.f32 %v4375_v59, %v3786_v28 }
 0x55b   :  { %1222 = vrot.lane.b32.xlu1 %v1215_v38, %s3005_s0  ;;  %v1091_v38 = vmul.f32 %v4434_v56, %v3836_v55 }
 0x55c   :  { %v1017_v44 = vadd.f32 %v1014_v34, %v996_v0 }
 0x55d   :  { %v1094_v30 = vadd.f32 %v1091_v38, %v1073_v13  ;;  %v4479_v38 = vrot.slane %v4365_v20, %v1126_v15  ;;  %v1113_v20 = vmul.f32 %v4462_v18, %v3999_v31 }
 0x55e   :  { %1248 = vrot.lane.b32.xlu0 %v1240_v10, %s3005_s0  ;;  %v1263_v10 = vmul.f32 %v3941_v41, %v4434_v56  ;;  %v1035_v3 = vadd.f32 %v1032_v8, %v1017_v44  ;;  %v1288_v41 = vmul.f32 %v3947_v50, %v4462_v18  ;;  %v1287_v44 = vmul.f32 %v3947_v50, %v4445_v4 }
 0x55f   :  { %1246 = vrot.lane.b32.xlu1 %v1239_v26, %s3005_s0  ;;  %v1115_v34 = vadd.f32 %v1112_v19, %v1094_v30  ;;  %v1071_v26 = vmul.f32 %v4427_v43, %v3822_v45  ;;  %v1092_v19 = vmul.f32 %v4443_v7, %v3836_v55  ;;  %v1311_v30 = vmul.f32 %v3953_v27, %v4455_v25 }
 0x560   :  { %v1053_v0 = vadd.f32 %v1050_v37, %v1035_v3  ;;  %v1134_v50 = vmul.f32 %v4479_v38, %v3869_v17  ;;  %v1336_v3 = vmul.f32 %v3958_v5, %v4375_v59 }
 0x561   :  { %v4483_v13 = vadd.f32 %v1133_v48, %v1115_v34  ;;  %v1335_v48 = vmul.f32 %v3958_v5, %v4368_v61  ;;  %v1359_v34 = vmul.f32 %v3963_v47, %v4371_v16  ;;  %v1383_v5 = vmul.f32 %v3968_v33, %v4378_v63 }
 0x562   :  { %1272 = vrot.lane.b32.xlu0 %v1264_v62, %s3005_s0  ;;  %v1074_v8 = vadd.f32 %v1071_v26, %v1053_v0  ;;  %v1312_v62 = vmul.f32 %v3953_v27, %v4479_v38  ;;  %v1360_v27 = vmul.f32 %v3963_v47, %v4391_v23  ;;  %v1384_v26 = vmul.f32 %v3968_v33, %v4403_v21 }
 0x563   :  { %1270 = vrot.lane.b32.xlu1 %v1263_v10, %s3005_s0  ;;  %v1408_v0 = vmul.f32 %v4012_v36, %v4414_v32  ;;  %v1407_v47 = vmul.f32 %v4012_v36, %v4385_v60  ;;  %v1431_v33 = vmul.f32 %v4075_v1, %v4424_v6  ;;  %v1455_v36 = vmul.f32 %v4015_v40, %v4434_v56 }
 0x564   :  { %v1095_v15 = vadd.f32 %v1092_v19, %v1074_v8  ;;  %v1480_v19 = vmul.f32 %v4024_v29, %v4462_v18  ;;  %v1504_v8 = vmul.f32 %v4084_v11, %v4479_v38 }
 0x566   :  { %1296 = vrot.lane.b32.xlu0 %v1288_v41, %s3005_s0  ;;  %v1116_v10 = vadd.f32 %v1113_v20, %v1095_v15  ;;  %v1432_v41 = vmul.f32 %v4075_v1, %v4427_v43  ;;  %v1479_v1 = vmul.f32 %v4024_v29, %v4445_v4  ;;  %v1528_v20 = vmul.f32 %v4034_v35, %v4375_v59 }
 0x567   :  { %1294 = vrot.lane.b32.xlu1 %v1287_v44, %s3005_s0  ;;  %v1456_v44 = vmul.f32 %v4015_v40, %v4443_v7  ;;  %v1503_v40 = vmul.f32 %v4084_v11, %v4455_v25  ;;  %v1527_v29 = vmul.f32 %v4034_v35, %v4368_v61  ;;  %v1552_v15 = vmul.f32 %v4044_v52, %v4391_v23 }
 0x568   :  { %v4501_v37 = vadd.f32 %v1134_v50, %v1116_v10  ;;  %v1551_v11 = vmul.f32 %v4044_v52, %v4371_v16  ;;  %v1575_v35 = vmul.f32 %v4090_v22, %v4378_v63  ;;  %v1599_v52 = vmul.f32 %v4048_v51, %v4385_v60 }
 0x569   :  { %v1624_v50 = vmul.f32 %v4052_v12, %v4427_v43  ;;  %v1648_v10 = vmul.f32 %v4096_v46, %v4443_v7 }
 0x56a   :  { %1320 = vrot.lane.b32.xlu0 %v1312_v62, %s3005_s0  ;;  %v1576_v62 = vmul.f32 %v4090_v22, %v4403_v21  ;;  %v1623_v22 = vmul.f32 %v4052_v12, %v4424_v6  ;;  %v1671_v12 = vmul.f32 %v4056_v2, %v4445_v4 }
 0x56b   :  { %1318 = vrot.lane.b32.xlu1 %v1311_v30, %s3005_s0  ;;  %v1600_v30 = vmul.f32 %v4048_v51, %v4414_v32  ;;  %v1647_v51 = vmul.f32 %v4096_v46, %v4434_v56  ;;  %v1695_v46 = vmul.f32 %v4061_v49, %v4455_v25 }
 0x56e   :  { %1344 = vrot.lane.b32.xlu0 %v1336_v3, %s3006_s1  ;;  %v1672_v3 = vmul.f32 %v4056_v2, %v4462_v18  ;;  %v1719_v2 = vmul.f32 %v4100_v58, %v4375_v59 }
 0x56f   :  { %1342 = vrot.lane.b32.xlu1 %v1335_v48, %s3006_s1  ;;  %v1696_v48 = vmul.f32 %v4061_v49, %v4479_v38  ;;  %v1737_v49 = vmul.f32 %v4066_v14, %v4371_v16 }
 0x572   :  { %1368 = vrot.lane.b32.xlu0 %v1360_v27, %s3006_s1  ;;  %v1718_v27 = vmul.f32 %v4100_v58, %v4368_v61  ;;  %v1738_v58 = vmul.f32 %v4066_v14, %v4391_v23 }
 0x573   :  { %1366 = vrot.lane.b32.xlu1 %v1359_v34, %s3006_s1  ;;  %v1851_v34 = vmul.f32 %v4094_v53, %v4455_v25 }
 0x576   :  { %1392 = vrot.lane.b32.xlu0 %v1384_v26, %s3006_s1  ;;  %v1870_v26 = vmul.f32 %v4102_v54, %v4368_v61 }
 0x577   :  { %1390 = vrot.lane.b32.xlu1 %v1383_v5, %s3006_s1  ;;  %v1895_v5 = vmul.f32 %v4120_v9, %v4391_v23 }
 0x57a   :  { %1416 = vrot.lane.b32.xlu0 %v1408_v0, %s3006_s1  ;;  %v5639_v0 = vld [vmem:[#allocation23_spill] sm:$0xff] }
 0x57b   :  { %1414 = vrot.lane.b32.xlu1 %v1407_v47, %s3006_s1  ;;  %v1756_v47 = vmul.f32 %v5639_v0, %v4378_v63  ;;  %v1757_v14 = vmul.f32 %v5639_v0, %v4403_v21  ;;  %v5649_v0 = vld [vmem:[#allocation38_spill] sm:$0xff] }
 0x57e   :  { %1440 = vrot.lane.b32.xlu0 %v1432_v41, %s3006_s1  ;;  %v5640_v41 = vld [vmem:[#allocation28_spill] sm:$0xff] }
 0x57f   :  { %1438 = vrot.lane.b32.xlu1 %v1431_v33, %s3006_s1  ;;  %v1918_v33 = vmul.f32 %v5640_v41, %v4378_v63 }
 0x582   :  { %1464 = vrot.lane.b32.xlu0 %v1456_v44, %s3006_s1 }
 0x583   :  { %1462 = vrot.lane.b32.xlu1 %v1455_v36, %s3006_s1  ;;  %v5641_v36 = vld [vmem:[#allocation32_spill] sm:$0xff] }
 0x586   :  { %1488 = vrot.lane.b32.xlu0 %v1480_v19, %s3006_s1  ;;  %v1943_v19 = vmul.f32 %v5641_v36, %v4414_v32 }
 0x587   :  { %1486 = vrot.lane.b32.xlu1 %v1479_v1, %s3006_s1 }
 0x58a   :  { %1512 = vrot.lane.b32.xlu0 %v1504_v8, %s3006_s1  ;;  %v5642_v8 = vld [vmem:[#allocation27_spill] sm:$0xff] }
 0x58b   :  { %1510 = vrot.lane.b32.xlu1 %v1503_v40, %s3006_s1  ;;  %v1775_v40 = vmul.f32 %v5642_v8, %v4385_v60 }
 0x58e   :  { %1536 = vrot.lane.b32.xlu0 %v1528_v20, %s3007_s9 }
 0x58f   :  { %1534 = vrot.lane.b32.xlu1 %v1527_v29, %s3007_s9  ;;  %v5643_v29 = vld [vmem:[#allocation44_spill] sm:$0xff] }
 0x592   :  { %1560 = vrot.lane.b32.xlu0 %v1552_v15, %s3007_s9  ;;  %v1966_v15 = vmul.f32 %v5643_v29, %v4424_v6 }
 0x593   :  { %1558 = vrot.lane.b32.xlu1 %v1551_v11, %s3007_s9 }
 0x596   :  { %1584 = vrot.lane.b32.xlu0 %v1576_v62, %s3007_s9  ;;  %v1776_v62 = vmul.f32 %v5642_v8, %v4414_v32  ;;  %v5650_v8 = vld [vmem:[#allocation39_spill] sm:$0xff] }
 0x597   :  { %1582 = vrot.lane.b32.xlu1 %v1575_v35, %s3007_s9 }
 0x59a   :  { %1608 = vrot.lane.b32.xlu0 %v1600_v30, %s3007_s9  ;;  %v5644_v30 = vld [vmem:[#allocation36_spill] sm:$0xff] }
 0x59b   :  { %1606 = vrot.lane.b32.xlu1 %v1599_v52, %s3007_s9  ;;  %v1991_v52 = vmul.f32 %v5644_v30, %v4443_v7 }
 0x59e   :  { %1632 = vrot.lane.b32.xlu0 %v1624_v50, %s3007_s9 }
 0x59f   :  { %1630 = vrot.lane.b32.xlu1 %v1623_v22, %s3007_s9  ;;  %v5645_v22 = vld [vmem:[#allocation25_spill] sm:$0xff] }
 0x5a2   :  { %1656 = vrot.lane.b32.xlu0 %v1648_v10, %s3007_s9  ;;  %v1794_v10 = vmul.f32 %v5645_v22, %v4424_v6 }
 0x5a3   :  { %1654 = vrot.lane.b32.xlu1 %v1647_v51, %s3007_s9 }
 0x5a6   :  { %1680 = vrot.lane.b32.xlu0 %v1672_v3, %s3007_s9  ;;  %v5646_v3 = vld [vmem:[#allocation37_spill] sm:$0xff] }
 0x5a7   :  { %1678 = vrot.lane.b32.xlu1 %v1671_v12, %s3007_s9  ;;  %v2014_v12 = vmul.f32 %v5646_v3, %v4445_v4 }
 0x5aa   :  { %1704 = vrot.lane.b32.xlu0 %v1696_v48, %s3007_s9 }
 0x5ab   :  { %1702 = vrot.lane.b32.xlu1 %v1695_v46, %s3007_s9  ;;  %v1795_v46 = vmul.f32 %v5645_v22, %v4427_v43  ;;  %v994_v22 = vmul.f32 0.0, %v3786_v28 }
 0x5ae   :  { %1722 = vrot.lane.b32.xlu0 %v1718_v27, %s3008_s10 }
 0x5af   :  { %1724 = vrot.lane.b32.xlu1 %v1719_v2, %s3008_s10  ;;  %v5647_v2 = vld [vmem:[#allocation46_spill] sm:$0xff] }
 0x5b2   :  { %1855 = vrot.lane.b32.xlu0 %v1851_v34, %s3008_s10  ;;  %v2039_v34 = vmul.f32 %v5647_v2, %v4479_v38 }
 0x5b3   :  { %1741 = vrot.lane.b32.xlu1 %v1737_v49, %s3008_s10 }
 0x5b6   :  { %1876 = vrot.lane.b32.xlu0 %v1870_v26, %s3009_s11  ;;  %v5648_v26 = vld [vmem:[#allocation29_spill] sm:$0xff] }
 0x5b7   :  { %1743 = vrot.lane.b32.xlu1 %v1738_v58, %s3008_s10  ;;  %v1813_v58 = vmul.f32 %v5648_v26, %v4434_v56 }
 0x5ba   :  { %1902 = vrot.lane.b32.xlu0 %v1895_v5, %s3009_s11 }
 0x5bb   :  { %1760 = vrot.lane.b32.xlu1 %v1756_v47, %s3008_s10  ;;  %v2062_v47 = vmul.f32 %v5649_v0, %v4368_v61 }
 0x5be   :  { %1924 = vrot.lane.b32.xlu0 %v1918_v33, %s3009_s11 }
 0x5bf   :  { %1762 = vrot.lane.b32.xlu1 %v1757_v14, %s3008_s10  ;;  %v1814_v14 = vmul.f32 %v5648_v26, %v4443_v7 }
 0x5c0   :  { %v1153_v44 = vpop.permute.xlu0 %1152 }
 0x5c1   :  { %v4631_v1 = vpop.permute.xlu1 %1150 }
 0x5c2   :  { %1950 = vrot.lane.b32.xlu0 %v1943_v19, %s3009_s11  ;;  %v1155_v28 = vsel %vm154_vm0, %v4631_v1, %v1153_v44 }
 0x5c3   :  { %1779 = vrot.lane.b32.xlu1 %v1775_v40, %s3008_s10  ;;  %v2087_v40 = vmul.f32 %v5650_v8, %v4391_v23 }
 0x5c4   :  { %v1177_v20 = vpop.permute.xlu0 %1176 }
 0x5c5   :  { %v4639_v11 = vpop.permute.xlu1 %1174 }
 0x5c6   :  { %1972 = vrot.lane.b32.xlu0 %v1966_v15, %s3009_s11 }
 0x5c7   :  { %1781 = vrot.lane.b32.xlu1 %v1776_v62, %s3008_s10  ;;  %v5651_v62 = vld [vmem:[#allocation30_spill] sm:$0xff] }
 0x5c8   :  { %v1201_v35 = vpop.permute.xlu0 %1200  ;;  %v1833_v26 = vmul.f32 %v5651_v62, %v4462_v18 }
 0x5c9   :  { %v4647_v50 = vpop.permute.xlu1 %1198 }
 0x5ca   :  { %1998 = vrot.lane.b32.xlu0 %v1991_v52, %s3009_s11  ;;  %v1832_v52 = vmul.f32 %v5651_v62, %v4445_v4  ;;  %v1852_v62 = vmul.f32 %v4094_v53, %v4479_v38 }
 0x5cb   :  { %1798 = vrot.lane.b32.xlu1 %v1794_v10, %s3008_s10  ;;  %v1012_v10 = vmul.f32 0.0, %v3795_v57 }
 0x5cc   :  { %v1225_v51 = vpop.permute.xlu0 %1224 }
 0x5cd   :  { %v4655_v48 = vpop.permute.xlu1 %1222 }
 0x5ce   :  { %2020 = vrot.lane.b32.xlu0 %v2014_v12, %s3009_s11 }
 0x5cf   :  { %1800 = vrot.lane.b32.xlu1 %v1795_v46, %s3008_s10  ;;  %v2110_v46 = vmul.f32 %v4179_v42, %v4378_v63 }
 0x5d0   :  { %v1249_v27 = vpop.permute.xlu0 %1248 }
 0x5d1   :  { %v4663_v49 = vpop.permute.xlu1 %1246 }
 0x5d2   :  { %2046 = vrot.lane.b32.xlu0 %v2039_v34, %s3009_s11 }
 0x5d3   :  { %1817 = vrot.lane.b32.xlu1 %v1813_v58, %s3008_s10  ;;  %v1015_v58 = vadd.f32 %v1012_v10, %v994_v22 }
 0x5d4   :  { %v1273_v5 = vpop.permute.xlu0 %1272 }
 0x5d5   :  { %v4671_v33 = vpop.permute.xlu1 %1270 }
 0x5d6   :  { %2068 = vrot.lane.b32.xlu0 %v2062_v47, %s3010_s12  ;;  %v1030_v47 = vmul.f32 0.0, %v3808_v39  ;;  %v1160_v39 = vadd.f32 %v1155_v28, %v4483_v13  ;;  %v1871_v13 = vmul.f32 %v4102_v54, %v4375_v59 }
 0x5d7   :  { %1819 = vrot.lane.b32.xlu1 %v1814_v14, %s3008_s10  ;;  %v5652_v14 = vld [vmem:[#allocation40_spill] sm:$0xff] }
 0x5d8   :  { %v1297_v19 = vpop.permute.xlu0 %1296  ;;  %v1033_v10 = vadd.f32 %v1030_v47, %v1015_v58  ;;  %v1069_v47 = vmul.f32 0.0, %v3822_v45 }
 0x5d9   :  { %v4679_v15 = vpop.permute.xlu1 %1294 }
 0x5da   :  { %2094 = vrot.lane.b32.xlu0 %v2087_v40, %s3010_s12  ;;  %v2135_v40 = vmul.f32 %v5652_v14, %v4414_v32  ;;  %v5653_v14 = vld [vmem:[#allocation31_spill] sm:$0xff] }
 0x5db   :  { %1836 = vrot.lane.b32.xlu1 %v1832_v52, %s3008_s10  ;;  %v1161_v52 = vadd.f32 %v1153_v44, %v4501_v37  ;;  %v1203_v37 = vsel %vm154_vm0, %v4647_v50, %v1201_v35  ;;  %v2158_v53 = vmul.f32 %v5653_v14, %v4424_v6 }
 0x5dc   :  { %v1321_v12 = vpop.permute.xlu0 %1320 }
 0x5dd   :  { %v4689_v34 = vpop.permute.xlu1 %1318  ;;  %v1185_v22 = vadd.f32 %v1177_v20, %v1161_v52  ;;  %v5654_v52 = vld [vmem:[#allocation10_spill] sm:$0xff] }
 0x5de   :  { %2116 = vrot.lane.b32.xlu0 %v2110_v46, %s3010_s12  ;;  %v1179_v46 = vsel %vm154_vm0, %v4639_v11, %v1177_v20  ;;  %v1227_v20 = vsel %vm154_vm0, %v4655_v48, %v1225_v51 }
 0x5df   :  { %1838 = vrot.lane.b32.xlu1 %v1833_v26, %s3008_s10  ;;  %v1048_v26 = vmul.f32 0.0, %v3997_v24  ;;  %v1184_v8 = vadd.f32 %v1179_v46, %v1160_v39  ;;  %v1209_v0 = vadd.f32 %v1201_v35, %v1185_v22  ;;  %v1251_v35 = vsel %vm154_vm0, %v4663_v49, %v1249_v27 }
 0x5e0   :  { %v1345_v57 = vpop.permute.xlu0 %1344 }
 0x5e1   :  { %v4701_v42 = vpop.permute.xlu1 %1342  ;;  %v1208_v24 = vadd.f32 %v1203_v37, %v1184_v8  ;;  %v1233_v58 = vadd.f32 %v1225_v51, %v1209_v0  ;;  %v1051_v28 = vadd.f32 %v1048_v26, %v1033_v10  ;;  %v1894_v8 = vmul.f32 %v4120_v9, %v4371_v16  ;;  %v5655_v37 = vld [vmem:[#allocation12_spill] sm:$0xff] }
 0x5e2   :  { %2142 = vrot.lane.b32.xlu0 %v2135_v40, %s3010_s12  ;;  %v1275_v51 = vsel %vm154_vm0, %v4671_v33, %v1273_v5  ;;  %v1090_v10 = vmul.f32 0.0, %v3836_v55 }
 0x5e3   :  { %1857 = vrot.lane.b32.xlu1 %v1852_v62, %s3008_s10  ;;  %v2183_v62 = vmul.f32 %v5654_v52, %v4443_v7  ;;  %v1232_v54 = vadd.f32 %v1227_v20, %v1208_v24  ;;  %v1257_v46 = vadd.f32 %v1249_v27, %v1233_v58  ;;  %v1072_v22 = vadd.f32 %v1069_v47, %v1051_v28 }
 0x5e4   :  { %v1369_v44 = vpop.permute.xlu0 %1368  ;;  %v1299_v27 = vsel %vm154_vm0, %v4679_v15, %v1297_v19  ;;  %v1919_v24 = vmul.f32 %v5640_v41, %v4403_v21  ;;  %v1111_v28 = vmul.f32 0.0, %v3999_v31 }
 0x5e5   :  { %v4715_v2 = vpop.permute.xlu1 %1366  ;;  %v1256_v45 = vadd.f32 %v1251_v35, %v1232_v54  ;;  %v1281_v0 = vadd.f32 %v1273_v5, %v1257_v46  ;;  %v1323_v5 = vsel %vm154_vm0, %v4689_v34, %v1321_v12  ;;  %v1093_v47 = vadd.f32 %v1090_v10, %v1072_v22 }
 0x5e6   :  { %2164 = vrot.lane.b32.xlu0 %v2158_v53, %s3010_s12  ;;  %v2206_v53 = vmul.f32 %v5655_v37, %v4445_v4 }
 0x5e7   :  { %1878 = vrot.lane.b32.xlu1 %v1871_v13, %s3009_s11  ;;  %v1280_v9 = vadd.f32 %v1275_v51, %v1256_v45  ;;  %v1305_v13 = vadd.f32 %v1297_v19, %v1281_v0  ;;  %v1347_v19 = vsel %vm251_vm1, %v4701_v42, %v1345_v57  ;;  %v1942_v51 = vmul.f32 %v5641_v36, %v4385_v60  ;;  %v5658_v36 = vld [vmem:[#allocation33_spill] sm:$0xff] }
 0x5e8   :  { %v1393_v40 = vpop.permute.xlu0 %1392  ;;  %v1371_v45 = vsel %vm251_vm1, %v4715_v2, %v1369_v44  ;;  %v1114_v22 = vadd.f32 %v1111_v28, %v1093_v47 }
 0x5e9   :  { %v4728_v39 = vpop.permute.xlu1 %1390  ;;  %v1304_v55 = vadd.f32 %v1299_v27, %v1280_v9  ;;  %v1329_v58 = vadd.f32 %v1321_v12, %v1305_v13  ;;  %v1132_v12 = vmul.f32 0.0, %v3869_v17  ;;  %v5657_v27 = vld [vmem:[#allocation42_spill] sm:$0xff]  ;;  %v1154_v17 = vsel %vm154_vm0, %v5658_v36, %v4631_v1 }
 0x5ea   :  { %2190 = vrot.lane.b32.xlu0 %v2183_v62, %s3010_s12  ;;  %v5656_v62 = vld [vmem:[#allocation41_spill] sm:$0xff] }
 0x5eb   :  { %1900 = vrot.lane.b32.xlu1 %v1894_v8, %s3009_s11  ;;  %v2231_v54 = vmul.f32 %v5656_v62, %v4479_v38  ;;  %v1328_v41 = vadd.f32 %v1323_v5, %v1304_v55  ;;  %v1353_v46 = vadd.f32 %v1345_v57, %v1329_v58  ;;  %v1395_v57 = vsel %vm251_vm1, %v4728_v39, %v1393_v40  ;;  %v5659_v58 = vld [vmem:[#allocation24_spill] sm:$0xff] }
 0x5ec   :  { %v1417_v26 = vpop.permute.xlu0 %1416  ;;  %v1135_v5 = vadd.f32 %v1132_v12, %v1114_v22  ;;  %v1178_v47 = vsel %vm154_vm0, %v5659_v58, %v4639_v11  ;;  %v1990_v11 = vmul.f32 %v5644_v30, %v4434_v56  ;;  %v5662_v22 = vld [vmem:[#allocation11_spill] sm:$0xff]  ;;  %v5663_v30 = vld [vmem:[#allocation45_spill] sm:$0xff] }
 0x5ed   :  { %v4741_v20 = vpop.permute.xlu1 %1414  ;;  %v1352_v31 = vadd.f32 %v1347_v19, %v1328_v41  ;;  %v1377_v0 = vadd.f32 %v1369_v44, %v1353_v46  ;;  %v1967_v44 = vmul.f32 %v5643_v29, %v4427_v43  ;;  %v5660_v29 = vld [vmem:[#allocation43_spill] sm:$0xff]  ;;  %v5661_v46 = vld [vmem:[#allocation13_spill] sm:$0xff] }
 0x5ee   :  { %2212 = vrot.lane.b32.xlu0 %v2206_v53, %s3010_s12  ;;  %v2254_v53 = vmul.f32 %v5657_v27, %v4368_v61  ;;  %v1419_v55 = vsel %vm251_vm1, %v4741_v20, %v1417_v26  ;;  %v1159_v1 = vadd.f32 %v1154_v17, %v1135_v5  ;;  %v2279_v41 = vmul.f32 %v5660_v29, %v4391_v23 }
 0x5ef   :  { %1926 = vrot.lane.b32.xlu1 %v1919_v24, %s3009_s11  ;;  %v1376_v9 = vadd.f32 %v1371_v45, %v1352_v31  ;;  %v1401_v13 = vadd.f32 %v1393_v40, %v1377_v0 }
 0x5f0   :  { %v1441_v35 = vpop.permute.xlu0 %1440 }
 0x5f1   :  { %v4754_v8 = vpop.permute.xlu1 %1438  ;;  %v1400_v28 = vadd.f32 %v1395_v57, %v1376_v9  ;;  %v1425_v19 = vadd.f32 %v1417_v26, %v1401_v13  ;;  %v1183_v26 = vadd.f32 %v1178_v47, %v1159_v1  ;;  %v1226_v57 = vsel %vm154_vm0, %v5662_v22, %v4655_v48  ;;  %v5664_v13 = vld [vmem:[#allocation16_spill] sm:$0xff] }
 0x5f2   :  { %2238 = vrot.lane.b32.xlu0 %v2231_v54, %s3010_s12  ;;  %v1443_v40 = vsel %vm251_vm1, %v4754_v8, %v1441_v35  ;;  %v2302_v9 = vmul.f32 %v5663_v30, %v4378_v63  ;;  %v2015_v48 = vmul.f32 %v5646_v3, %v4462_v18  ;;  %v5667_v3 = vld [vmem:[#allocation19_spill] sm:$0xff] }
 0x5f3   :  { %1948 = vrot.lane.b32.xlu1 %v1942_v51, %s3009_s11  ;;  %v1202_v51 = vsel %vm154_vm0, %v5661_v46, %v4647_v50  ;;  %v1424_v12 = vadd.f32 %v1419_v55, %v1400_v28  ;;  %v1449_v45 = vadd.f32 %v1441_v35, %v1425_v19  ;;  %v5665_v28 = vld [vmem:[#allocation18_spill] sm:$0xff] }
 0x5f4   :  { %v1465_v10 = vpop.permute.xlu0 %1464  ;;  %v1207_v50 = vadd.f32 %v1202_v51, %v1183_v26  ;;  %v1274_v19 = vsel %vm154_vm0, %v5665_v28, %v4671_v33  ;;  %v1298_v51 = vsel %vm154_vm0, %v5667_v3, %v4679_v15  ;;  %v5668_v26 = vld [vmem:[#allocation46_spill] sm:$0xff] }
 0x5f5   :  { %v4770_v24 = vpop.permute.xlu1 %1462  ;;  %v1473_v36 = vadd.f32 %v1465_v10, %v1449_v45 }
 0x5f6   :  { %2260 = vrot.lane.b32.xlu0 %v2254_v53, %s3011_s13  ;;  %v1467_v0 = vsel %vm251_vm1, %v4770_v24, %v1465_v10  ;;  %v1448_v53 = vadd.f32 %v1443_v40, %v1424_v12  ;;  %v1231_v10 = vadd.f32 %v1226_v57, %v1207_v50  ;;  %v5669_v57 = vld [vmem:[#allocation20_spill] sm:$0xff] }
 0x5f7   :  { %1974 = vrot.lane.b32.xlu1 %v1967_v44, %s3009_s11  ;;  %v1250_v44 = vsel %vm154_vm0, %v5664_v13, %v4663_v49 }
 0x5f8   :  { %v1489_v54 = vpop.permute.xlu0 %1488  ;;  %v1472_v5 = vadd.f32 %v1467_v0, %v1448_v53  ;;  %v1255_v49 = vadd.f32 %v1250_v44, %v1231_v10  ;;  %v2038_v0 = vmul.f32 %v5668_v26, %v4455_v25  ;;  %v1322_v53 = vsel %vm154_vm0, %v5669_v57, %v4689_v34 }
 0x5f9   :  { %v4788_v31 = vpop.permute.xlu1 %1486  ;;  %v1497_v55 = vadd.f32 %v1489_v54, %v1473_v36 }
 0x5fa   :  { %2286 = vrot.lane.b32.xlu0 %v2279_v41, %s3011_s13  ;;  %v1491_v35 = vsel %vm251_vm1, %v4788_v31, %v1489_v54  ;;  %v5666_v41 = vld [vmem:[#allocation47_spill] sm:$0xff]  ;;  %v1279_v33 = vadd.f32 %v1274_v19, %v1255_v49 }
 0x5fb   :  { %1996 = vrot.lane.b32.xlu1 %v1990_v11, %s3009_s11  ;;  %v1496_v1 = vadd.f32 %v1491_v35, %v1472_v5  ;;  %v2327_v46 = vmul.f32 %v5666_v41, %v4414_v32  ;;  %v5670_v35 = vld [vmem:[#allocation50_spill] sm:$0xff] }
 0x5fc   :  { %v1513_v17 = vpop.permute.xlu0 %1512  ;;  %v1303_v50 = vadd.f32 %v1298_v51, %v1279_v33 }
 0x5fd   :  { %v4806_v58 = vpop.permute.xlu1 %1510  ;;  %v1521_v40 = vadd.f32 %v1513_v17, %v1497_v55  ;;  %v5672_v55 = vld [vmem:[#allocation38_spill] sm:$0xff] }
 0x5fe   :  { %v1515_v47 = vsel %vm251_vm1, %v4806_v58, %v1513_v17  ;;  %2308 = vrot.lane.b32.xlu0 %v2302_v9, %s3011_s13  ;;  %v2350_v17 = vmul.f32 %v5670_v35, %v4424_v6  ;;  %v5671_v9 = vld [vmem:[#allocation21_spill] sm:$0xff]  ;;  %v1327_v10 = vadd.f32 %v1322_v53, %v1303_v50  ;;  %v5679_v50 = vld [vmem:[#allocation51_spill] sm:$0xff] }
 0x5ff   :  { %2022 = vrot.lane.b32.xlu1 %v2015_v48, %s3009_s11  ;;  %v1520_v12 = vadd.f32 %v1515_v47, %v1496_v1  ;;  %v1346_v13 = vsel %vm251_vm1, %v5671_v9, %v4701_v42  ;;  %v2063_v48 = vmul.f32 %v5672_v55, %v4375_v59  ;;  %v5673_v47 = vld [vmem:[#allocation22_spill] sm:$0xff]  ;;  %v5674_v42 = vld [vmem:[#allocation52_spill] sm:$0xff] }
 0x600   :  { %v1537_v54 = vpop.permute.xlu0 %1536  ;;  %v1370_v28 = vsel %vm251_vm1, %v5673_v47, %v4715_v2  ;;  %v1351_v1 = vadd.f32 %v1346_v13, %v1327_v10  ;;  %v2375_v49 = vmul.f32 %v5674_v42, %v4443_v7  ;;  %v5680_v13 = vld [vmem:[#allocation48_spill] sm:$0xff] }
 0x601   :  { %v1545_v45 = vadd.f32 %v1537_v54, %v1521_v40  ;;  %v1535_v11 = vpop.permute.xlu1 %1534 }
 0x602   :  { %v1539_v22 = vsel %vm348_vm2, %v1535_v11, %v1537_v54  ;;  %2334 = vrot.lane.b32.xlu0 %v2327_v46, %s3011_s13  ;;  %v5675_v54 = vld [vmem:[#allocation26_spill] sm:$0xff]  ;;  %v1375_v26 = vadd.f32 %v1370_v28, %v1351_v1 }
 0x603   :  { %v1544_v36 = vadd.f32 %v1539_v22, %v1520_v12  ;;  %2044 = vrot.lane.b32.xlu1 %v2038_v0, %s3009_s11  ;;  %v1394_v46 = vsel %vm251_vm1, %v5675_v54, %v4728_v39  ;;  %v5676_v12 = vld [vmem:[#allocation39_spill] sm:$0xff]  ;;  %v5677_v0 = vld [vmem:[#allocation49_spill] sm:$0xff]  ;;  %v5683_v1 = vld [vmem:[#allocation54_spill] sm:$0xff] }
 0x604   :  { %v1561_v15 = vpop.permute.xlu0 %1560  ;;  %v1418_v33 = vsel %vm251_vm1, %v5677_v0, %v4741_v20  ;;  %v1399_v57 = vadd.f32 %v1394_v46, %v1375_v26  ;;  %v5678_v39 = vld [vmem:[#allocation55_spill] sm:$0xff]  ;;  %v5684_v46 = vld [vmem:[#allocation40_spill] sm:$0xff]  ;;  %v5686_v0 = vld [vmem:[#allocation58_spill] sm:$0xff] }
 0x605   :  { %v1569_v44 = vadd.f32 %v1561_v15, %v1545_v45  ;;  %v1559_v5 = vpop.permute.xlu1 %1558  ;;  %v2086_v45 = vmul.f32 %v5676_v12, %v4371_v16 }
 0x606   :  { %v1563_v34 = vsel %vm348_vm2, %v1559_v5, %v1561_v15  ;;  %2356 = vrot.lane.b32.xlu0 %v2350_v17, %s3011_s13  ;;  %v1442_v15 = vsel %vm251_vm1, %v5679_v50, %v4754_v8  ;;  %v1423_v55 = vadd.f32 %v1418_v33, %v1399_v57  ;;  %v5682_v8 = vld [vmem:[#allocation56_spill] sm:$0xff]  ;;  %v2446_v33 = vmul.f32 %v5686_v0, %v4368_v61  ;;  %v5689_v61 = vld [vmem:[#allocation62_spill] sm:$0xff] }
 0x607   :  { %v1568_v19 = vadd.f32 %v1563_v34, %v1544_v36  ;;  %2070 = vrot.lane.b32.xlu1 %v2063_v48, %s3010_s12  ;;  %v2398_v36 = vmul.f32 %v5678_v39, %v4445_v4  ;;  %v5681_v48 = vld [vmem:[#allocation53_spill] sm:$0xff] }
 0x608   :  { %v1585_v40 = vpop.permute.xlu0 %1584  ;;  %v1466_v10 = vsel %vm251_vm1, %v5681_v48, %v4770_v24  ;;  %v1447_v47 = vadd.f32 %v1442_v15, %v1423_v55  ;;  %v5685_v24 = vld [vmem:[#allocation35_spill] sm:$0xff]  ;;  %v5688_v15 = vld [vmem:[#allocation34_spill] sm:$0xff] }
 0x609   :  { %v1593_v3 = vadd.f32 %v1585_v40, %v1569_v44  ;;  %v1583_v51 = vpop.permute.xlu1 %1582  ;;  %v2111_v44 = vmul.f32 %v5680_v13, %v4403_v21  ;;  %v5690_v55 = vld [vmem:[#allocation59_spill] sm:$0xff] }
 0x60a   :  { %v1587_v2 = vsel %vm348_vm2, %v1583_v51, %v1585_v40  ;;  %2382 = vrot.lane.b32.xlu0 %v2375_v49, %s3011_s13  ;;  %v1490_v40 = vsel %vm251_vm1, %v5683_v1, %v4788_v31  ;;  %v1471_v12 = vadd.f32 %v1466_v10, %v1447_v47  ;;  %v5687_v31 = vld [vmem:[#allocation57_spill] sm:$0xff]  ;;  %v5691_v10 = vld [vmem:[#allocation60_spill] sm:$0xff]  ;;  %v5692_v1 = vld [vmem:[#allocation66_spill] sm:$0xff] }
 0x60b   :  { %v1592_v22 = vadd.f32 %v1587_v2, %v1568_v19  ;;  %2092 = vrot.lane.b32.xlu1 %v2086_v45, %s3010_s12  ;;  %v2423_v19 = vmul.f32 %v5682_v8, %v4479_v38  ;;  %v1514_v45 = vsel %vm251_vm1, %v5685_v24, %v4806_v58  ;;  %v1562_v58 = vsel %vm348_vm2, %v5688_v15, %v1559_v5 }
 0x60c   :  { %v1609_v53 = vpop.permute.xlu0 %1608  ;;  %v1495_v26 = vadd.f32 %v1490_v40, %v1471_v12  ;;  %v5693_v40 = vld [vmem:[#allocation61_spill] sm:$0xff] }
 0x60d   :  { %v1617_v17 = vadd.f32 %v1609_v53, %v1593_v3  ;;  %v1607_v9 = vpop.permute.xlu1 %1606  ;;  %v2134_v3 = vmul.f32 %v5684_v46, %v4385_v60 }
 0x60e   :  { %v1611_v20 = vsel %vm348_vm2, %v1607_v9, %v1609_v53  ;;  %2404 = vrot.lane.b32.xlu0 %v2398_v36, %s3011_s13  ;;  %v2159_v36 = vmul.f32 %v5653_v14, %v4427_v43  ;;  %v1519_v50 = vadd.f32 %v1514_v45, %v1495_v26  ;;  %v2182_v14 = vmul.f32 %v5654_v52, %v4434_v56  ;;  %v5695_v26 = vld [vmem:[#allocation67_spill] sm:$0xff] }
 0x60f   :  { %v1616_v34 = vadd.f32 %v1611_v20, %v1592_v22  ;;  %2118 = vrot.lane.b32.xlu1 %v2111_v44, %s3010_s12  ;;  %v1538_v22 = vsel %vm348_vm2, %v5687_v31, %v1535_v11  ;;  %v2471_v44 = vmul.f32 %v5689_v61, %v4391_v23  ;;  %v1586_v11 = vsel %vm348_vm2, %v5690_v55, %v1583_v51 }
 0x610   :  { %v1633_v28 = vpop.permute.xlu0 %1632  ;;  %v1610_v5 = vsel %vm348_vm2, %v5691_v10, %v1607_v9  ;;  %v2494_v23 = vmul.f32 %v5692_v1, %v4378_v63  ;;  %v2207_v52 = vmul.f32 %v5655_v37, %v4462_v18  ;;  %v5694_v9 = vld [vmem:[#allocation63_spill] sm:$0xff] }
 0x611   :  { %v1641_v49 = vadd.f32 %v1633_v28, %v1617_v17  ;;  %v1631_v54 = vpop.permute.xlu1 %1630  ;;  %v1543_v17 = vadd.f32 %v1538_v22, %v1519_v50  ;;  %v5696_v22 = vld [vmem:[#allocation64_spill] sm:$0xff] }
 0x612   :  { %2430 = vrot.lane.b32.xlu0 %v2423_v19, %s3011_s13  ;;  %v1634_v51 = vsel %vm348_vm2, %v5693_v40, %v1631_v54 }
 0x613   :  { %2140 = vrot.lane.b32.xlu1 %v2134_v3, %s3010_s12  ;;  %v1567_v48 = vadd.f32 %v1562_v58, %v1543_v17  ;;  %v1635_v3 = vsel %vm348_vm2, %v1631_v54, %v1633_v28  ;;  %v2230_v28 = vmul.f32 %v5656_v62, %v4455_v25  ;;  %v5697_v58 = vld [vmem:[#allocation65_spill] sm:$0xff] }
 0x614   :  { %v1657_v2 = vpop.permute.xlu0 %1656  ;;  %v1640_v31 = vadd.f32 %v1635_v3, %v1616_v34 }
 0x615   :  { %v1665_v57 = vadd.f32 %v1657_v2, %v1641_v49  ;;  %v1655_v53 = vpop.permute.xlu1 %1654  ;;  %v1591_v47 = vadd.f32 %v1586_v11, %v1567_v48 }
 0x616   :  { %2452 = vrot.lane.b32.xlu0 %v2446_v33, %s3012_s14  ;;  %v1658_v12 = vsel %vm348_vm2, %v5694_v9, %v1655_v53  ;;  %v1659_v63 = vsel %vm348_vm2, %v1655_v53, %v1657_v2  ;;  %v2519_v33 = vmul.f32 %v5695_v26, %v4414_v32  ;;  %v5700_v9 = vld [vmem:[#allocation70_spill] sm:$0xff] }
 0x617   :  { %2166 = vrot.lane.b32.xlu1 %v2159_v36, %s3010_s12  ;;  %v1615_v46 = vadd.f32 %v1610_v5, %v1591_v47  ;;  %v1664_v15 = vadd.f32 %v1659_v63, %v1640_v31  ;;  %v5699_v47 = vld [vmem:[#allocation69_spill] sm:$0xff] }
 0x618   :  { %v1681_v13 = vpop.permute.xlu0 %1680 }
 0x619   :  { %v1679_v20 = vpop.permute.xlu1 %1678  ;;  %v1639_v24 = vadd.f32 %v1634_v51, %v1615_v46  ;;  %v1689_v32 = vadd.f32 %v1681_v13, %v1665_v57 }
 0x61a   :  { %2478 = vrot.lane.b32.xlu0 %v2471_v44, %s3012_s14  ;;  %v1682_v37 = vsel %vm348_vm2, %v5696_v22, %v1679_v20  ;;  %v1683_v50 = vsel %vm348_vm2, %v1679_v20, %v1681_v13  ;;  %v5698_v44 = vld [vmem:[#allocation68_spill] sm:$0xff]  ;;  %v2255_v20 = vmul.f32 %v5657_v27, %v4375_v59  ;;  %v2278_v27 = vmul.f32 %v5660_v29, %v4371_v16 }
 0x61b   :  { %2188 = vrot.lane.b32.xlu1 %v2182_v14, %s3010_s12  ;;  %v1663_v54 = vadd.f32 %v1658_v12, %v1639_v24  ;;  %v2542_v62 = vmul.f32 %v5698_v44, %v4424_v6  ;;  %v1688_v55 = vadd.f32 %v1683_v50, %v1664_v15  ;;  %v2567_v6 = vmul.f32 %v5699_v47, %v4443_v7 }
 0x61c   :  { %v1705_v19 = vpop.permute.xlu0 %1704  ;;  %v2590_v7 = vmul.f32 %v5700_v9, %v4445_v4  ;;  %v2303_v24 = vmul.f32 %v5663_v30, %v4403_v21  ;;  %v2326_v22 = vmul.f32 %v5666_v41, %v4385_v60  ;;  %v2374_v15 = vmul.f32 %v5674_v42, %v4434_v56 }
 0x61d   :  { %v1703_v49 = vpop.permute.xlu1 %1702  ;;  %v1687_v34 = vadd.f32 %v1682_v37, %v1663_v54  ;;  %v1713_v14 = vadd.f32 %v1705_v19, %v1689_v32  ;;  %v2351_v54 = vmul.f32 %v5670_v35, %v4427_v43  ;;  %v2399_v35 = vmul.f32 %v5678_v39, %v4462_v18 }
 0x61e   :  { %2500 = vrot.lane.b32.xlu0 %v2494_v23, %s3012_s14  ;;  %v1706_v2 = vsel %vm348_vm2, %v5697_v58, %v1703_v49  ;;  %v1707_v53 = vsel %vm348_vm2, %v1703_v49, %v1705_v19  ;;  %v2422_v42 = vmul.f32 %v5682_v8, %v4455_v25  ;;  %v2447_v39 = vmul.f32 %v5686_v0, %v4375_v59 }
 0x61f   :  { %2214 = vrot.lane.b32.xlu1 %v2207_v52, %s3010_s12  ;;  %v1711_v48 = vadd.f32 %v1706_v2, %v1687_v34  ;;  %v1712_v57 = vadd.f32 %v1707_v53, %v1688_v55 }
 0x620   :  { %v1723_v45 = vpop.permute.xlu0 %1722 }
 0x621   :  { %v1725_v36 = vpop.permute.xlu1 %1724  ;;  %v1730_v19 = vadd.f32 %v1723_v45, %v1711_v48 }
 0x622   :  { %2526 = vrot.lane.b32.xlu0 %v2519_v33, %s3012_s14  ;;  %v1726_v10 = vsel %vm441_vm7, %v1723_v45, %v1725_v36  ;;  %v1732_v13 = vadd.f32 %v1725_v36, %v1713_v14  ;;  %v5701_v45 = vld [vmem:[#allocation86_spill] sm:$0xff] }
 0x623   :  { %2236 = vrot.lane.b32.xlu1 %v2230_v28, %s3010_s12  ;;  %v1731_v23 = vadd.f32 %v1726_v10, %v1712_v57  ;;  %v2615_v33 = vmul.f32 %v5701_v45, %v4479_v38 }
 0x624   :  { %v4925_v17 = vpop.permute.xlu0 %1855 }
 0x625   :  { %v1742_v11 = vpop.permute.xlu1 %1741 }
 0x626   :  { %2548 = vrot.lane.b32.xlu0 %v2542_v62, %s3012_s14  ;;  %v1749_v46 = vadd.f32 %v1742_v11, %v1730_v19 }
 0x627   :  { %2262 = vrot.lane.b32.xlu1 %v2255_v20, %s3011_s13 }
 0x628   :  { %v4934_v5 = vpop.permute.xlu0 %1876 }
 0x629   :  { %v1744_v40 = vpop.permute.xlu1 %1743 }
 0x62a   :  { %v1745_v51 = vsel %vm441_vm7, %v1742_v11, %v1744_v40  ;;  %v1751_v49 = vadd.f32 %v1744_v40, %v1732_v13  ;;  %2574 = vrot.lane.b32.xlu0 %v2567_v6, %s3012_s14 }
 0x62b   :  { %v1750_v52 = vadd.f32 %v1745_v51, %v1731_v23  ;;  %2284 = vrot.lane.b32.xlu1 %v2278_v27, %s3011_s13  ;;  %v2470_v23 = vmul.f32 %v5689_v61, %v4371_v16  ;;  %v2518_v61 = vmul.f32 %v5695_v26, %v4385_v60  ;;  %v2566_v26 = vmul.f32 %v5699_v47, %v4434_v56 }
 0x62c   :  { %v4943_v3 = vpop.permute.xlu0 %1902  ;;  %v2614_v47 = vmul.f32 %v5701_v45, %v4455_v25 }
 0x62d   :  { %v1761_v12 = vpop.permute.xlu1 %1760 }
 0x62e   :  { %v1768_v29 = vadd.f32 %v1761_v12, %v1749_v46  ;;  %2596 = vrot.lane.b32.xlu0 %v2590_v7, %s3012_s14 }
 0x62f   :  { %2310 = vrot.lane.b32.xlu1 %v2303_v24, %s3011_s13 }
 0x630   :  { %v4951_v63 = vpop.permute.xlu0 %1924 }
 0x631   :  { %v1763_v31 = vpop.permute.xlu1 %1762 }
 0x632   :  { %v1764_v4 = vsel %vm441_vm7, %v1761_v12, %v1763_v31  ;;  %v1770_v37 = vadd.f32 %v1763_v31, %v1751_v49  ;;  %2622 = vrot.lane.b32.xlu0 %v2615_v33, %s3012_s14  ;;  %v2495_v49 = vmul.f32 %v5692_v1, %v4403_v21  ;;  %v2543_v21 = vmul.f32 %v5698_v44, %v4427_v43  ;;  %v5703_v43 = vld [vmem:[#allocation71_spill] sm:$0xff] }
 0x633   :  { %v1769_v30 = vadd.f32 %v1764_v4, %v1750_v52  ;;  %2332 = vrot.lane.b32.xlu1 %v2326_v22, %s3011_s13  ;;  %v5702_v22 = vld [vmem:[#allocation87_spill] sm:$0xff] }
 0x634   :  { %v4960_v36 = vpop.permute.xlu0 %1950 }
 0x635   :  { %v1780_v28 = vpop.permute.xlu1 %1779 }
 0x636   :  { %v1787_v50 = vadd.f32 %v1780_v28, %v1768_v29 }
 0x637   :  { %2358 = vrot.lane.b32.xlu1 %v2351_v54, %s3011_s13 }
 0x638   :  { %v4965_v38 = vpop.permute.xlu0 %1972 }
 0x639   :  { %v1782_v41 = vpop.permute.xlu1 %1781 }
 0x63a   :  { %v1783_v58 = vsel %vm441_vm7, %v1780_v28, %v1782_v41  ;;  %v1789_v2 = vadd.f32 %v1782_v41, %v1770_v37  ;;  %v2591_v28 = vmul.f32 %v5700_v9, %v4462_v18  ;;  %v2616_v41 = vmul.f32 0.0, %v5701_v45 }
 0x63b   :  { %v1788_v32 = vadd.f32 %v1783_v58, %v1769_v30  ;;  %2380 = vrot.lane.b32.xlu1 %v2374_v15, %s3011_s13 }
 0x63c   :  { %v4971_v34 = vpop.permute.xlu0 %1998 }
 0x63d   :  { %v1799_v53 = vpop.permute.xlu1 %1798 }
 0x63e   :  { %v1806_v62 = vadd.f32 %v1799_v53, %v1787_v50 }
 0x63f   :  { %2406 = vrot.lane.b32.xlu1 %v2399_v35, %s3011_s13 }
 0x640   :  { %v4976_v55 = vpop.permute.xlu0 %2020 }
 0x641   :  { %v1801_v11 = vpop.permute.xlu1 %1800 }
 0x642   :  { %v1802_v20 = vsel %vm441_vm7, %v1799_v53, %v1801_v11  ;;  %v1808_v14 = vadd.f32 %v1801_v11, %v1789_v2 }
 0x643   :  { %v1807_v48 = vadd.f32 %v1802_v20, %v1788_v32  ;;  %2428 = vrot.lane.b32.xlu1 %v2422_v42, %s3011_s13 }
 0x644   :  { %v4982_v10 = vpop.permute.xlu0 %2046 }
 0x645   :  { %v1818_v57 = vpop.permute.xlu1 %1817 }
 0x646   :  { %v1825_v13 = vadd.f32 %v1818_v57, %v1806_v62 }
 0x647   :  { %2454 = vrot.lane.b32.xlu1 %v2447_v39, %s3012_s14 }
 0x648   :  { %v4990_v27 = vpop.permute.xlu0 %2068 }
 0x649   :  { %v1820_v6 = vpop.permute.xlu1 %1819 }
 0x64a   :  { %v1821_v8 = vsel %vm441_vm7, %v1818_v57, %v1820_v6  ;;  %v1827_v40 = vadd.f32 %v1820_v6, %v1808_v14  ;;  %v5704_v57 = vld [vmem:[#allocation88_spill] sm:$0xff] }
 0x64b   :  { %v1826_v19 = vadd.f32 %v1821_v8, %v1807_v48  ;;  %2476 = vrot.lane.b32.xlu1 %v2470_v23, %s3012_s14 }
 0x64c   :  { %v4997_v52 = vpop.permute.xlu0 %2094 }
 0x64d   :  { %v1837_v51 = vpop.permute.xlu1 %1836 }
 0x64e   :  { %v1844_v59 = vadd.f32 %v1837_v51, %v1825_v13 }
 0x64f   :  { %2502 = vrot.lane.b32.xlu1 %v2495_v49, %s3012_s14  ;;  %v5706_v49 = vld [vmem:[#allocation89_spill] sm:$0xff] }
 0x650   :  { %v1863_v0 = vadd.f32 %v4925_v17, %v1844_v59  ;;  %v5007_v33 = vpop.permute.xlu0 %2116 }
 0x651   :  { %v1839_v16 = vpop.permute.xlu1 %1838 }
 0x652   :  { %v1840_v46 = vsel %vm441_vm7, %v1837_v51, %v1839_v16  ;;  %v1846_v7 = vadd.f32 %v1839_v16, %v1827_v40  ;;  %v1887_v45 = vadd.f32 %v4934_v5, %v1863_v0 }
 0x653   :  { %v1845_v12 = vadd.f32 %v1840_v46, %v1826_v19  ;;  %2524 = vrot.lane.b32.xlu1 %v2518_v61, %s3012_s14  ;;  %v5705_v19 = vld [vmem:[#allocation72_spill] sm:$0xff] }
 0x654   :  { %v5020_v44 = vpop.permute.xlu0 %2142  ;;  %v1955_v51 = vsel %vm522_vm3, %v4960_v36, %v5705_v19 }
 0x655   :  { %v1858_v24 = vpop.permute.xlu1 %1857 }
 0x656   :  { %v1859_v1 = vsel %vm441_vm7, %v4925_v17, %v1858_v24  ;;  %v1865_v29 = vadd.f32 %v1858_v24, %v1846_v7  ;;  %v1907_v17 = vsel %vm522_vm3, %v4943_v3, %v5703_v43 }
 0x657   :  { %v5009_v31 = vadd.f32 %v1859_v1, %v1845_v12  ;;  %2550 = vrot.lane.b32.xlu1 %v2543_v21, %s3012_s14  ;;  %v5707_v21 = vld [vmem:[#allocation73_spill] sm:$0xff] }
 0x658   :  { %v5027_v50 = vpop.permute.xlu0 %2164  ;;  %v2003_v1 = vsel %vm522_vm3, %v4971_v34, %v5707_v21 }
 0x659   :  { %v1879_v60 = vpop.permute.xlu1 %1878 }
 0x65a   :  { %v1883_v4 = vsel %vm522_vm3, %v1879_v60, %v5702_v22 }
 0x65b   :  { %v1889_v37 = vadd.f32 %v1883_v4, %v1865_v29  ;;  %2572 = vrot.lane.b32.xlu1 %v2566_v26, %s3012_s14  ;;  %v5708_v29 = vld [vmem:[#allocation90_spill] sm:$0xff] }
 0x65c   :  { %v5032_v58 = vpop.permute.xlu0 %2190 }
 0x65d   :  { %v1901_v30 = vpop.permute.xlu1 %1900  ;;  %v1913_v54 = vadd.f32 %v1907_v17, %v1889_v37 }
 0x65e   :  { %v1911_v11 = vadd.f32 %v1901_v30, %v1887_v45 }
 0x65f   :  { %2598 = vrot.lane.b32.xlu1 %v2591_v28, %s3012_s14 }
 0x660   :  { %v5036_v9 = vpop.permute.xlu0 %2212  ;;  %v1935_v20 = vadd.f32 %v4951_v63, %v1911_v11 }
 0x661   :  { %v1927_v56 = vpop.permute.xlu1 %1926 }
 0x662   :  { %v1931_v39 = vsel %vm522_vm3, %v1927_v56, %v5704_v57 }
 0x663   :  { %2620 = vrot.lane.b32.xlu1 %v2614_v47, %s3012_s14  ;;  %v1937_v6 = vadd.f32 %v1931_v39, %v1913_v54  ;;  %v5709_v54 = vld [vmem:[#allocation74_spill] sm:$0xff]  ;;  %v1882_v39 = vsel %vm522_vm3, %v4934_v5, %v1879_v60  ;;  %v5712_v5 = vld [vmem:[#allocation92_spill] sm:$0xff] }
 0x664   :  { %v5040_v53 = vpop.permute.xlu0 %2238  ;;  %v2051_v47 = vsel %vm522_vm3, %v4982_v10, %v5709_v54  ;;  %v1888_v19 = vadd.f32 %v1882_v39, %v5009_v31 }
 0x665   :  { %v1949_v15 = vpop.permute.xlu1 %1948  ;;  %v1961_v16 = vadd.f32 %v1955_v51, %v1937_v6  ;;  %v1906_v6 = vsel %vm522_vm3, %v1901_v30, %v4943_v3 }
 0x666   :  { %v1959_v13 = vadd.f32 %v1949_v15, %v1935_v20  ;;  %v1912_v30 = vadd.f32 %v1906_v6, %v1888_v19  ;;  %v1954_v31 = vsel %vm522_vm3, %v1949_v15, %v4960_v36  ;;  %v5714_v15 = vld [vmem:[#allocation93_spill] sm:$0xff] }
 0x667   :  { %2624 = vrot.lane.b32.xlu1 %v2616_v41, %s3012_s14  ;;  %v5710_v41 = vld [vmem:[#allocation91_spill] sm:$0xff] }
 0x668   :  { %v5047_v62 = vpop.permute.xlu0 %2260  ;;  %v1983_v8 = vadd.f32 %v4965_v38, %v1959_v13 }
 0x669   :  { %v1975_v2 = vpop.permute.xlu1 %1974 }
 0x66a   :  { %v1979_v59 = vsel %vm522_vm3, %v1975_v2, %v5706_v49 }
 0x66b   :  { %v1985_v46 = vadd.f32 %v1979_v59, %v1961_v16  ;;  %v5711_v59 = vld [vmem:[#allocation75_spill] sm:$0xff]  ;;  %v1930_v16 = vsel %vm522_vm3, %v4951_v63, %v1927_v56 }
 0x66c   :  { %v5052_v14 = vpop.permute.xlu0 %2286 }
 0x66d   :  { %v5034_v18 = vpop.permute.xlu1 %1996  ;;  %v2009_v4 = vadd.f32 %v2003_v1, %v1985_v46 }
 0x66e   :  { %v2007_v0 = vadd.f32 %v5034_v18, %v1983_v8  ;;  %v2002_v36 = vsel %vm522_vm3, %v5034_v18, %v4971_v34 }
 0x670   :  { %v5061_v40 = vpop.permute.xlu0 %2308  ;;  %v2031_v7 = vadd.f32 %v4976_v55, %v2007_v0  ;;  %v2099_v0 = vsel %vm619_vm4, %v4997_v52, %v5711_v59 }
 0x671   :  { %v5038_v32 = vpop.permute.xlu1 %2022 }
 0x672   :  { %v2027_v26 = vsel %vm522_vm3, %v5038_v32, %v5708_v29  ;;  %v1978_v29 = vsel %vm522_vm3, %v4965_v38, %v1975_v2 }
 0x673   :  { %v2033_v37 = vadd.f32 %v2027_v26, %v2009_v4 }
 0x674   :  { %v5072_v12 = vpop.permute.xlu0 %2334 }
 0x675   :  { %v5042_v25 = vpop.permute.xlu1 %2044  ;;  %v2057_v20 = vadd.f32 %v2051_v47, %v2033_v37  ;;  %v2026_v47 = vsel %vm522_vm3, %v4976_v55, %v5038_v32  ;;  %v5716_v32 = vld [vmem:[#allocation94_spill] sm:$0xff] }
 0x676   :  { %v2055_v22 = vadd.f32 %v5042_v25, %v2031_v7  ;;  %v1936_v7 = vadd.f32 %v1930_v16, %v1912_v30  ;;  %v5717_v30 = vld [vmem:[#allocation78_spill] sm:$0xff] }
 0x678   :  { %v2079_v17 = vadd.f32 %v4990_v27, %v2055_v22  ;;  %v5086_v28 = vpop.permute.xlu0 %2356  ;;  %v1960_v56 = vadd.f32 %v1954_v31, %v1936_v7  ;;  %v5713_v22 = vld [vmem:[#allocation76_spill] sm:$0xff] }
 0x679   :  { %v5044_v35 = vpop.permute.xlu1 %2070  ;;  %v2147_v4 = vsel %vm619_vm4, %v5020_v44, %v5713_v22 }
 0x67a   :  { %v2075_v45 = vsel %vm619_vm4, %v5044_v35, %v5710_v41  ;;  %v1984_v38 = vadd.f32 %v1978_v29, %v1960_v56  ;;  %v2074_v55 = vsel %vm619_vm4, %v4990_v27, %v5044_v35 }
 0x67b   :  { %v2081_v13 = vadd.f32 %v2075_v45, %v2057_v20 }
 0x67c   :  { %v5103_v51 = vpop.permute.xlu0 %2382  ;;  %v2008_v41 = vadd.f32 %v2002_v36, %v1984_v38 }
 0x67d   :  { %v5049_v42 = vpop.permute.xlu1 %2092  ;;  %v2105_v46 = vadd.f32 %v2099_v0, %v2081_v13  ;;  %v5715_v13 = vld [vmem:[#allocation77_spill] sm:$0xff] }
 0x67e   :  { %v2103_v11 = vadd.f32 %v5049_v42, %v2079_v17  ;;  %v2032_v18 = vadd.f32 %v2026_v47, %v2008_v41  ;;  %v2195_v6 = vsel %vm619_vm4, %v5032_v58, %v5715_v13  ;;  %v2098_v59 = vsel %vm619_vm4, %v5049_v42, %v4997_v52  ;;  %v5718_v42 = vld [vmem:[#allocation95_spill] sm:$0xff] }
 0x680   :  { %v2127_v8 = vadd.f32 %v5007_v33, %v2103_v11  ;;  %v5123_v26 = vpop.permute.xlu0 %2404  ;;  %v2050_v11 = vsel %vm522_vm3, %v5042_v25, %v4982_v10 }
 0x681   :  { %v5054_v48 = vpop.permute.xlu1 %2118  ;;  %v2056_v25 = vadd.f32 %v2050_v11, %v2032_v18  ;;  %v5721_v18 = vld [vmem:[#allocation80_spill] sm:$0xff] }
 0x682   :  { %v2123_v60 = vsel %vm619_vm4, %v5054_v48, %v5712_v5  ;;  %v2339_v13 = vsel %vm716_vm5, %v5072_v12, %v5721_v18 }
 0x683   :  { %v2129_v21 = vadd.f32 %v2123_v60, %v2105_v46  ;;  %v2080_v0 = vadd.f32 %v2074_v55, %v2056_v25  ;;  %v2122_v60 = vsel %vm619_vm4, %v5007_v33, %v5054_v48  ;;  %v2243_v46 = vsel %vm619_vm4, %v5040_v53, %v5717_v30 }
 0x684   :  { %v5142_v20 = vpop.permute.xlu0 %2430 }
 0x685   :  { %v5058_v23 = vpop.permute.xlu1 %2140  ;;  %v2153_v2 = vadd.f32 %v2147_v4, %v2129_v21  ;;  %v2104_v35 = vadd.f32 %v2098_v59, %v2080_v0 }
 0x686   :  { %v2151_v3 = vadd.f32 %v5058_v23, %v2127_v8  ;;  %v2146_v52 = vsel %vm619_vm4, %v5058_v23, %v5020_v44 }
 0x687   :  { %v2128_v33 = vadd.f32 %v2122_v60, %v2104_v35  ;;  %v5724_v35 = vld [vmem:[#allocation98_spill] sm:$0xff] }
 0x688   :  { %v2175_v63 = vadd.f32 %v5027_v50, %v2151_v3  ;;  %v5161_v3 = vpop.permute.xlu0 %2452 }
 0x689   :  { %v5069_v61 = vpop.permute.xlu1 %2166 }
 0x68a   :  { %v2171_v37 = vsel %vm619_vm4, %v5069_v61, %v5714_v15  ;;  %v2170_v29 = vsel %vm619_vm4, %v5027_v50, %v5069_v61  ;;  %v5719_v15 = vld [vmem:[#allocation79_spill] sm:$0xff]  ;;  %v5720_v50 = vld [vmem:[#allocation96_spill] sm:$0xff] }
 0x68b   :  { %v2177_v45 = vadd.f32 %v2171_v37, %v2153_v2  ;;  %v2291_v37 = vsel %vm716_vm5, %v5052_v14, %v5719_v15 }
 0x68c   :  { %v2479_v4 = vpop.permute.xlu0 %2478 }
 0x68d   :  { %v5074_v24 = vpop.permute.xlu1 %2188  ;;  %v2201_v19 = vadd.f32 %v2195_v6, %v2177_v45 }
 0x68e   :  { %v2199_v17 = vadd.f32 %v5074_v24, %v2175_v63  ;;  %v2152_v63 = vadd.f32 %v2146_v52, %v2128_v33  ;;  %v2194_v22 = vsel %vm619_vm4, %v5074_v24, %v5032_v58 }
 0x690   :  { %v2223_v34 = vadd.f32 %v5036_v9, %v2199_v17  ;;  %v2176_v23 = vadd.f32 %v2170_v29, %v2152_v63  ;;  %v5726_v63 = vld [vmem:[#allocation99_spill] sm:$0xff] }
 0x691   :  { %v5083_v43 = vpop.permute.xlu1 %2214 }
 0x692   :  { %v2219_v8 = vsel %vm619_vm4, %v5083_v43, %v5716_v32  ;;  %v2218_v17 = vsel %vm619_vm4, %v5036_v9, %v5083_v43  ;;  %v2200_v2 = vadd.f32 %v2194_v22, %v2176_v23  ;;  %v2501_v9 = vpop.permute.xlu0 %2500 }
 0x693   :  { %v2225_v16 = vadd.f32 %v2219_v8, %v2201_v19 }
 0x694   :  { %v2224_v24 = vadd.f32 %v2218_v17, %v2200_v2 }
 0x695   :  { %v5095_v57 = vpop.permute.xlu1 %2236  ;;  %v2249_v48 = vadd.f32 %v2243_v46, %v2225_v16 }
 0x696   :  { %v2247_v10 = vadd.f32 %v5095_v57, %v2223_v34  ;;  %v2242_v58 = vsel %vm619_vm4, %v5095_v57, %v5040_v53  ;;  %v5722_v53 = vld [vmem:[#allocation97_spill] sm:$0xff]  ;;  %v2527_v0 = vpop.permute.xlu0 %2526 }
 0x697   :  { %v2248_v43 = vadd.f32 %v2242_v58, %v2224_v24 }
 0x698   :  { %v2271_v27 = vadd.f32 %v5047_v62, %v2247_v10 }
 0x699   :  { %v5105_v49 = vpop.permute.xlu1 %2262 }
 0x69a   :  { %v2267_v31 = vsel %vm716_vm5, %v5105_v49, %v5718_v42  ;;  %v2266_v11 = vsel %vm716_vm5, %v5047_v62, %v5105_v49  ;;  %v2549_v33 = vpop.permute.xlu0 %2548 }
 0x69b   :  { %v2273_v56 = vadd.f32 %v2267_v31, %v2249_v48  ;;  %v2272_v32 = vadd.f32 %v2266_v11, %v2248_v43 }
 0x69d   :  { %v5118_v1 = vpop.permute.xlu1 %2284  ;;  %v2297_v47 = vadd.f32 %v2291_v37, %v2273_v56 }
 0x69e   :  { %v2295_v7 = vadd.f32 %v5118_v1, %v2271_v27  ;;  %v2290_v6 = vsel %vm716_vm5, %v5118_v1, %v5052_v14  ;;  %v5723_v1 = vld [vmem:[#allocation81_spill] sm:$0xff]  ;;  %v2575_v17 = vpop.permute.xlu0 %2574 }
 0x69f   :  { %v2296_v49 = vadd.f32 %v2290_v6, %v2272_v32  ;;  %v2387_v60 = vsel %vm716_vm5, %v5103_v51, %v5723_v1 }
 0x6a0   :  { %v2319_v44 = vadd.f32 %v5061_v40, %v2295_v7 }
 0x6a1   :  { %v2311_v54 = vpop.permute.xlu1 %2310 }
 0x6a2   :  { %v2315_v61 = vsel %vm716_vm5, %v2311_v54, %v5720_v50  ;;  %v2314_v62 = vsel %vm716_vm5, %v5061_v40, %v2311_v54  ;;  %v2597_v6 = vpop.permute.xlu0 %2596 }
 0x6a3   :  { %v2321_v41 = vadd.f32 %v2315_v61, %v2297_v47  ;;  %v2320_v16 = vadd.f32 %v2314_v62, %v2296_v49  ;;  %v5728_v47 = vld [vmem:[#allocation100_spill] sm:$0xff] }
 0x6a5   :  { %v2333_v39 = vpop.permute.xlu1 %2332  ;;  %v2345_v8 = vadd.f32 %v2339_v13, %v2321_v41 }
 0x6a6   :  { %v2343_v38 = vadd.f32 %v2333_v39, %v2319_v44  ;;  %v2338_v19 = vsel %vm716_vm5, %v2333_v39, %v5072_v12 }
 0x6a7   :  { %v2344_v30 = vadd.f32 %v2338_v19, %v2320_v16 }
 0x6a8   :  { %v2367_v34 = vadd.f32 %v5086_v28, %v2343_v38  ;;  %v5727_v38 = vld [vmem:[#allocation83_spill] sm:$0xff] }
 0x6a9   :  { %v2359_v5 = vpop.permute.xlu1 %2358 }
 0x6aa   :  { %v2363_v57 = vsel %vm716_vm5, %v2359_v5, %v5722_v53  ;;  %v2362_v27 = vsel %vm716_vm5, %v5086_v28, %v2359_v5  ;;  %v5725_v28 = vld [vmem:[#allocation82_spill] sm:$0xff] }
 0x6ab   :  { %v2369_v25 = vadd.f32 %v2363_v57, %v2345_v8  ;;  %v2368_v39 = vadd.f32 %v2362_v27, %v2344_v30  ;;  %v2435_v5 = vsel %vm716_vm5, %v5142_v20, %v5725_v28  ;;  %v5729_v57 = vld [vmem:[#allocation84_spill] sm:$0xff]  ;;  %v5731_v27 = vld [vmem:[#allocation85_spill] sm:$0xff] }
 0x6ad   :  { %v2381_v21 = vpop.permute.xlu1 %2380  ;;  %v2393_v46 = vadd.f32 %v2387_v60, %v2369_v25 }
 0x6ae   :  { %v2391_v55 = vadd.f32 %v2381_v21, %v2367_v34  ;;  %v2386_v12 = vsel %vm716_vm5, %v2381_v21, %v5103_v51 }
 0x6af   :  { %v2392_v48 = vadd.f32 %v2386_v12, %v2368_v39 }
 0x6b0   :  { %v2415_v59 = vadd.f32 %v5123_v26, %v2391_v55 }
 0x6b1   :  { %v2407_v36 = vpop.permute.xlu1 %2406 }
 0x6b2   :  { %v2411_v40 = vsel %vm716_vm5, %v2407_v36, %v5724_v35  ;;  %v2410_v31 = vsel %vm716_vm5, %v5123_v26, %v2407_v36  ;;  %v5732_v35 = vld [vmem:[#allocation102_spill] sm:$0xff] }
 0x6b3   :  { %v2417_v52 = vadd.f32 %v2411_v40, %v2393_v46  ;;  %v2416_v56 = vadd.f32 %v2410_v31, %v2392_v48 }
 0x6b5   :  { %v2429_v45 = vpop.permute.xlu1 %2428  ;;  %v2441_v22 = vadd.f32 %v2435_v5, %v2417_v52 }
 0x6b6   :  { %v2439_v54 = vadd.f32 %v2429_v45, %v2415_v59  ;;  %v2434_v29 = vsel %vm716_vm5, %v2429_v45, %v5142_v20  ;;  %v2483_v20 = vsel %vm813_vm6, %v2479_v4, %v5727_v38 }
 0x6b7   :  { %v2440_v23 = vadd.f32 %v2434_v29, %v2416_v56 }
 0x6b8   :  { %v2463_v7 = vadd.f32 %v5161_v3, %v2439_v54 }
 0x6b9   :  { %v2455_v10 = vpop.permute.xlu1 %2454 }
 0x6ba   :  { %v2459_v51 = vsel %vm813_vm6, %v2455_v10, %v5726_v63  ;;  %v2458_v26 = vsel %vm813_vm6, %v5161_v3, %v2455_v10 }
 0x6bb   :  { %v2465_v36 = vadd.f32 %v2459_v51, %v2441_v22  ;;  %v2464_v50 = vadd.f32 %v2458_v26, %v2440_v23 }
 0x6bd   :  { %v2477_v14 = vpop.permute.xlu1 %2476  ;;  %v2489_v45 = vadd.f32 %v2483_v20, %v2465_v36 }
 0x6be   :  { %v2487_v21 = vadd.f32 %v2477_v14, %v2463_v7  ;;  %v2482_v15 = vsel %vm813_vm6, %v2477_v14, %v2479_v4  ;;  %v2531_v4 = vsel %vm813_vm6, %v2527_v0, %v5729_v57  ;;  %v2623_v14 = vpop.permute.xlu0 %2622 }
 0x6bf   :  { %v2488_v41 = vadd.f32 %v2482_v15, %v2464_v50 }
 0x6c0   :  { %v2511_v37 = vadd.f32 %v2501_v9, %v2487_v21 }
 0x6c1   :  { %v2503_v42 = vpop.permute.xlu1 %2502 }
 0x6c2   :  { %v2506_v2 = vsel %vm813_vm6, %v2501_v9, %v2503_v42  ;;  %v2507_v58 = vsel %vm813_vm6, %v2503_v42, %v5728_v47  ;;  %v5730_v9 = vld [vmem:[#allocation101_spill] sm:$0xff] }
 0x6c3   :  { %v2512_v11 = vadd.f32 %v2506_v2, %v2488_v41  ;;  %v2513_v34 = vadd.f32 %v2507_v58, %v2489_v45 }
 0x6c5   :  { %v2525_v44 = vpop.permute.xlu1 %2524  ;;  %v2537_v10 = vadd.f32 %v2531_v4, %v2513_v34 }
 0x6c6   :  { %v2535_v24 = vadd.f32 %v2525_v44, %v2511_v37  ;;  %v2530_v3 = vsel %vm813_vm6, %v2525_v44, %v2527_v0  ;;  %v2579_v0 = vsel %vm813_vm6, %v2575_v17, %v5731_v27 }
 0x6c7   :  { %v2536_v53 = vadd.f32 %v2530_v3, %v2512_v11 }
 0x6c8   :  { %v2559_v13 = vadd.f32 %v2549_v33, %v2535_v24  ;;  %v2917_v24 = vld [vmem:[%s5287_s3] sm:$0xff]  ;;  %s2940_s3 = scalar_lea.vmem %s2706_s27, 256 }
 0x6c9   :  { %v2551_v61 = vpop.permute.xlu1 %2550  ;;  %p2941_p8 = scmp.ne.s32.totalorder %s2706_s27, %s2940_s3  ;;  %p2946_p10 = scmp.lt.s32.totalorder %s2940_s3, %s2940_s3 }
 0x6ca   :  { %v2554_v18 = vsel %vm813_vm6, %v2549_v33, %v2551_v61  ;;  %v2555_v55 = vsel %vm813_vm6, %v2551_v61, %v5730_v9 }
 0x6cb   :  { %v2560_v62 = vadd.f32 %v2554_v18, %v2536_v53  ;;  %v2561_v19 = vadd.f32 %v2555_v55, %v2537_v10  ;;  %v5735_v55 = vld [vmem:[#allocation103_spill] sm:$0xff]  ;;  %p2947_p11 = por %p2946_p10, %p2945_p9 }
 0x6cd   :  { %v2573_v43 = vpop.permute.xlu1 %2572  ;;  %v2585_v46 = vadd.f32 %v2579_v0, %v2561_v19  ;;  %p2948_p12 = pnand %p2947_p11, %p2941_p8 }
 0x6ce   :  { %v2578_v32 = vsel %vm813_vm6, %v2573_v43, %v2575_v17  ;;  %v2583_v8 = vadd.f32 %v2573_v43, %v2559_v13 }
 0x6cf   :  { %v2584_v59 = vadd.f32 %v2578_v32, %v2560_v62 }
 0x6d0   :  { %v2607_v16 = vadd.f32 %v2597_v6, %v2583_v8  ;;  %v5736_v8 = vld [vmem:[#allocation104_spill] sm:$0xff] }
 0x6d1   :  { %v2599_v49 = vpop.permute.xlu1 %2598 }
 0x6d2   :  { %v2602_v25 = vsel %vm813_vm6, %v2597_v6, %v2599_v49  ;;  %v2603_v40 = vsel %vm813_vm6, %v2599_v49, %v5732_v35 }
 0x6d3   :  { %v2608_v1 = vadd.f32 %v2602_v25, %v2584_v59  ;;  %v2609_v39 = vadd.f32 %v2603_v40, %v2585_v46 }
 0x6d5   :  { %v2621_v60 = vpop.permute.xlu1 %2620 }
 0x6d6   :  { %v2626_v54 = vsel %vm813_vm6, %v2621_v60, %v2623_v14  ;;  %v2631_v30 = vadd.f32 %v2621_v60, %v2607_v16 }
 0x6d7   :  { %v2632_v12 = vadd.f32 %v2626_v54, %v2608_v1 }
 0x6d8   :  { %2637 = vrot.lane.b32.xlu0 %v2631_v30, %s3013_s19 }
 0x6d9   :  { %v2625_v52 = vpop.permute.xlu1 %2624  ;;  %2639 = vrot.lane.b32.xlu1 %v2632_v12, %s3013_s19 }
 0x6da   :  { %v2627_v42 = vsel %vm813_vm6, %v2623_v14, %v2625_v52 }
 0x6db   :  { %v2633_v31 = vadd.f32 %v2627_v42, %v2609_v39 }
 0x6dd   :  { %2641 = vrot.lane.b32.xlu0 %v2633_v31, %s3013_s19 }
 0x74a   :  { %v2638_v7 = vpop.permute.xlu0 %2637 }
 0x74b   :  { %v2640_v33 = vpop.permute.xlu1 %2639 }
 0x74c   :  { %v2643_v48 = vsel %vm914_vm9, %v2638_v7, %v2640_v33 }
 0x74d   :  { %v2647_v63 = vsel %vm4026_vm10, %v2643_v48, 0.0 }
 0x74f   :  { %v2642_v28 = vpop.permute.xlu0 %2641 }
 0x750   :  { %v2644_v5 = vsel %vm914_vm9, %v2640_v33, %v2642_v28 }
 0x751   :  { %v2648_v21 = vsel %vm4030_vm11, %v2644_v5, 0.0 }
 0x752   :  { %v2649_v56 = vadd.f32 %v2648_v21, %v2647_v63 }
 0x754   :  { %2650 = vadd.xlane.f32.xlu1 %v2649_v56 }
 0x7e1   :  { %v2651_v22 = vpop.xlane.xlu1 %2650 }
 0x7e2   :  { %v2652_v44 = vmul.f32 0.0078125, %v2651_v22 }
 0x7e4   :  { %v2653_v26 = vsub.f32 %v2631_v30, %v2652_v44  ;;  %v2654_v23 = vsub.f32 %v2632_v12, %v2652_v44  ;;  %v2655_v36 = vsub.f32 %v2633_v31, %v2652_v44 }
 0x7e6   :  { %2659 = vrot.lane.b32.xlu0 %v2653_v26, %s3013_s19 }
 0x7ea   :  { %2661 = vrot.lane.b32.xlu0 %v2654_v23, %s3013_s19 }
 0x7ee   :  { %2663 = vrot.lane.b32.xlu0 %v2655_v36, %s3013_s19 }
 0x858   :  { %v2660_v15 = vpop.permute.xlu0 %2659 }
 0x85c   :  { %v2662_v37 = vpop.permute.xlu0 %2661 }
 0x85d   :  { %v2665_v17 = vsel %vm914_vm9, %v2660_v15, %v2662_v37 }
 0x85e   :  { %v2669_v50 = vsel %vm4026_vm10, %v2665_v17, 0.0 }
 0x85f   :  { %v2671_v2 = vmul.f32 %v2669_v50, %v2669_v50 }
 0x860   :  { %v2664_v61 = vpop.permute.xlu0 %2663 }
 0x861   :  { %v2666_v38 = vsel %vm914_vm9, %v2662_v37, %v2664_v61 }
 0x862   :  { %v2670_v20 = vsel %vm4030_vm11, %v2666_v38, 0.0 }
 0x863   :  { %v2672_v47 = vmul.f32 %v2670_v20, %v2670_v20 }
 0x865   :  { %v2673_v58 = vadd.f32 %v2672_v47, %v2671_v2 }
 0x867   :  { %2674 = vadd.xlane.f32.xlu0 %v2673_v58 }
 0x87d   :  { %2688 = vperm.xlu0 %2910, %v2917_v24  }
 0x8f4   :  { %v2675_v41 = vpop.xlane.xlu0 %2674 }
 0x8f5   :  { %v2676_v45 = vmul.f32 0.0078125, %v2675_v41 }
 0x8f7   :  { %v2677_v3 = vadd.f32 1e-05, %v2676_v45 }
 0x8f9   :  { %2913 = vrsqrt.f32 %v2677_v3 }
 0x8fc   :  { %v2689_v18 = vpop.permute.xlu0 %2688 }
 0x903   :  { %v2914_v11 = vpop.eup %2913 }
 0x904   :  { %v2679_v34 = vmul.f32 %v2917_v24, %v2914_v11 }
 0x906   :  { %2682 = vperm.xlu1 %2909, %v2679_v34  }
 0x985   :  { %v2683_v43 = vpop.permute.xlu1 %2682 }
 0x986   :  { %v2685_v13 = vmul.f32 %v2683_v43, %v2669_v50  ;;  %v2686_v6 = vmul.f32 %v2683_v43, %v2670_v20 }
 0x988   :  { %v2691_v53 = vadd.f32 %v2689_v18, %v2685_v13  ;;  %v2692_v57 = vadd.f32 %v2689_v18, %v2686_v6 }
 0x98a   :  { %v2693_v4 = vmax.f32 %v2691_v53, 0.0  ;;  %v2694_v9 = vmax.f32 %v2692_v57, 0.0 }
 0x98c   :  { %v2695_v32 = vmul.f32 %v2693_v4, %v5735_v55  ;;  %v2696_v10 = vmul.f32 %v2694_v9, %v5736_v8 }
 0x98e   :  { %2697 = vst [vmem:[#allocation5] sm:$0xff] %v2695_v32  ;;  %2698 = vst [vmem:[#allocation5 + $0x8] sm:$0xff] %v2696_v10 }
 0x98f   :  { %2951 = shalt.err (!%p2948_p12)
}
 0x990   :  { %s2952_s30 = scalar_lea.hbm %s5289_s5, 256 }
 0x991   :  { %p2953_p13 = scmp.ne.s32.totalorder %s5289_s5, %s2952_s30  ;;  %p2956_p0 = scmp.lt.u32.totalorder %s2952_s30, %s5289_s5 }
 0x993   :  { %p2958_p1 = pnand %p2956_p0, %p2953_p13 }
 0x995   :  { %2961 = shalt.err (!%p2958_p1)
}
 0x996   :  { %2708 = dma.vmem_to_hbm [thread:$0]  %s2706_s27, 256, %s5289_s5, [#allocation4]  }
 0x997   :  { %2964 = dma.done.wait [#allocation4], 256  }
 0x998   :  { %2965 = vsyncadd [#allocation4], 4294967040 }
 0x999   :  { %2712 = vsyncpa [#allocation3], 1 }
 0x99a   :  { %2713 = vsyncpa [#allocation4], 1 }

</bundles_post_ra>
